<compile_context>
chip_gen: v7x
topology: tpu7x:2x2x1
jax: 0.10.0
libtpu: 0.0.40
codegen_flags: <defaults>
</compile_context>

<pallas_src>
import functools

import jax
import jax.numpy as jnp
from jax.experimental import pallas as pl
from jax.experimental.pallas import tpu as pltpu

NPAD = 128  # lane-dense output channel padding


# ----------------------------------------------------------------------------
# Pallas kernels
# ----------------------------------------------------------------------------
def _mm_bias_act_kernel(a_ref, b_ref, bias_ref, o_ref, *, act):
    """One (TM, K) x (K, NPAD) tile: bf16 MXU matmul, f32 bias + activation."""
    acc = jnp.dot(a_ref[...], b_ref[...], preferred_element_type=jnp.float32)
    acc = acc + bias_ref[...]
    if act == "relu":
        acc = jnp.maximum(acc, 0.0)
    o_ref[...] = acc.astype(o_ref.dtype)


def matmul_bias_act(a, wp, bp, act="none", out_dtype=jnp.bfloat16):
    """act(a @ wp + bp). a: (M, K) bf16, wp: (K, NPAD) bf16, bp: (1, NPAD) f32."""
    M, K = a.shape
    n_pad = wp.shape[1]
    # One big tile; split in two (still huge tiles) when M is large so the
    # grid can be sharded across v7x's two TensorCores.
    if M >= 256 and M % 32 == 0:
        tm, grid = M // 2, 2
    else:
        tm, grid = M, 1
    return pl.pallas_call(
        functools.partial(_mm_bias_act_kernel, act=act),
        out_shape=jax.ShapeDtypeStruct((M, n_pad), out_dtype),
        grid=(grid,),
        in_specs=[
            pl.BlockSpec((tm, K), lambda i: (i, 0)),
            pl.BlockSpec((K, n_pad), lambda i: (0, 0)),
            pl.BlockSpec((1, n_pad), lambda i: (0, 0)),
        ],
        out_specs=pl.BlockSpec((tm, n_pad), lambda i: (i, 0)),
        compiler_params=pltpu.CompilerParams(
            dimension_semantics=("parallel",)),
    )(a.astype(jnp.bfloat16), wp, bp)


def _dec_head_kernel(a_ref, wd_ref, bd_ref, wh_ref, bh_ref, o_ref):
    """Fused dec_conv (3x3, ReLU) + head (1x1) — logits land in column 0."""
    acc = jnp.dot(a_ref[...], wd_ref[...], preferred_element_type=jnp.float32)
    acc = jnp.maximum(acc + bd_ref[...], 0.0)                 # dec_conv + ReLU
    head = jnp.dot(acc.astype(jnp.bfloat16), wh_ref[...],
                   preferred_element_type=jnp.float32)        # 16 -> 1 (padded)
    o_ref[...] = head + bh_ref[...]


def dec_head_call(a, wd, bd, wh, bh):
    M, K = a.shape
    n_pad = wd.shape[1]
    n_out = wh.shape[1]
    return pl.pallas_call(
        _dec_head_kernel,
        out_shape=jax.ShapeDtypeStruct((M, n_out), jnp.float32),
        grid=(1,),
        in_specs=[
            pl.BlockSpec((M, K), lambda i: (0, 0)),
            pl.BlockSpec((K, n_pad), lambda i: (0, 0)),
            pl.BlockSpec((1, n_pad), lambda i: (0, 0)),
            pl.BlockSpec((n_pad, n_out), lambda i: (0, 0)),
            pl.BlockSpec((1, n_out), lambda i: (0, 0)),
        ],
        out_specs=pl.BlockSpec((M, n_out), lambda i: (0, 0)),
    )(a.astype(jnp.bfloat16), wd, bd, wh, bh)


def _upsample_tanh_kernel(l_ref, rt_ref, r_ref, o_ref, *, n_batch, h):
    """Separable bilinear upsample (two small matmuls) + Tanh, fused."""
    t1 = jnp.dot(l_ref[...], rt_ref[...],
                 preferred_element_type=jnp.float32)          # (N*h, Wout)
    r = r_ref[...]                                            # (Hout, h)
    for n in range(n_batch):                                  # tiny static loop
        o_ref[n] = jnp.tanh(
            jnp.dot(r, t1[n * h:(n + 1) * h, :],
                    preferred_element_type=jnp.float32))


def upsample_tanh(logits, h_out, w_out):
    """logits: (N, h, w) f32 -> tanh(bilinear-resize to (N, h_out, w_out))."""
    N, h, w = logits.shape
    # Per-axis linear-resize matrices (exactly reproduce jax.image.resize).
    r_h = jax.image.resize(jnp.eye(h, dtype=jnp.float32), (h_out, h), "bilinear")
    r_w = jax.image.resize(jnp.eye(w, dtype=jnp.float32), (w_out, w), "bilinear")
    l2 = logits.reshape(N * h, w)
    return pl.pallas_call(
        functools.partial(_upsample_tanh_kernel, n_batch=N, h=h),
        out_shape=jax.ShapeDtypeStruct((N, h_out, w_out), jnp.float32),
        grid=(1,),
        in_specs=[
            pl.BlockSpec((N * h, w), lambda i: (0, 0)),
            pl.BlockSpec((w, w_out), lambda i: (0, 0)),
            pl.BlockSpec((h_out, h), lambda i: (0, 0)),
        ],
        out_specs=pl.BlockSpec((N, h_out, w_out), lambda i: (0, 0, 0)),
    )(l2, r_w.T, r_h)


# ----------------------------------------------------------------------------
# im2col (bf16, XLA glue) + packed-weight conv wrapper
# ----------------------------------------------------------------------------
def im2col(x, kh, kw, stride=1, padding=0, dilation=1):
    """x: (N,H,W,Cin) -> (N*Hout*Wout, kh*kw*Cin) in x.dtype (bf16)."""
    N, H, W, Cin = x.shape
    xp = jnp.pad(x, ((0, 0), (padding, padding), (padding, padding), (0, 0))) \
        if padding else x
    Hout = (H + 2 * padding - dilation * (kh - 1) - 1) // stride + 1
    Wout = (W + 2 * padding - dilation * (kw - 1) - 1) // stride + 1
    patches = []
    for i in range(kh):
        for j in range(kw):
            hi, wi = i * dilation, j * dilation
            patches.append(
                xp[:, hi:hi + (Hout - 1) * stride + 1:stride,
                      wi:wi + (Wout - 1) * stride + 1:stride, :])
    cols = jnp.concatenate(patches, axis=-1) if len(patches) > 1 else patches[0]
    return cols.reshape(N * Hout * Wout, kh * kw * Cin), Hout, Wout


def conv_packed(x, packed, *, cout, kh, kw, stride=1, padding=0, dilation=1,
                act="relu"):
    wp, bp = packed
    N = x.shape[0]
    a, Hout, Wout = im2col(x, kh, kw, stride, padding, dilation)
    y = matmul_bias_act(a, wp, bp, act=act)
    return y[:, :cout].reshape(N, Hout, Wout, cout)


# ----------------------------------------------------------------------------
# Scaled-down DeepLabV3+ forward + Tanh  (== SDFModel.forward)
# ----------------------------------------------------------------------------
def sdf_model_forward(params, x_nchw):
    x = jnp.transpose(x_nchw, (0, 2, 3, 1)).astype(jnp.bfloat16)  # NCHW->NHWC

    # --- Encoder (resnet-style stem + 3 downsampling stages) ---
    f0 = conv_packed(x, params["stem"], cout=8, kh=3, kw=3, padding=1)        # /1
    f1 = conv_packed(f0, params["enc1"], cout=16, kh=3, kw=3, stride=2,
                     padding=1)                                               # /2
    low = conv_packed(f1, params["enc2"], cout=24, kh=3, kw=3, stride=2,
                      padding=1)                                              # /4
    high = conv_packed(low, params["enc3"], cout=32, kh=3, kw=3, stride=2,
                       padding=1)                                             # /8

    # --- ASPP: all four branches in ONE block-diagonal Pallas matmul ---
    N, hh, wh_, c_high = high.shape
    M = N * hh * wh_
    a_1x1 = high.reshape(M, c_high)                       # 1x1 / pool branches
    cols2, _, _ = im2col(high, 3, 3, 1, 2, 2)             # dilation 2
    cols3, _, _ = im2col(high, 3, 3, 1, 3, 3)             # dilation 3
    a_aspp = jnp.concatenate([a_1x1, cols2, cols3], axis=-1)
    wm, bm = params["aspp_merged"]
    y = matmul_bias_act(a_aspp, wm, bm, act="none", out_dtype=jnp.float32)
    a0 = jnp.maximum(y[:, 0:16], 0.0).astype(jnp.bfloat16).reshape(N, hh, wh_, 16)
    a1 = jnp.maximum(y[:, 32:48], 0.0).astype(jnp.bfloat16).reshape(N, hh, wh_, 16)
    a2 = jnp.maximum(y[:, 48:64], 0.0).astype(jnp.bfloat16).reshape(N, hh, wh_, 16)
    # image-pool branch: conv1x1(mean(x)) == mean(conv1x1(x)); ReLU after pool.
    gp = jnp.maximum(jnp.mean(y[:, 16:32].reshape(N, hh * wh_, 16), axis=1), 0.0)
    gp = jnp.broadcast_to(gp[:, None, None, :],
                          (N, hh, wh_, 16)).astype(jnp.bfloat16)
    aspp = jnp.concatenate([a0, a1, a2, gp], axis=-1)
    aspp = conv_packed(aspp, params["aspp_proj"], cout=16, kh=1, kw=1)

    # --- Decoder ---
    up = jax.image.resize(
        aspp, (N, low.shape[1], low.shape[2], aspp.shape[3]), method="bilinear")
    lowp = conv_packed(low, params["dec_low"], cout=8, kh=1, kw=1)
    dec = jnp.concatenate([up.astype(jnp.bfloat16), lowp], axis=-1)

    # --- Fused dec_conv (3x3, ReLU) + head (1x1, 16->1) kernel ---
    a_dec, Hd, Wd = im2col(dec, 3, 3, 1, 1, 1)
    wd, bd, wh, bh = params["dec_head"]
    logits = dec_head_call(a_dec, wd, bd, wh, bh)           # (M, 128) f32
    logits = logits[:, 0].reshape(N, Hd, Wd)

    # --- Fused bilinear 4x upsample + nn.Tanh() (single Pallas kernel) ---
    out = upsample_tanh(logits, x_nchw.shape[2], x_nchw.shape[3])  # (N, H, W)
    return out[:, None, :, :]                                      # -> NCHW


# ----------------------------------------------------------------------------
# Deterministic parameter init + one-time packing (lane-dense bf16 weights)
# ----------------------------------------------------------------------------
def init_params(key):
    shapes = {
        "stem":      (3, 3, 1, 8),
        "enc1":      (3, 3, 8, 16),
        "enc2":      (3, 3, 16, 24),
        "enc3":      (3, 3, 24, 32),
        "aspp0":     (1, 1, 32, 16),
        "aspp1":     (3, 3, 32, 16),
        "aspp2":     (3, 3, 32, 16),
        "aspp_pool": (1, 1, 32, 16),
        "aspp_proj": (1, 1, 64, 16),
        "dec_low":   (1, 1, 24, 8),
        "dec_conv":  (3, 3, 24, 16),
        "head":      (1, 1, 16, 1),
    }
    raw = {}
    names = sorted(shapes)
    keys = jax.random.split(key, len(names))
    for k, name in zip(keys, names):
        kh, kw, cin, cout = shapes[name]
        kw_key, kb_key = jax.random.split(k)
        scale = 1.0 / jnp.sqrt(kh * kw * cin)
        w = jax.random.normal(kw_key, (kh, kw, cin, cout), jnp.float32) * scale
        b = jax.random.normal(kb_key, (cout,), jnp.float32) * 0.01
        raw[name] = (w, b)

    def pack(w, b):
        kh, kw, cin, cout = w.shape
        K = kh * kw * cin
        wm = jnp.zeros((K, NPAD), jnp.float32).at[:, :cout].set(
            w.reshape(K, cout)).astype(jnp.bfloat16)
        bm = jnp.zeros((1, NPAD), jnp.float32).at[0, :cout].set(b)
        return wm, bm

    params = {name: pack(*raw[name])
              for name in ("stem", "enc1", "enc2", "enc3", "aspp_proj",
                           "dec_low")}

    # Merged ASPP weight: block-diagonal over [1x1 | 3x3 d=2 | 3x3 d=3] columns,
    # output channels [aspp0 | aspp_pool | aspp1 | aspp2] (16 each).
    w0, b0 = raw["aspp0"]; wp_, bp_ = raw["aspp_pool"]
    w1, b1 = raw["aspp1"]; w2, b2 = raw["aspp2"]
    wm = jnp.zeros((608, NPAD), jnp.float32)
    wm = wm.at[0:32, 0:16].set(w0.reshape(32, 16))
    wm = wm.at[0:32, 16:32].set(wp_.reshape(32, 16))
    wm = wm.at[32:320, 32:48].set(w1.reshape(288, 16))
    wm = wm.at[320:608, 48:64].set(w2.reshape(288, 16))
    bm = jnp.zeros((1, NPAD), jnp.float32)
    bm = bm.at[0, 0:16].set(b0).at[0, 16:32].set(bp_)
    bm = bm.at[0, 32:48].set(b1).at[0, 48:64].set(b2)
    params["aspp_merged"] = (wm.astype(jnp.bfloat16), bm)

    # Fused dec_conv + head weights.
    wd, bd = pack(*raw["dec_conv"])
    wh_raw, bh_raw = raw["head"]
    wh = jnp.zeros((NPAD, NPAD), jnp.float32).at[:16, 0].set(
        wh_raw.reshape(16)).astype(jnp.bfloat16)
    bh = jnp.zeros((1, NPAD), jnp.float32).at[0, 0].set(bh_raw[0])
    params["dec_head"] = (wd, bd, wh, bh)
    return params


if __name__ == "__main__":
    key = jax.random.PRNGKey(0)
    pkey, xkey = jax.random.split(key)
    params = init_params(pkey)
    x = jax.random.normal(xkey, (2, 1, 32, 32), jnp.float32)   # (N, C=1, H, W)

    fwd = jax.jit(sdf_model_forward)
    y = fwd(params, x)
    y = jax.block_until_ready(y)

    assert y.shape == (2, 1, 32, 32), y.shape
    assert bool(jnp.all(jnp.isfinite(y)))
    assert bool(jnp.all(jnp.abs(y) <= 1.0))    # tanh range
    print("KERNEL_OK")
</pallas_src>

<mosaic_0001>
module attributes {stable_mosaic.version = 11 : i64} {
  func.func @_mm_bias_act_kernel(%arg0: i32, %arg1: memref<1024x9xbf16, #tpu.memory_space<vmem>>, %arg2: memref<9x128xbf16, #tpu.memory_space<vmem>>, %arg3: memref<1x128xf32, #tpu.memory_space<vmem>>, %arg4: memref<1024x128xbf16, #tpu.memory_space<vmem>>) attributes {dimension_semantics = [#tpu.dimension_semantics<parallel>], iteration_bounds = array<i64: 2>, scalar_prefetch = 0 : i64, scratch_operands = 0 : i64, tpu.core_type = #tpu.core_type<tc>, window_params = [{transform_indices = @transform_0, window_bounds = array<i64: 1024, 9>}, {pipeline_mode = #tpu.pipeline_mode<synchronous>, transform_indices = @transform_1, window_bounds = array<i64: 9, 128>}, {pipeline_mode = #tpu.pipeline_mode<synchronous>, transform_indices = @transform_2, window_bounds = array<i64: 1, 128>}, {transform_indices = @transform_3, window_bounds = array<i64: 1024, 128>}]} {
    %c0 = arith.constant 0 : index
    %c0_0 = arith.constant 0 : index
    %0 = vector.load %arg1[%c0, %c0_0] : memref<1024x9xbf16, #tpu.memory_space<vmem>>, vector<1024x9xbf16>
    %c0_1 = arith.constant 0 : index
    %c0_2 = arith.constant 0 : index
    %1 = vector.load %arg2[%c0_1, %c0_2] : memref<9x128xbf16, #tpu.memory_space<vmem>>, vector<9x128xbf16>
    %cst = arith.constant dense<0.000000e+00> : vector<1024x128xf32>
    %2 = tpu.matmul %0, %1, %cst {dimension_numbers = #tpu.dot_dimension_numbers<[1], [0], [0], [1], [0, 0, 1, 1], [], []>} : vector<1024x9xbf16>, vector<9x128xbf16>, vector<1024x128xf32> -> vector<1024x128xf32>
    %c0_3 = arith.constant 0 : index
    %c0_4 = arith.constant 0 : index
    %3 = vector.load %arg3[%c0_3, %c0_4] : memref<1x128xf32, #tpu.memory_space<vmem>>, vector<1x128xf32>
    %4 = vector.broadcast %3 : vector<1x128xf32> to vector<1024x128xf32>
    %5 = arith.addf %2, %4 : vector<1024x128xf32>
    %cst_5 = arith.constant 0.000000e+00 : f32
    %6 = vector.broadcast %cst_5 : f32 to vector<1024x128xf32>
    %7 = arith.maximumf %5, %6 : vector<1024x128xf32>
    %8 = arith.truncf %7 : vector<1024x128xf32> to vector<1024x128xbf16>
    %c0_6 = arith.constant 0 : index
    %c0_7 = arith.constant 0 : index
    %9 = vector.load %arg4[%c0_6, %c0_7] : memref<1024x128xbf16, #tpu.memory_space<vmem>>, vector<1024x128xbf16>
    tpu.vector_store %arg4[%c0_6, %c0_7], %8 {strides = array<i32>} : memref<1024x128xbf16, #tpu.memory_space<vmem>>, vector<1024x128xbf16>,
    return
  }
  func.func @transform_0(%arg0: i32) -> (i32, i32) {
    %c0_i32 = arith.constant 0 : i32
    %c0_i32_0 = arith.constant 0 : i32
    return %arg0, %c0_i32 : i32, i32
  }
  func.func @transform_1(%arg0: i32) -> (i32, i32) {
    %c0_i32 = arith.constant 0 : i32
    %c0_i32_0 = arith.constant 0 : i32
    %c0_i32_1 = arith.constant 0 : i32
    return %c0_i32, %c0_i32_0 : i32, i32
  }
  func.func @transform_2(%arg0: i32) -> (i32, i32) {
    %c0_i32 = arith.constant 0 : i32
    %c0_i32_0 = arith.constant 0 : i32
    %c0_i32_1 = arith.constant 0 : i32
    return %c0_i32, %c0_i32_0 : i32, i32
  }
  func.func @transform_3(%arg0: i32) -> (i32, i32) {
    %c0_i32 = arith.constant 0 : i32
    %c0_i32_0 = arith.constant 0 : i32
    return %arg0, %c0_i32 : i32, i32
  }
}

module attributes {stable_mosaic.version = 11 : i64} {
  func.func @_mm_bias_act_kernel(%arg0: i32, %arg1: memref<256x72xbf16, #tpu.memory_space<vmem>>, %arg2: memref<72x128xbf16, #tpu.memory_space<vmem>>, %arg3: memref<1x128xf32, #tpu.memory_space<vmem>>, %arg4: memref<256x128xbf16, #tpu.memory_space<vmem>>) attributes {dimension_semantics = [#tpu.dimension_semantics<parallel>], iteration_bounds = array<i64: 2>, scalar_prefetch = 0 : i64, scratch_operands = 0 : i64, tpu.core_type = #tpu.core_type<tc>, window_params = [{transform_indices = @transform_0, window_bounds = array<i64: 256, 72>}, {pipeline_mode = #tpu.pipeline_mode<synchronous>, transform_indices = @transform_1, window_bounds = array<i64: 72, 128>}, {pipeline_mode = #tpu.pipeline_mode<synchronous>, transform_indices = @transform_2, window_bounds = array<i64: 1, 128>}, {transform_indices = @transform_3, window_bounds = array<i64: 256, 128>}]} {
    %c0 = arith.constant 0 : index
    %c0_0 = arith.constant 0 : index
    %0 = vector.load %arg1[%c0, %c0_0] : memref<256x72xbf16, #tpu.memory_space<vmem>>, vector<256x72xbf16>
    %c0_1 = arith.constant 0 : index
    %c0_2 = arith.constant 0 : index
    %1 = vector.load %arg2[%c0_1, %c0_2] : memref<72x128xbf16, #tpu.memory_space<vmem>>, vector<72x128xbf16>
    %cst = arith.constant dense<0.000000e+00> : vector<256x128xf32>
    %2 = tpu.matmul %0, %1, %cst {dimension_numbers = #tpu.dot_dimension_numbers<[1], [0], [0], [1], [0, 0, 1, 1], [], []>} : vector<256x72xbf16>, vector<72x128xbf16>, vector<256x128xf32> -> vector<256x128xf32>
    %c0_3 = arith.constant 0 : index
    %c0_4 = arith.constant 0 : index
    %3 = vector.load %arg3[%c0_3, %c0_4] : memref<1x128xf32, #tpu.memory_space<vmem>>, vector<1x128xf32>
    %4 = vector.broadcast %3 : vector<1x128xf32> to vector<256x128xf32>
    %5 = arith.addf %2, %4 : vector<256x128xf32>
    %cst_5 = arith.constant 0.000000e+00 : f32
    %6 = vector.broadcast %cst_5 : f32 to vector<256x128xf32>
    %7 = arith.maximumf %5, %6 : vector<256x128xf32>
    %8 = arith.truncf %7 : vector<256x128xf32> to vector<256x128xbf16>
    %c0_6 = arith.constant 0 : index
    %c0_7 = arith.constant 0 : index
    %9 = vector.load %arg4[%c0_6, %c0_7] : memref<256x128xbf16, #tpu.memory_space<vmem>>, vector<256x128xbf16>
    tpu.vector_store %arg4[%c0_6, %c0_7], %8 {strides = array<i32>} : memref<256x128xbf16, #tpu.memory_space<vmem>>, vector<256x128xbf16>,
    return
  }
  func.func @transform_0(%arg0: i32) -> (i32, i32) {
    %c0_i32 = arith.constant 0 : i32
    %c0_i32_0 = arith.constant 0 : i32
    return %arg0, %c0_i32 : i32, i32
  }
  func.func @transform_1(%arg0: i32) -> (i32, i32) {
    %c0_i32 = arith.constant 0 : i32
    %c0_i32_0 = arith.constant 0 : i32
    %c0_i32_1 = arith.constant 0 : i32
    return %c0_i32, %c0_i32_0 : i32, i32
  }
  func.func @transform_2(%arg0: i32) -> (i32, i32) {
    %c0_i32 = arith.constant 0 : i32
    %c0_i32_0 = arith.constant 0 : i32
    %c0_i32_1 = arith.constant 0 : i32
    return %c0_i32, %c0_i32_0 : i32, i32
  }
  func.func @transform_3(%arg0: i32) -> (i32, i32) {
    %c0_i32 = arith.constant 0 : i32
    %c0_i32_0 = arith.constant 0 : i32
    return %arg0, %c0_i32 : i32, i32
  }
}

module attributes {stable_mosaic.version = 11 : i64} {
  func.func @_mm_bias_act_kernel(%arg0: i32, %arg1: memref<128x144xbf16, #tpu.memory_space<vmem>>, %arg2: memref<144x128xbf16, #tpu.memory_space<vmem>>, %arg3: memref<1x128xf32, #tpu.memory_space<vmem>>, %arg4: memref<128x128xbf16, #tpu.memory_space<vmem>>) attributes {dimension_semantics = [#tpu.dimension_semantics<parallel>], iteration_bounds = array<i64: 1>, scalar_prefetch = 0 : i64, scratch_operands = 0 : i64, tpu.core_type = #tpu.core_type<tc>, window_params = [{transform_indices = @transform_0, window_bounds = array<i64: 128, 144>}, {pipeline_mode = #tpu.pipeline_mode<synchronous>, transform_indices = @transform_1, window_bounds = array<i64: 144, 128>}, {pipeline_mode = #tpu.pipeline_mode<synchronous>, transform_indices = @transform_2, window_bounds = array<i64: 1, 128>}, {transform_indices = @transform_3, window_bounds = array<i64: 128, 128>}]} {
    %c0 = arith.constant 0 : index
    %c0_0 = arith.constant 0 : index
    %0 = vector.load %arg1[%c0, %c0_0] : memref<128x144xbf16, #tpu.memory_space<vmem>>, vector<128x144xbf16>
    %c0_1 = arith.constant 0 : index
    %c0_2 = arith.constant 0 : index
    %1 = vector.load %arg2[%c0_1, %c0_2] : memref<144x128xbf16, #tpu.memory_space<vmem>>, vector<144x128xbf16>
    %cst = arith.constant dense<0.000000e+00> : vector<128x128xf32>
    %2 = tpu.matmul %0, %1, %cst {dimension_numbers = #tpu.dot_dimension_numbers<[1], [0], [0], [1], [0, 0, 1, 1], [], []>} : vector<128x144xbf16>, vector<144x128xbf16>, vector<128x128xf32> -> vector<128x128xf32>
    %c0_3 = arith.constant 0 : index
    %c0_4 = arith.constant 0 : index
    %3 = vector.load %arg3[%c0_3, %c0_4] : memref<1x128xf32, #tpu.memory_space<vmem>>, vector<1x128xf32>
    %4 = vector.broadcast %3 : vector<1x128xf32> to vector<128x128xf32>
    %5 = arith.addf %2, %4 : vector<128x128xf32>
    %cst_5 = arith.constant 0.000000e+00 : f32
    %6 = vector.broadcast %cst_5 : f32 to vector<128x128xf32>
    %7 = arith.maximumf %5, %6 : vector<128x128xf32>
    %8 = arith.truncf %7 : vector<128x128xf32> to vector<128x128xbf16>
    %c0_6 = arith.constant 0 : index
    %c0_7 = arith.constant 0 : index
    %9 = vector.load %arg4[%c0_6, %c0_7] : memref<128x128xbf16, #tpu.memory_space<vmem>>, vector<128x128xbf16>
    tpu.vector_store %arg4[%c0_6, %c0_7], %8 {strides = array<i32>} : memref<128x128xbf16, #tpu.memory_space<vmem>>, vector<128x128xbf16>,
    return
  }
  func.func @transform_0(%arg0: i32) -> (i32, i32) {
    %c0_i32 = arith.constant 0 : i32
    %c0_i32_0 = arith.constant 0 : i32
    return %arg0, %c0_i32 : i32, i32
  }
  func.func @transform_1(%arg0: i32) -> (i32, i32) {
    %c0_i32 = arith.constant 0 : i32
    %c0_i32_0 = arith.constant 0 : i32
    %c0_i32_1 = arith.constant 0 : i32
    return %c0_i32, %c0_i32_0 : i32, i32
  }
  func.func @transform_2(%arg0: i32) -> (i32, i32) {
    %c0_i32 = arith.constant 0 : i32
    %c0_i32_0 = arith.constant 0 : i32
    %c0_i32_1 = arith.constant 0 : i32
    return %c0_i32, %c0_i32_0 : i32, i32
  }
  func.func @transform_3(%arg0: i32) -> (i32, i32) {
    %c0_i32 = arith.constant 0 : i32
    %c0_i32_0 = arith.constant 0 : i32
    return %arg0, %c0_i32 : i32, i32
  }
}

module attributes {stable_mosaic.version = 11 : i64} {
  func.func @_mm_bias_act_kernel(%arg0: i32, %arg1: memref<32x216xbf16, #tpu.memory_space<vmem>>, %arg2: memref<216x128xbf16, #tpu.memory_space<vmem>>, %arg3: memref<1x128xf32, #tpu.memory_space<vmem>>, %arg4: memref<32x128xbf16, #tpu.memory_space<vmem>>) attributes {dimension_semantics = [#tpu.dimension_semantics<parallel>], iteration_bounds = array<i64: 1>, scalar_prefetch = 0 : i64, scratch_operands = 0 : i64, tpu.core_type = #tpu.core_type<tc>, window_params = [{transform_indices = @transform_0, window_bounds = array<i64: 32, 216>}, {pipeline_mode = #tpu.pipeline_mode<synchronous>, transform_indices = @transform_1, window_bounds = array<i64: 216, 128>}, {pipeline_mode = #tpu.pipeline_mode<synchronous>, transform_indices = @transform_2, window_bounds = array<i64: 1, 128>}, {transform_indices = @transform_3, window_bounds = array<i64: 32, 128>}]} {
    %c0 = arith.constant 0 : index
    %c0_0 = arith.constant 0 : index
    %0 = vector.load %arg1[%c0, %c0_0] : memref<32x216xbf16, #tpu.memory_space<vmem>>, vector<32x216xbf16>
    %c0_1 = arith.constant 0 : index
    %c0_2 = arith.constant 0 : index
    %1 = vector.load %arg2[%c0_1, %c0_2] : memref<216x128xbf16, #tpu.memory_space<vmem>>, vector<216x128xbf16>
    %cst = arith.constant dense<0.000000e+00> : vector<32x128xf32>
    %2 = tpu.matmul %0, %1, %cst {dimension_numbers = #tpu.dot_dimension_numbers<[1], [0], [0], [1], [0, 0, 1, 1], [], []>} : vector<32x216xbf16>, vector<216x128xbf16>, vector<32x128xf32> -> vector<32x128xf32>
    %c0_3 = arith.constant 0 : index
    %c0_4 = arith.constant 0 : index
    %3 = vector.load %arg3[%c0_3, %c0_4] : memref<1x128xf32, #tpu.memory_space<vmem>>, vector<1x128xf32>
    %4 = vector.broadcast %3 : vector<1x128xf32> to vector<32x128xf32>
    %5 = arith.addf %2, %4 : vector<32x128xf32>
    %cst_5 = arith.constant 0.000000e+00 : f32
    %6 = vector.broadcast %cst_5 : f32 to vector<32x128xf32>
    %7 = arith.maximumf %5, %6 : vector<32x128xf32>
    %8 = arith.truncf %7 : vector<32x128xf32> to vector<32x128xbf16>
    %c0_6 = arith.constant 0 : index
    %c0_7 = arith.constant 0 : index
    %9 = vector.load %arg4[%c0_6, %c0_7] : memref<32x128xbf16, #tpu.memory_space<vmem>>, vector<32x128xbf16>
    tpu.vector_store %arg4[%c0_6, %c0_7], %8 {strides = array<i32>} : memref<32x128xbf16, #tpu.memory_space<vmem>>, vector<32x128xbf16>,
    return
  }
  func.func @transform_0(%arg0: i32) -> (i32, i32) {
    %c0_i32 = arith.constant 0 : i32
    %c0_i32_0 = arith.constant 0 : i32
    return %arg0, %c0_i32 : i32, i32
  }
  func.func @transform_1(%arg0: i32) -> (i32, i32) {
    %c0_i32 = arith.constant 0 : i32
    %c0_i32_0 = arith.constant 0 : i32
    %c0_i32_1 = arith.constant 0 : i32
    return %c0_i32, %c0_i32_0 : i32, i32
  }
  func.func @transform_2(%arg0: i32) -> (i32, i32) {
    %c0_i32 = arith.constant 0 : i32
    %c0_i32_0 = arith.constant 0 : i32
    %c0_i32_1 = arith.constant 0 : i32
    return %c0_i32, %c0_i32_0 : i32, i32
  }
  func.func @transform_3(%arg0: i32) -> (i32, i32) {
    %c0_i32 = arith.constant 0 : i32
    %c0_i32_0 = arith.constant 0 : i32
    return %arg0, %c0_i32 : i32, i32
  }
}

module attributes {stable_mosaic.version = 11 : i64} {
  func.func @_mm_bias_act_kernel(%arg0: i32, %arg1: memref<32x608xbf16, #tpu.memory_space<vmem>>, %arg2: memref<608x128xbf16, #tpu.memory_space<vmem>>, %arg3: memref<1x128xf32, #tpu.memory_space<vmem>>, %arg4: memref<32x128xf32, #tpu.memory_space<vmem>>) attributes {dimension_semantics = [#tpu.dimension_semantics<parallel>], iteration_bounds = array<i64: 1>, scalar_prefetch = 0 : i64, scratch_operands = 0 : i64, tpu.core_type = #tpu.core_type<tc>, window_params = [{transform_indices = @transform_0, window_bounds = array<i64: 32, 608>}, {pipeline_mode = #tpu.pipeline_mode<synchronous>, transform_indices = @transform_1, window_bounds = array<i64: 608, 128>}, {pipeline_mode = #tpu.pipeline_mode<synchronous>, transform_indices = @transform_2, window_bounds = array<i64: 1, 128>}, {transform_indices = @transform_3, window_bounds = array<i64: 32, 128>}]} {
    %c0 = arith.constant 0 : index
    %c0_0 = arith.constant 0 : index
    %0 = vector.load %arg1[%c0, %c0_0] : memref<32x608xbf16, #tpu.memory_space<vmem>>, vector<32x608xbf16>
    %c0_1 = arith.constant 0 : index
    %c0_2 = arith.constant 0 : index
    %1 = vector.load %arg2[%c0_1, %c0_2] : memref<608x128xbf16, #tpu.memory_space<vmem>>, vector<608x128xbf16>
    %cst = arith.constant dense<0.000000e+00> : vector<32x128xf32>
    %2 = tpu.matmul %0, %1, %cst {dimension_numbers = #tpu.dot_dimension_numbers<[1], [0], [0], [1], [0, 0, 1, 1], [], []>} : vector<32x608xbf16>, vector<608x128xbf16>, vector<32x128xf32> -> vector<32x128xf32>
    %c0_3 = arith.constant 0 : index
    %c0_4 = arith.constant 0 : index
    %3 = vector.load %arg3[%c0_3, %c0_4] : memref<1x128xf32, #tpu.memory_space<vmem>>, vector<1x128xf32>
    %4 = vector.broadcast %3 : vector<1x128xf32> to vector<32x128xf32>
    %5 = arith.addf %2, %4 : vector<32x128xf32>
    %c0_5 = arith.constant 0 : index
    %c0_6 = arith.constant 0 : index
    %6 = vector.load %arg4[%c0_5, %c0_6] : memref<32x128xf32, #tpu.memory_space<vmem>>, vector<32x128xf32>
    tpu.vector_store %arg4[%c0_5, %c0_6], %5 {strides = array<i32>} : memref<32x128xf32, #tpu.memory_space<vmem>>, vector<32x128xf32>,
    return
  }
  func.func @transform_0(%arg0: i32) -> (i32, i32) {
    %c0_i32 = arith.constant 0 : i32
    %c0_i32_0 = arith.constant 0 : i32
    return %arg0, %c0_i32 : i32, i32
  }
  func.func @transform_1(%arg0: i32) -> (i32, i32) {
    %c0_i32 = arith.constant 0 : i32
    %c0_i32_0 = arith.constant 0 : i32
    %c0_i32_1 = arith.constant 0 : i32
    return %c0_i32, %c0_i32_0 : i32, i32
  }
  func.func @transform_2(%arg0: i32) -> (i32, i32) {
    %c0_i32 = arith.constant 0 : i32
    %c0_i32_0 = arith.constant 0 : i32
    %c0_i32_1 = arith.constant 0 : i32
    return %c0_i32, %c0_i32_0 : i32, i32
  }
  func.func @transform_3(%arg0: i32) -> (i32, i32) {
    %c0_i32 = arith.constant 0 : i32
    %c0_i32_0 = arith.constant 0 : i32
    return %arg0, %c0_i32 : i32, i32
  }
}

module attributes {stable_mosaic.version = 11 : i64} {
  func.func @_mm_bias_act_kernel(%arg0: i32, %arg1: memref<32x64xbf16, #tpu.memory_space<vmem>>, %arg2: memref<64x128xbf16, #tpu.memory_space<vmem>>, %arg3: memref<1x128xf32, #tpu.memory_space<vmem>>, %arg4: memref<32x128xbf16, #tpu.memory_space<vmem>>) attributes {dimension_semantics = [#tpu.dimension_semantics<parallel>], iteration_bounds = array<i64: 1>, scalar_prefetch = 0 : i64, scratch_operands = 0 : i64, tpu.core_type = #tpu.core_type<tc>, window_params = [{transform_indices = @transform_0, window_bounds = array<i64: 32, 64>}, {pipeline_mode = #tpu.pipeline_mode<synchronous>, transform_indices = @transform_1, window_bounds = array<i64: 64, 128>}, {pipeline_mode = #tpu.pipeline_mode<synchronous>, transform_indices = @transform_2, window_bounds = array<i64: 1, 128>}, {transform_indices = @transform_3, window_bounds = array<i64: 32, 128>}]} {
    %c0 = arith.constant 0 : index
    %c0_0 = arith.constant 0 : index
    %0 = vector.load %arg1[%c0, %c0_0] : memref<32x64xbf16, #tpu.memory_space<vmem>>, vector<32x64xbf16>
    %c0_1 = arith.constant 0 : index
    %c0_2 = arith.constant 0 : index
    %1 = vector.load %arg2[%c0_1, %c0_2] : memref<64x128xbf16, #tpu.memory_space<vmem>>, vector<64x128xbf16>
    %cst = arith.constant dense<0.000000e+00> : vector<32x128xf32>
    %2 = tpu.matmul %0, %1, %cst {dimension_numbers = #tpu.dot_dimension_numbers<[1], [0], [0], [1], [0, 0, 1, 1], [], []>} : vector<32x64xbf16>, vector<64x128xbf16>, vector<32x128xf32> -> vector<32x128xf32>
    %c0_3 = arith.constant 0 : index
    %c0_4 = arith.constant 0 : index
    %3 = vector.load %arg3[%c0_3, %c0_4] : memref<1x128xf32, #tpu.memory_space<vmem>>, vector<1x128xf32>
    %4 = vector.broadcast %3 : vector<1x128xf32> to vector<32x128xf32>
    %5 = arith.addf %2, %4 : vector<32x128xf32>
    %cst_5 = arith.constant 0.000000e+00 : f32
    %6 = vector.broadcast %cst_5 : f32 to vector<32x128xf32>
    %7 = arith.maximumf %5, %6 : vector<32x128xf32>
    %8 = arith.truncf %7 : vector<32x128xf32> to vector<32x128xbf16>
    %c0_6 = arith.constant 0 : index
    %c0_7 = arith.constant 0 : index
    %9 = vector.load %arg4[%c0_6, %c0_7] : memref<32x128xbf16, #tpu.memory_space<vmem>>, vector<32x128xbf16>
    tpu.vector_store %arg4[%c0_6, %c0_7], %8 {strides = array<i32>} : memref<32x128xbf16, #tpu.memory_space<vmem>>, vector<32x128xbf16>,
    return
  }
  func.func @transform_0(%arg0: i32) -> (i32, i32) {
    %c0_i32 = arith.constant 0 : i32
    %c0_i32_0 = arith.constant 0 : i32
    return %arg0, %c0_i32 : i32, i32
  }
  func.func @transform_1(%arg0: i32) -> (i32, i32) {
    %c0_i32 = arith.constant 0 : i32
    %c0_i32_0 = arith.constant 0 : i32
    %c0_i32_1 = arith.constant 0 : i32
    return %c0_i32, %c0_i32_0 : i32, i32
  }
  func.func @transform_2(%arg0: i32) -> (i32, i32) {
    %c0_i32 = arith.constant 0 : i32
    %c0_i32_0 = arith.constant 0 : i32
    %c0_i32_1 = arith.constant 0 : i32
    return %c0_i32, %c0_i32_0 : i32, i32
  }
  func.func @transform_3(%arg0: i32) -> (i32, i32) {
    %c0_i32 = arith.constant 0 : i32
    %c0_i32_0 = arith.constant 0 : i32
    return %arg0, %c0_i32 : i32, i32
  }
}

module attributes {stable_mosaic.version = 11 : i64} {
  func.func @_mm_bias_act_kernel(%arg0: i32, %arg1: memref<128x24xbf16, #tpu.memory_space<vmem>>, %arg2: memref<24x128xbf16, #tpu.memory_space<vmem>>, %arg3: memref<1x128xf32, #tpu.memory_space<vmem>>, %arg4: memref<128x128xbf16, #tpu.memory_space<vmem>>) attributes {dimension_semantics = [#tpu.dimension_semantics<parallel>], iteration_bounds = array<i64: 1>, scalar_prefetch = 0 : i64, scratch_operands = 0 : i64, tpu.core_type = #tpu.core_type<tc>, window_params = [{transform_indices = @transform_0, window_bounds = array<i64: 128, 24>}, {pipeline_mode = #tpu.pipeline_mode<synchronous>, transform_indices = @transform_1, window_bounds = array<i64: 24, 128>}, {pipeline_mode = #tpu.pipeline_mode<synchronous>, transform_indices = @transform_2, window_bounds = array<i64: 1, 128>}, {transform_indices = @transform_3, window_bounds = array<i64: 128, 128>}]} {
    %c0 = arith.constant 0 : index
    %c0_0 = arith.constant 0 : index
    %0 = vector.load %arg1[%c0, %c0_0] : memref<128x24xbf16, #tpu.memory_space<vmem>>, vector<128x24xbf16>
    %c0_1 = arith.constant 0 : index
    %c0_2 = arith.constant 0 : index
    %1 = vector.load %arg2[%c0_1, %c0_2] : memref<24x128xbf16, #tpu.memory_space<vmem>>, vector<24x128xbf16>
    %cst = arith.constant dense<0.000000e+00> : vector<128x128xf32>
    %2 = tpu.matmul %0, %1, %cst {dimension_numbers = #tpu.dot_dimension_numbers<[1], [0], [0], [1], [0, 0, 1, 1], [], []>} : vector<128x24xbf16>, vector<24x128xbf16>, vector<128x128xf32> -> vector<128x128xf32>
    %c0_3 = arith.constant 0 : index
    %c0_4 = arith.constant 0 : index
    %3 = vector.load %arg3[%c0_3, %c0_4] : memref<1x128xf32, #tpu.memory_space<vmem>>, vector<1x128xf32>
    %4 = vector.broadcast %3 : vector<1x128xf32> to vector<128x128xf32>
    %5 = arith.addf %2, %4 : vector<128x128xf32>
    %cst_5 = arith.constant 0.000000e+00 : f32
    %6 = vector.broadcast %cst_5 : f32 to vector<128x128xf32>
    %7 = arith.maximumf %5, %6 : vector<128x128xf32>
    %8 = arith.truncf %7 : vector<128x128xf32> to vector<128x128xbf16>
    %c0_6 = arith.constant 0 : index
    %c0_7 = arith.constant 0 : index
    %9 = vector.load %arg4[%c0_6, %c0_7] : memref<128x128xbf16, #tpu.memory_space<vmem>>, vector<128x128xbf16>
    tpu.vector_store %arg4[%c0_6, %c0_7], %8 {strides = array<i32>} : memref<128x128xbf16, #tpu.memory_space<vmem>>, vector<128x128xbf16>,
    return
  }
  func.func @transform_0(%arg0: i32) -> (i32, i32) {
    %c0_i32 = arith.constant 0 : i32
    %c0_i32_0 = arith.constant 0 : i32
    return %arg0, %c0_i32 : i32, i32
  }
  func.func @transform_1(%arg0: i32) -> (i32, i32) {
    %c0_i32 = arith.constant 0 : i32
    %c0_i32_0 = arith.constant 0 : i32
    %c0_i32_1 = arith.constant 0 : i32
    return %c0_i32, %c0_i32_0 : i32, i32
  }
  func.func @transform_2(%arg0: i32) -> (i32, i32) {
    %c0_i32 = arith.constant 0 : i32
    %c0_i32_0 = arith.constant 0 : i32
    %c0_i32_1 = arith.constant 0 : i32
    return %c0_i32, %c0_i32_0 : i32, i32
  }
  func.func @transform_3(%arg0: i32) -> (i32, i32) {
    %c0_i32 = arith.constant 0 : i32
    %c0_i32_0 = arith.constant 0 : i32
    return %arg0, %c0_i32 : i32, i32
  }
}

module attributes {stable_mosaic.version = 11 : i64} {
  func.func @_dec_head_kernel(%arg0: i32, %arg1: memref<128x216xbf16, #tpu.memory_space<vmem>>, %arg2: memref<216x128xbf16, #tpu.memory_space<vmem>>, %arg3: memref<1x128xf32, #tpu.memory_space<vmem>>, %arg4: memref<128x128xbf16, #tpu.memory_space<vmem>>, %arg5: memref<1x128xf32, #tpu.memory_space<vmem>>, %arg6: memref<128x128xf32, #tpu.memory_space<vmem>>) attributes {dimension_semantics = [#tpu.dimension_semantics<arbitrary>], iteration_bounds = array<i64: 1>, scalar_prefetch = 0 : i64, scratch_operands = 0 : i64, tpu.core_type = #tpu.core_type<tc>, window_params = [{pipeline_mode = #tpu.pipeline_mode<synchronous>, transform_indices = @transform_0, window_bounds = array<i64: 128, 216>}, {pipeline_mode = #tpu.pipeline_mode<synchronous>, transform_indices = @transform_1, window_bounds = array<i64: 216, 128>}, {pipeline_mode = #tpu.pipeline_mode<synchronous>, transform_indices = @transform_2, window_bounds = array<i64: 1, 128>}, {pipeline_mode = #tpu.pipeline_mode<synchronous>, transform_indices = @transform_3, window_bounds = array<i64: 128, 128>}, {pipeline_mode = #tpu.pipeline_mode<synchronous>, transform_indices = @transform_4, window_bounds = array<i64: 1, 128>}, {pipeline_mode = #tpu.pipeline_mode<synchronous>, transform_indices = @transform_5, window_bounds = array<i64: 128, 128>}]} {
    %c0 = arith.constant 0 : index
    %c0_0 = arith.constant 0 : index
    %0 = vector.load %arg1[%c0, %c0_0] : memref<128x216xbf16, #tpu.memory_space<vmem>>, vector<128x216xbf16>
    %c0_1 = arith.constant 0 : index
    %c0_2 = arith.constant 0 : index
    %1 = vector.load %arg2[%c0_1, %c0_2] : memref<216x128xbf16, #tpu.memory_space<vmem>>, vector<216x128xbf16>
    %cst = arith.constant dense<0.000000e+00> : vector<128x128xf32>
    %2 = tpu.matmul %0, %1, %cst {dimension_numbers = #tpu.dot_dimension_numbers<[1], [0], [0], [1], [0, 0, 1, 1], [], []>} : vector<128x216xbf16>, vector<216x128xbf16>, vector<128x128xf32> -> vector<128x128xf32>
    %c0_3 = arith.constant 0 : index
    %c0_4 = arith.constant 0 : index
    %3 = vector.load %arg3[%c0_3, %c0_4] : memref<1x128xf32, #tpu.memory_space<vmem>>, vector<1x128xf32>
    %4 = vector.broadcast %3 : vector<1x128xf32> to vector<128x128xf32>
    %5 = arith.addf %2, %4 : vector<128x128xf32>
    %cst_5 = arith.constant 0.000000e+00 : f32
    %6 = vector.broadcast %cst_5 : f32 to vector<128x128xf32>
    %7 = arith.maximumf %5, %6 : vector<128x128xf32>
    %8 = arith.truncf %7 : vector<128x128xf32> to vector<128x128xbf16>
    %c0_6 = arith.constant 0 : index
    %c0_7 = arith.constant 0 : index
    %9 = vector.load %arg4[%c0_6, %c0_7] : memref<128x128xbf16, #tpu.memory_space<vmem>>, vector<128x128xbf16>
    %cst_8 = arith.constant dense<0.000000e+00> : vector<128x128xf32>
    %10 = tpu.matmul %8, %9, %cst_8 {dimension_numbers = #tpu.dot_dimension_numbers<[1], [0], [0], [1], [0, 0, 1, 1], [], []>} : vector<128x128xbf16>, vector<128x128xbf16>, vector<128x128xf32> -> vector<128x128xf32>
    %c0_9 = arith.constant 0 : index
    %c0_10 = arith.constant 0 : index
    %11 = vector.load %arg5[%c0_9, %c0_10] : memref<1x128xf32, #tpu.memory_space<vmem>>, vector<1x128xf32>
    %12 = vector.broadcast %11 : vector<1x128xf32> to vector<128x128xf32>
    %13 = arith.addf %10, %12 : vector<128x128xf32>
    %c0_11 = arith.constant 0 : index
    %c0_12 = arith.constant 0 : index
    %14 = vector.load %arg6[%c0_11, %c0_12] : memref<128x128xf32, #tpu.memory_space<vmem>>, vector<128x128xf32>
    tpu.vector_store %arg6[%c0_11, %c0_12], %13 {strides = array<i32>} : memref<128x128xf32, #tpu.memory_space<vmem>>, vector<128x128xf32>,
    return
  }
  func.func @transform_0(%arg0: i32) -> (i32, i32) {
    %c0_i32 = arith.constant 0 : i32
    %c0_i32_0 = arith.constant 0 : i32
    %c0_i32_1 = arith.constant 0 : i32
    return %c0_i32, %c0_i32_0 : i32, i32
  }
  func.func @transform_1(%arg0: i32) -> (i32, i32) {
    %c0_i32 = arith.constant 0 : i32
    %c0_i32_0 = arith.constant 0 : i32
    %c0_i32_1 = arith.constant 0 : i32
    return %c0_i32, %c0_i32_0 : i32, i32
  }
  func.func @transform_2(%arg0: i32) -> (i32, i32) {
    %c0_i32 = arith.constant 0 : i32
    %c0_i32_0 = arith.constant 0 : i32
    %c0_i32_1 = arith.constant 0 : i32
    return %c0_i32, %c0_i32_0 : i32, i32
  }
  func.func @transform_3(%arg0: i32) -> (i32, i32) {
    %c0_i32 = arith.constant 0 : i32
    %c0_i32_0 = arith.constant 0 : i32
    %c0_i32_1 = arith.constant 0 : i32
    return %c0_i32, %c0_i32_0 : i32, i32
  }
  func.func @transform_4(%arg0: i32) -> (i32, i32) {
    %c0_i32 = arith.constant 0 : i32
    %c0_i32_0 = arith.constant 0 : i32
    %c0_i32_1 = arith.constant 0 : i32
    return %c0_i32, %c0_i32_0 : i32, i32
  }
  func.func @transform_5(%arg0: i32) -> (i32, i32) {
    %c0_i32 = arith.constant 0 : i32
    %c0_i32_0 = arith.constant 0 : i32
    %c0_i32_1 = arith.constant 0 : i32
    return %c0_i32, %c0_i32_0 : i32, i32
  }
}

module attributes {stable_mosaic.version = 11 : i64} {
  func.func @_upsample_tanh_kernel(%arg0: i32, %arg1: memref<16x8xf32, #tpu.memory_space<vmem>>, %arg2: memref<8x32xf32, #tpu.memory_space<vmem>>, %arg3: memref<32x8xf32, #tpu.memory_space<vmem>>, %arg4: memref<2x32x32xf32, #tpu.memory_space<vmem>>) attributes {dimension_semantics = [#tpu.dimension_semantics<arbitrary>], iteration_bounds = array<i64: 1>, scalar_prefetch = 0 : i64, scratch_operands = 0 : i64, tpu.core_type = #tpu.core_type<tc>, window_params = [{pipeline_mode = #tpu.pipeline_mode<synchronous>, transform_indices = @transform_0, window_bounds = array<i64: 16, 8>}, {pipeline_mode = #tpu.pipeline_mode<synchronous>, transform_indices = @transform_1, window_bounds = array<i64: 8, 32>}, {pipeline_mode = #tpu.pipeline_mode<synchronous>, transform_indices = @transform_2, window_bounds = array<i64: 32, 8>}, {pipeline_mode = #tpu.pipeline_mode<synchronous>, transform_indices = @transform_3, window_bounds = array<i64: 2, 32, 32>}]} {
    %c0 = arith.constant 0 : index
    %c0_0 = arith.constant 0 : index
    %0 = vector.load %arg1[%c0, %c0_0] : memref<16x8xf32, #tpu.memory_space<vmem>>, vector<16x8xf32>
    %c0_1 = arith.constant 0 : index
    %c0_2 = arith.constant 0 : index
    %1 = vector.load %arg2[%c0_1, %c0_2] : memref<8x32xf32, #tpu.memory_space<vmem>>, vector<8x32xf32>
    %cst = arith.constant dense<0.000000e+00> : vector<16x32xf32>
    %2 = tpu.matmul %0, %1, %cst {dimension_numbers = #tpu.dot_dimension_numbers<[1], [0], [0], [1], [0, 0, 1, 1], [], []>} : vector<16x8xf32>, vector<8x32xf32>, vector<16x32xf32> -> vector<16x32xf32>
    %c0_3 = arith.constant 0 : index
    %c0_4 = arith.constant 0 : index
    %3 = vector.load %arg3[%c0_3, %c0_4] : memref<32x8xf32, #tpu.memory_space<vmem>>, vector<32x8xf32>
    %4 = vector.extract_strided_slice %2 {offsets = [0, 0], sizes = [8, 32], strides = [1, 1]} : vector<16x32xf32> to vector<8x32xf32>
    %cst_5 = arith.constant dense<0.000000e+00> : vector<32x32xf32>
    %5 = tpu.matmul %3, %4, %cst_5 {dimension_numbers = #tpu.dot_dimension_numbers<[1], [0], [0], [1], [0, 0, 1, 1], [], []>} : vector<32x8xf32>, vector<8x32xf32>, vector<32x32xf32> -> vector<32x32xf32>
    %6 = math.tanh %5 : vector<32x32xf32>
    %c0_6 = arith.constant 0 : index
    %c0_7 = arith.constant 0 : index
    %c0_8 = arith.constant 0 : index
    %7 = vector.load %arg4[%c0_6, %c0_7, %c0_8] : memref<2x32x32xf32, #tpu.memory_space<vmem>>, vector<1x32x32xf32>
    %8 = vector.shape_cast %7 : vector<1x32x32xf32> to vector<32x32xf32>
    %9 = vector.shape_cast %6 : vector<32x32xf32> to vector<1x32x32xf32>
    tpu.vector_store %arg4[%c0_6, %c0_7, %c0_8], %9 {strides = array<i32>} : memref<2x32x32xf32, #tpu.memory_space<vmem>>, vector<1x32x32xf32>,
    %10 = vector.extract_strided_slice %2 {offsets = [8, 0], sizes = [8, 32], strides = [1, 1]} : vector<16x32xf32> to vector<8x32xf32>
    %cst_9 = arith.constant dense<0.000000e+00> : vector<32x32xf32>
    %11 = tpu.matmul %3, %10, %cst_9 {dimension_numbers = #tpu.dot_dimension_numbers<[1], [0], [0], [1], [0, 0, 1, 1], [], []>} : vector<32x8xf32>, vector<8x32xf32>, vector<32x32xf32> -> vector<32x32xf32>
    %12 = math.tanh %11 : vector<32x32xf32>
    %c1 = arith.constant 1 : index
    %c0_10 = arith.constant 0 : index
    %c0_11 = arith.constant 0 : index
    %13 = vector.load %arg4[%c1, %c0_10, %c0_11] : memref<2x32x32xf32, #tpu.memory_space<vmem>>, vector<1x32x32xf32>
    %14 = vector.shape_cast %13 : vector<1x32x32xf32> to vector<32x32xf32>
    %15 = vector.shape_cast %12 : vector<32x32xf32> to vector<1x32x32xf32>
    tpu.vector_store %arg4[%c1, %c0_10, %c0_11], %15 {strides = array<i32>} : memref<2x32x32xf32, #tpu.memory_space<vmem>>, vector<1x32x32xf32>,
    return
  }
  func.func @transform_0(%arg0: i32) -> (i32, i32) {
    %c0_i32 = arith.constant 0 : i32
    %c0_i32_0 = arith.constant 0 : i32
    %c0_i32_1 = arith.constant 0 : i32
    return %c0_i32, %c0_i32_0 : i32, i32
  }
  func.func @transform_1(%arg0: i32) -> (i32, i32) {
    %c0_i32 = arith.constant 0 : i32
    %c0_i32_0 = arith.constant 0 : i32
    %c0_i32_1 = arith.constant 0 : i32
    return %c0_i32, %c0_i32_0 : i32, i32
  }
  func.func @transform_2(%arg0: i32) -> (i32, i32) {
    %c0_i32 = arith.constant 0 : i32
    %c0_i32_0 = arith.constant 0 : i32
    %c0_i32_1 = arith.constant 0 : i32
    return %c0_i32, %c0_i32_0 : i32, i32
  }
  func.func @transform_3(%arg0: i32) -> (i32, i32, i32) {
    %c0_i32 = arith.constant 0 : i32
    %c0_i32_0 = arith.constant 0 : i32
    %c0_i32_1 = arith.constant 0 : i32
    %c0_i32_2 = arith.constant 0 : i32
    return %c0_i32, %c0_i32_0, %c0_i32_1 : i32, i32, i32
  }
}

</mosaic_0001>

<bundles_post_ra>
// kernel: sdf_model_forward.9
= control target key start
LH: loop header
LB: loop body
LE: loop exit
PB: predicated region body
PF: predicated region fallthrough
CT: control target
= control target key end

     0   :  { %s3286_s12 = smov 0   ;;  %s3642_s0 = inlined_call_operand.vmem [shape: bf16[2048,9], index: 0, kind: input, shape index: {}]   ;;  %s3643_s1 = inlined_call_operand.vmem [shape: bf16[9,128], index: 1, kind: input, shape index: {}]   ;;  %s3644_s2 = inlined_call_operand.vmem [shape: f32[1,128], index: 2, kind: input, shape index: {}]   ;;  %s3645_s3 = inlined_call_operand.vmem [shape: bf16[2048,128], index: 3, kind: output, shape index: {}]  }
   0x1 LB: > { %s2206_s13 = sadd.s32 4294967295, %s3263_s12   ;;  %p2210_p0 = scmp.ge.s32.totalorder %s3263_s12, 1  ;;  %s3263_s12 = sphi %s3286_s12, %s13_s12  }
   0x2   : > { %p138_p1 = scmp.lt.s32.totalorder %s3263_s12, 3 }
   0x4   : > { %p139_p2 = pnand %p2210_p0, %p138_p1 }
   0x5   : > { %v3192_v0 = vld [vmem:[%s3643_s1] sm:$0x1f] (!%p139_p2)   ;;  %vm830_vm0 = vcmask (!%p139_p2), 1043456   ;;  %vm831_vm1 = vcmask (!%p139_p2), 1044480   ;;  %s2211_s16 = sshll.u32 (!%p139_p2), %s2206_s13, 7  ;;  %v3265_v1 = vmov (!%p139_p2), 65535  }
   0x6   : > { %142 = sbr.rel (%p139_p2) target bundleno = 361 (0x169), region = 32  ;;  %v832_v2 = vsel (!%p139_p2), %vm830_vm0, 4294967295, %v3265_v1  ;;  %p163_p3 = scmp.lt.s32.totalorder (!%p139_p2), %s2211_s16, 255  ;;  %vm637_vm2 = vcmask (!%p139_p2), 72704  }
   0x7   : > { %v833_v3 = vsel (!%p139_p2), %vm831_vm1, %v832_v2, 0 }
   0x8   : > { %v835_v4 = vand.u32 (!%p139_p2), %v3192_v0, %v833_v3 }
   0xa   : > { %3051 = vmatprep.subr.bf16.mxu0 (!%p139_p2), %v835_v4  ;;  %3181 = vmatprep.subr.bf16.mxu1 (!%p139_p2), %v835_v4 }
   0xb   : > { %3052 = vmatpush3.bf16.msra.mxu0 (!%p139_p2), %v835_v4  ;;  %3182 = vmatpush3.bf16.msra.mxu1 (!%p139_p2), %v835_v4 }
   0xd   : > { %s3647_s16 = smov (!%p163_p3, %s2211_s16), 255 }
   0xe   : > { %s2212_s17 = sshll.u32 %s3647_s16, 2 }
   0xf   : > { %s3305_s20 = scalar_lea.vmem %s3642_s0, %s2212_s17  ;;  %s3453_s25 = scalar_lea.vmem %s3645_s3, %s2212_s17 }
  0x10   : > { %v3193_v5 = vld [vmem:[%s3305_s20] sm:$0xff]   ;;  %v3195_v7 = vld [vmem:[%s3305_s20 + $0x8] sm:$0xff]   ;;  %v3197_v9 = vld [vmem:[%s3305_s20 + $0x10] sm:$0xff]  }
  0x11   : > { %v3194_v6 = vld [vmem:[%s3305_s20 + $0x100] sm:$0xff]   ;;  %3053 = vmatprep.mubr.msk.bf16.mxu0 %vm637_vm2, %v3193_v5  ;;  %v3196_v8 = vld [vmem:[%s3305_s20 + $0x108] sm:$0xff]   ;;  %v3198_v10 = vld [vmem:[%s3305_s20 + $0x110] sm:$0xff]  }
  0x12   : > { %3117 = vmatprep.mubr.msk.bf16.mxu1 %vm637_vm2, %v3194_v6  ;;  %3054 = vmatmul.mubr.msk.bf16.vlgmr.msra.gmra.mrb[0].mxu0 %vm637_vm2, %v3195_v7  ;;  %v3199_v11 = vld [vmem:[%s3305_s20 + $0x18] sm:$0xff]   ;;  %v3201_v13 = vld [vmem:[%s3305_s20 + $0x20] sm:$0xff]   ;;  %v3203_v15 = vld [vmem:[%s3305_s20 + $0x28] sm:$0xff]  }
  0x13   : > { %3118 = vmatmul.mubr.msk.bf16.vlgmr.msra.gmra.mrb[0].mxu1 %vm637_vm2, %v3196_v8  ;;  %3057 = vmatprep.mubr.msk.bf16.mxu0 %vm637_vm2, %v3197_v9  ;;  %v3200_v12 = vld [vmem:[%s3305_s20 + $0x118] sm:$0xff]   ;;  %v3202_v14 = vld [vmem:[%s3305_s20 + $0x120] sm:$0xff]   ;;  %v3204_v16 = vld [vmem:[%s3305_s20 + $0x128] sm:$0xff]  }
  0x14   : > { %3121 = vmatprep.mubr.msk.bf16.mxu1 %vm637_vm2, %v3198_v10  ;;  %v3205_v17 = vld [vmem:[%s3305_s20 + $0x30] sm:$0xff]   ;;  %v3207_v19 = vld [vmem:[%s3305_s20 + $0x38] sm:$0xff]   ;;  %v3209_v21 = vld [vmem:[%s3305_s20 + $0x40] sm:$0xff]  }
  0x15   : > { %v3206_v18 = vld [vmem:[%s3305_s20 + $0x130] sm:$0xff]   ;;  %v3208_v20 = vld [vmem:[%s3305_s20 + $0x138] sm:$0xff]   ;;  %v3210_v22 = vld [vmem:[%s3305_s20 + $0x140] sm:$0xff]  }
  0x16   : > { %v3211_v23 = vld [vmem:[%s3305_s20 + $0x48] sm:$0xff]   ;;  %v3213_v25 = vld [vmem:[%s3305_s20 + $0x50] sm:$0xff]   ;;  %v3215_v27 = vld [vmem:[%s3305_s20 + $0x58] sm:$0xff]  }
  0x17   : > { %v3212_v24 = vld [vmem:[%s3305_s20 + $0x148] sm:$0xff]   ;;  %v3214_v26 = vld [vmem:[%s3305_s20 + $0x150] sm:$0xff]   ;;  %v3216_v28 = vld [vmem:[%s3305_s20 + $0x158] sm:$0xff]  }
  0x18   : > { %v3217_v29 = vld [vmem:[%s3305_s20 + $0x60] sm:$0xff]   ;;  %v3219_v31 = vld [vmem:[%s3305_s20 + $0x68] sm:$0xff]   ;;  %v3221_v33 = vld [vmem:[%s3305_s20 + $0x70] sm:$0xff]  }
  0x19   : > { %v3218_v30 = vld [vmem:[%s3305_s20 + $0x160] sm:$0xff]   ;;  %v3220_v32 = vld [vmem:[%s3305_s20 + $0x168] sm:$0xff]   ;;  %v3222_v34 = vld [vmem:[%s3305_s20 + $0x170] sm:$0xff]  }
  0x1a   : > { %3058 = vmatmul.mubr.msk.bf16.gmra.mrb[4].mxu0 %vm637_vm2, %v3199_v11  ;;  %v3223_v35 = vld [vmem:[%s3305_s20 + $0x78] sm:$0xff]   ;;  %v3225_v37 = vld [vmem:[%s3305_s20 + $0x80] sm:$0xff]   ;;  %v3227_v39 = vld [vmem:[%s3305_s20 + $0x88] sm:$0xff]  }
  0x1b   : > { %3122 = vmatmul.mubr.msk.bf16.gmra.mrb[4].mxu1 %vm637_vm2, %v3200_v12  ;;  %3061 = vmatprep.mubr.msk.bf16.mxu0 %vm637_vm2, %v3201_v13  ;;  %v3224_v36 = vld [vmem:[%s3305_s20 + $0x178] sm:$0xff]   ;;  %v3226_v38 = vld [vmem:[%s3305_s20 + $0x180] sm:$0xff]   ;;  %v3228_v40 = vld [vmem:[%s3305_s20 + $0x188] sm:$0xff]  }
  0x1c   : > { %3125 = vmatprep.mubr.msk.bf16.mxu1 %vm637_vm2, %v3202_v14  ;;  %v3229_v41 = vld [vmem:[%s3305_s20 + $0x90] sm:$0xff]   ;;  %v3231_v43 = vld [vmem:[%s3305_s20 + $0x98] sm:$0xff]   ;;  %v3233_v45 = vld [vmem:[%s3305_s20 + $0xa0] sm:$0xff]  }
  0x1d   : > { %v3230_v42 = vld [vmem:[%s3305_s20 + $0x190] sm:$0xff]   ;;  %v3232_v44 = vld [vmem:[%s3305_s20 + $0x198] sm:$0xff]   ;;  %v3234_v46 = vld [vmem:[%s3305_s20 + $0x1a0] sm:$0xff]  }
  0x1e   : > { %v3235_v47 = vld [vmem:[%s3305_s20 + $0xa8] sm:$0xff]   ;;  %v3237_v49 = vld [vmem:[%s3305_s20 + $0xb0] sm:$0xff]   ;;  %v3239_v51 = vld [vmem:[%s3305_s20 + $0xb8] sm:$0xff]  }
  0x1f   : > { %v3236_v48 = vld [vmem:[%s3305_s20 + $0x1a8] sm:$0xff]   ;;  %v3238_v50 = vld [vmem:[%s3305_s20 + $0x1b0] sm:$0xff]   ;;  %v3240_v52 = vld [vmem:[%s3305_s20 + $0x1b8] sm:$0xff]  }
  0x20   : > { %v3241_v53 = vld [vmem:[%s3305_s20 + $0xc0] sm:$0xff]   ;;  %v3243_v55 = vld [vmem:[%s3305_s20 + $0xc8] sm:$0xff]   ;;  %v3245_v57 = vld [vmem:[%s3305_s20 + $0xd0] sm:$0xff]  }
  0x21   : > { %v3242_v54 = vld [vmem:[%s3305_s20 + $0x1c0] sm:$0xff]   ;;  %v3244_v56 = vld [vmem:[%s3305_s20 + $0x1c8] sm:$0xff]   ;;  %v3246_v58 = vld [vmem:[%s3305_s20 + $0x1d0] sm:$0xff]  }
  0x22   : > { %3062 = vmatmul.mubr.msk.bf16.gmra.mrb[8].mxu0 %vm637_vm2, %v3203_v15  ;;  %v3247_v59 = vld [vmem:[%s3305_s20 + $0xd8] sm:$0xff]   ;;  %v3249_v61 = vld [vmem:[%s3305_s20 + $0xe0] sm:$0xff]   ;;  %v3251_v63 = vld [vmem:[%s3305_s20 + $0xe8] sm:$0xff]  }
  0x23   : > { %3126 = vmatmul.mubr.msk.bf16.gmra.mrb[8].mxu1 %vm637_vm2, %v3204_v16  ;;  %3065 = vmatprep.mubr.msk.bf16.mxu0 %vm637_vm2, %v3205_v17  ;;  %v3248_v60 = vld [vmem:[%s3305_s20 + $0x1d8] sm:$0xff]   ;;  %v3250_v62 = vld [vmem:[%s3305_s20 + $0x1e0] sm:$0xff]   ;;  %v3252_v0 = vld [vmem:[%s3305_s20 + $0x1e8] sm:$0xff]  }
  0x24   : > { %3129 = vmatprep.mubr.msk.bf16.mxu1 %vm637_vm2, %v3206_v18  ;;  %v3253_v1 = vld [vmem:[%s3305_s20 + $0xf0] sm:$0xff]   ;;  %v3255_v3 = vld [vmem:[%s3305_s20 + $0xf8] sm:$0xff]   ;;  %v3438_v5 = vld [vmem:[%s3644_s2] ss:$0 sm:$0xff] }
  0x25   : > { %v3254_v2 = vld [vmem:[%s3305_s20 + $0x1f0] sm:$0xff]   ;;  %v3256_v4 = vld [vmem:[%s3305_s20 + $0x1f8] sm:$0xff]  }
  0x2a   : > { %3066 = vmatmul.mubr.msk.bf16.gmra.mrb[12].mxu0 %vm637_vm2, %v3207_v19 }
  0x2b   : > { %3130 = vmatmul.mubr.msk.bf16.gmra.mrb[12].mxu1 %vm637_vm2, %v3208_v20  ;;  %3069 = vmatprep.mubr.msk.bf16.mxu0 %vm637_vm2, %v3209_v21 }
  0x2c   : > { %3133 = vmatprep.mubr.msk.bf16.mxu1 %vm637_vm2, %v3210_v22 }
  0x32   : > { %3070 = vmatmul.mubr.msk.bf16.gmra.mrb[16].mxu0 %vm637_vm2, %v3211_v23 }
  0x33   : > { %3134 = vmatmul.mubr.msk.bf16.gmra.mrb[16].mxu1 %vm637_vm2, %v3212_v24  ;;  %3073 = vmatprep.mubr.msk.bf16.mxu0 %vm637_vm2, %v3213_v25 }
  0x34   : > { %3137 = vmatprep.mubr.msk.bf16.mxu1 %vm637_vm2, %v3214_v26 }
  0x3a   : > { %3074 = vmatmul.mubr.msk.bf16.gmra.mrb[20].mxu0 %vm637_vm2, %v3215_v27 }
  0x3b   : > { %3138 = vmatmul.mubr.msk.bf16.gmra.mrb[20].mxu1 %vm637_vm2, %v3216_v28  ;;  %3077 = vmatprep.mubr.msk.bf16.mxu0 %vm637_vm2, %v3217_v29 }
  0x3c   : > { %3141 = vmatprep.mubr.msk.bf16.mxu1 %vm637_vm2, %v3218_v30 }
  0x42   : > { %3078 = vmatmul.mubr.msk.bf16.gmra.mrb[24].mxu0 %vm637_vm2, %v3219_v31 }
  0x43   : > { %3142 = vmatmul.mubr.msk.bf16.gmra.mrb[24].mxu1 %vm637_vm2, %v3220_v32  ;;  %3081 = vmatprep.mubr.msk.bf16.mxu0 %vm637_vm2, %v3221_v33 }
  0x44   : > { %3145 = vmatprep.mubr.msk.bf16.mxu1 %vm637_vm2, %v3222_v34 }
  0x4a   : > { %3082 = vmatmul.mubr.msk.bf16.gmra.mrb[28].mxu0 %vm637_vm2, %v3223_v35 }
  0x4b   : > { %3146 = vmatmul.mubr.msk.bf16.gmra.mrb[28].mxu1 %vm637_vm2, %v3224_v36  ;;  %3085 = vmatprep.mubr.msk.bf16.mxu0 %vm637_vm2, %v3225_v37 }
  0x4c   : > { %3149 = vmatprep.mubr.msk.bf16.mxu1 %vm637_vm2, %v3226_v38 }
  0x52   : > { %3086 = vmatmul.mubr.msk.bf16.gmra.mrb[32].mxu0 %vm637_vm2, %v3227_v39 }
  0x53   : > { %3150 = vmatmul.mubr.msk.bf16.gmra.mrb[32].mxu1 %vm637_vm2, %v3228_v40  ;;  %3089 = vmatprep.mubr.msk.bf16.mxu0 %vm637_vm2, %v3229_v41 }
  0x54   : > { %3153 = vmatprep.mubr.msk.bf16.mxu1 %vm637_vm2, %v3230_v42 }
  0x5a   : > { %3090 = vmatmul.mubr.msk.bf16.gmra.mrb[36].mxu0 %vm637_vm2, %v3231_v43 }
  0x5b   : > { %3154 = vmatmul.mubr.msk.bf16.gmra.mrb[36].mxu1 %vm637_vm2, %v3232_v44  ;;  %3093 = vmatprep.mubr.msk.bf16.mxu0 %vm637_vm2, %v3233_v45 }
  0x5c   : > { %3157 = vmatprep.mubr.msk.bf16.mxu1 %vm637_vm2, %v3234_v46 }
  0x62   : > { %3094 = vmatmul.mubr.msk.bf16.gmra.mrb[40].mxu0 %vm637_vm2, %v3235_v47 }
  0x63   : > { %3158 = vmatmul.mubr.msk.bf16.gmra.mrb[40].mxu1 %vm637_vm2, %v3236_v48  ;;  %3097 = vmatprep.mubr.msk.bf16.mxu0 %vm637_vm2, %v3237_v49 }
  0x64   : > { %3161 = vmatprep.mubr.msk.bf16.mxu1 %vm637_vm2, %v3238_v50 }
  0x6a   : > { %3098 = vmatmul.mubr.msk.bf16.gmra.mrb[44].mxu0 %vm637_vm2, %v3239_v51 }
  0x6b   : > { %3162 = vmatmul.mubr.msk.bf16.gmra.mrb[44].mxu1 %vm637_vm2, %v3240_v52  ;;  %3101 = vmatprep.mubr.msk.bf16.mxu0 %vm637_vm2, %v3241_v53 }
  0x6c   : > { %3165 = vmatprep.mubr.msk.bf16.mxu1 %vm637_vm2, %v3242_v54 }
  0x72   : > { %3102 = vmatmul.mubr.msk.bf16.gmra.mrb[48].mxu0 %vm637_vm2, %v3243_v55 }
  0x73   : > { %3166 = vmatmul.mubr.msk.bf16.gmra.mrb[48].mxu1 %vm637_vm2, %v3244_v56  ;;  %3105 = vmatprep.mubr.msk.bf16.mxu0 %vm637_vm2, %v3245_v57 }
  0x74   : > { %3169 = vmatprep.mubr.msk.bf16.mxu1 %vm637_vm2, %v3246_v58 }
  0x7a   : > { %3106 = vmatmul.mubr.msk.bf16.gmra.mrb[52].mxu0 %vm637_vm2, %v3247_v59 }
  0x7b   : > { %3170 = vmatmul.mubr.msk.bf16.gmra.mrb[52].mxu1 %vm637_vm2, %v3248_v60  ;;  %3109 = vmatprep.mubr.msk.bf16.mxu0 %vm637_vm2, %v3249_v61 }
  0x7c   : > { %3173 = vmatprep.mubr.msk.bf16.mxu1 %vm637_vm2, %v3250_v62 }
  0x82   : > { %3110 = vmatmul.mubr.msk.bf16.gmra.mrb[56].mxu0 %vm637_vm2, %v3251_v63 }
  0x83   : > { %3174 = vmatmul.mubr.msk.bf16.gmra.mrb[56].mxu1 %vm637_vm2, %v3252_v0  ;;  %3113 = vmatprep.mubr.msk.bf16.mxu0 %vm637_vm2, %v3253_v1 }
  0x84   : > { %3177 = vmatprep.mubr.msk.bf16.mxu1 %vm637_vm2, %v3254_v2 }
  0x8a   : > { %3114 = vmatmul.mubr.msk.bf16.gmra.mrb[60].mxu0 %vm637_vm2, %v3255_v3 }
  0x8b   : > { %3178 = vmatmul.mubr.msk.bf16.gmra.mrb[60].mxu1 %vm637_vm2, %v3256_v4 }
  0xe5   : > { %v3055_v6 = vpop.f32.mrb[0].mxu0 }
  0xe6   : > { %v880_v7 = vadd.f32 %v3055_v6, %v3438_v5  ;;  %v3119_v8 = vpop.f32.mrb[0].mxu1  ;;  %v871_v9 = vpop.f32.mrb[1].mxu0 }
  0xe7   : > { %v1136_v10 = vadd.f32 %v3119_v8, %v3438_v5  ;;  %v872_v11 = vadd.f32 %v3438_v5, %v871_v9  ;;  %v1127_v12 = vpop.f32.mrb[1].mxu1  ;;  %v3056_v13 = vpop.f32.mrb[2].mxu0 }
  0xe8   : > { %v1128_v14 = vadd.f32 %v3438_v5, %v1127_v12  ;;  %v883_v15 = vadd.f32 %v3056_v13, %v3438_v5  ;;  %v3120_v16 = vpop.f32.mrb[2].mxu1  ;;  %v874_v17 = vpop.f32.mrb[3].mxu0  ;;  %v1384_v21 = vmax.f32 %v880_v7, 0.0 }
  0xe9   : > { %v1139_v18 = vadd.f32 %v3120_v16, %v3438_v5  ;;  %v875_v19 = vadd.f32 %v3438_v5, %v874_v17  ;;  %v1130_v20 = vpop.f32.mrb[3].mxu1  ;;  %v1448_v24 = vmax.f32 %v1136_v10, 0.0  ;;  %v1382_v25 = vmax.f32 %v872_v11, 0.0 }
  0xea   : > { %v1385_v22 = vmax.f32 %v883_v15, 0.0  ;;  %v1131_v23 = vadd.f32 %v3438_v5, %v1130_v20  ;;  %v1446_v28 = vmax.f32 %v1128_v14, 0.0 }
  0xeb   : > { %v1449_v26 = vmax.f32 %v1139_v18, 0.0  ;;  %v1383_v27 = vmax.f32 %v875_v19, 0.0 }
  0xec   : > { %v2611_v29 = vpack.c.bf16 %v1385_v22, %v1384_v21  ;;  %v1447_v30 = vmax.f32 %v1131_v23, 0.0 }
  0xed   : > { %v2771_v31 = vpack.c.bf16 %v1449_v26, %v1448_v24  ;;  %v2606_v32 = vpack.c.bf16 %v1383_v27, %v1382_v25  ;;  %v3059_v33 = vpop.f32.mrb[4].mxu0 }
  0xee   : > { %2923 = vst [vmem:[%s3453_s25 + $0x8] sm:$0xff] %v2611_v29   ;;  %v2766_v34 = vpack.c.bf16 %v1447_v30, %v1446_v28  ;;  %v896_v35 = vadd.f32 %v3059_v33, %v3438_v5  ;;  %v3123_v36 = vpop.f32.mrb[4].mxu1  ;;  %v887_v37 = vpop.f32.mrb[5].mxu0 }
  0xef   : > { %2955 = vst [vmem:[%s3453_s25 + $0x108] sm:$0xff] %v2771_v31   ;;  %2607 = vst [vmem:[%s3453_s25] sm:$0xff] %v2606_v32   ;;  %v1152_v38 = vadd.f32 %v3123_v36, %v3438_v5  ;;  %v888_v39 = vadd.f32 %v3438_v5, %v887_v37  ;;  %v1143_v40 = vpop.f32.mrb[5].mxu1  ;;  %v3060_v41 = vpop.f32.mrb[6].mxu0 }
  0xf0   : > { %2954 = vst [vmem:[%s3453_s25 + $0x100] sm:$0xff] %v2766_v34   ;;  %v1144_v42 = vadd.f32 %v3438_v5, %v1143_v40  ;;  %v899_v43 = vadd.f32 %v3060_v41, %v3438_v5  ;;  %v3124_v44 = vpop.f32.mrb[6].mxu1  ;;  %v890_v45 = vpop.f32.mrb[7].mxu0  ;;  %v1388_v49 = vmax.f32 %v896_v35, 0.0 }
  0xf1   : > { %v1155_v46 = vadd.f32 %v3124_v44, %v3438_v5  ;;  %v891_v47 = vadd.f32 %v3438_v5, %v890_v45  ;;  %v1146_v48 = vpop.f32.mrb[7].mxu1  ;;  %v1452_v52 = vmax.f32 %v1152_v38, 0.0  ;;  %v1386_v53 = vmax.f32 %v888_v39, 0.0 }
  0xf2   : > { %v1389_v50 = vmax.f32 %v899_v43, 0.0  ;;  %v1147_v51 = vadd.f32 %v3438_v5, %v1146_v48  ;;  %v1450_v56 = vmax.f32 %v1144_v42, 0.0 }
  0xf3   : > { %v1453_v54 = vmax.f32 %v1155_v46, 0.0  ;;  %v1387_v55 = vmax.f32 %v891_v47, 0.0 }
  0xf4   : > { %v2621_v57 = vpack.c.bf16 %v1389_v50, %v1388_v49  ;;  %v1451_v58 = vmax.f32 %v1147_v51, 0.0 }
  0xf5   : > { %v2781_v59 = vpack.c.bf16 %v1453_v54, %v1452_v52  ;;  %v2616_v60 = vpack.c.bf16 %v1387_v55, %v1386_v53  ;;  %v3063_v61 = vpop.f32.mrb[8].mxu0 }
  0xf6   : > { %2925 = vst [vmem:[%s3453_s25 + $0x18] sm:$0xff] %v2621_v57   ;;  %v2776_v62 = vpack.c.bf16 %v1451_v58, %v1450_v56  ;;  %v912_v63 = vadd.f32 %v3063_v61, %v3438_v5  ;;  %v3127_v0 = vpop.f32.mrb[8].mxu1  ;;  %v903_v1 = vpop.f32.mrb[9].mxu0 }
  0xf7   : > { %2957 = vst [vmem:[%s3453_s25 + $0x118] sm:$0xff] %v2781_v59   ;;  %2924 = vst [vmem:[%s3453_s25 + $0x10] sm:$0xff] %v2616_v60   ;;  %v1168_v2 = vadd.f32 %v3127_v0, %v3438_v5  ;;  %v904_v3 = vadd.f32 %v3438_v5, %v903_v1  ;;  %v1159_v4 = vpop.f32.mrb[9].mxu1  ;;  %v3064_v6 = vpop.f32.mrb[10].mxu0 }
  0xf8   : > { %2956 = vst [vmem:[%s3453_s25 + $0x110] sm:$0xff] %v2776_v62   ;;  %v1160_v7 = vadd.f32 %v3438_v5, %v1159_v4  ;;  %v915_v8 = vadd.f32 %v3064_v6, %v3438_v5  ;;  %v3128_v9 = vpop.f32.mrb[10].mxu1  ;;  %v906_v10 = vpop.f32.mrb[11].mxu0  ;;  %v1392_v14 = vmax.f32 %v912_v63, 0.0 }
  0xf9   : > { %v1171_v11 = vadd.f32 %v3128_v9, %v3438_v5  ;;  %v907_v12 = vadd.f32 %v3438_v5, %v906_v10  ;;  %v1162_v13 = vpop.f32.mrb[11].mxu1  ;;  %v1456_v17 = vmax.f32 %v1168_v2, 0.0  ;;  %v1390_v18 = vmax.f32 %v904_v3, 0.0 }
  0xfa   : > { %v1393_v15 = vmax.f32 %v915_v8, 0.0  ;;  %v1163_v16 = vadd.f32 %v3438_v5, %v1162_v13  ;;  %v1454_v21 = vmax.f32 %v1160_v7, 0.0 }
  0xfb   : > { %v1457_v19 = vmax.f32 %v1171_v11, 0.0  ;;  %v1391_v20 = vmax.f32 %v907_v12, 0.0 }
  0xfc   : > { %v2631_v22 = vpack.c.bf16 %v1393_v15, %v1392_v14  ;;  %v1455_v23 = vmax.f32 %v1163_v16, 0.0 }
  0xfd   : > { %v2791_v24 = vpack.c.bf16 %v1457_v19, %v1456_v17  ;;  %v2626_v25 = vpack.c.bf16 %v1391_v20, %v1390_v18  ;;  %v3067_v26 = vpop.f32.mrb[12].mxu0 }
  0xfe   : > { %2927 = vst [vmem:[%s3453_s25 + $0x28] sm:$0xff] %v2631_v22   ;;  %v2786_v27 = vpack.c.bf16 %v1455_v23, %v1454_v21  ;;  %v928_v28 = vadd.f32 %v3067_v26, %v3438_v5  ;;  %v3131_v29 = vpop.f32.mrb[12].mxu1  ;;  %v919_v30 = vpop.f32.mrb[13].mxu0 }
  0xff   : > { %2959 = vst [vmem:[%s3453_s25 + $0x128] sm:$0xff] %v2791_v24   ;;  %2926 = vst [vmem:[%s3453_s25 + $0x20] sm:$0xff] %v2626_v25   ;;  %v1184_v31 = vadd.f32 %v3131_v29, %v3438_v5  ;;  %v920_v32 = vadd.f32 %v3438_v5, %v919_v30  ;;  %v1175_v33 = vpop.f32.mrb[13].mxu1  ;;  %v3068_v34 = vpop.f32.mrb[14].mxu0 }
 0x100   : > { %2958 = vst [vmem:[%s3453_s25 + $0x120] sm:$0xff] %v2786_v27   ;;  %v1176_v35 = vadd.f32 %v3438_v5, %v1175_v33  ;;  %v931_v36 = vadd.f32 %v3068_v34, %v3438_v5  ;;  %v3132_v37 = vpop.f32.mrb[14].mxu1  ;;  %v922_v38 = vpop.f32.mrb[15].mxu0  ;;  %v1396_v42 = vmax.f32 %v928_v28, 0.0 }
 0x101   : > { %v1187_v39 = vadd.f32 %v3132_v37, %v3438_v5  ;;  %v923_v40 = vadd.f32 %v3438_v5, %v922_v38  ;;  %v1178_v41 = vpop.f32.mrb[15].mxu1  ;;  %v1460_v45 = vmax.f32 %v1184_v31, 0.0  ;;  %v1394_v46 = vmax.f32 %v920_v32, 0.0 }
 0x102   : > { %v1397_v43 = vmax.f32 %v931_v36, 0.0  ;;  %v1179_v44 = vadd.f32 %v3438_v5, %v1178_v41  ;;  %v1458_v49 = vmax.f32 %v1176_v35, 0.0 }
 0x103   : > { %v1461_v47 = vmax.f32 %v1187_v39, 0.0  ;;  %v1395_v48 = vmax.f32 %v923_v40, 0.0 }
 0x104   : > { %v2641_v50 = vpack.c.bf16 %v1397_v43, %v1396_v42  ;;  %v1459_v51 = vmax.f32 %v1179_v44, 0.0 }
 0x105   : > { %v2801_v52 = vpack.c.bf16 %v1461_v47, %v1460_v45  ;;  %v2636_v53 = vpack.c.bf16 %v1395_v48, %v1394_v46  ;;  %v3071_v54 = vpop.f32.mrb[16].mxu0 }
 0x106   : > { %2929 = vst [vmem:[%s3453_s25 + $0x38] sm:$0xff] %v2641_v50   ;;  %v2796_v55 = vpack.c.bf16 %v1459_v51, %v1458_v49  ;;  %v944_v56 = vadd.f32 %v3071_v54, %v3438_v5  ;;  %v3135_v57 = vpop.f32.mrb[16].mxu1  ;;  %v935_v58 = vpop.f32.mrb[17].mxu0 }
 0x107   : > { %2961 = vst [vmem:[%s3453_s25 + $0x138] sm:$0xff] %v2801_v52   ;;  %2928 = vst [vmem:[%s3453_s25 + $0x30] sm:$0xff] %v2636_v53   ;;  %v1200_v59 = vadd.f32 %v3135_v57, %v3438_v5  ;;  %v936_v60 = vadd.f32 %v3438_v5, %v935_v58  ;;  %v1191_v61 = vpop.f32.mrb[17].mxu1  ;;  %v3072_v62 = vpop.f32.mrb[18].mxu0 }
 0x108   : > { %2960 = vst [vmem:[%s3453_s25 + $0x130] sm:$0xff] %v2796_v55   ;;  %v1192_v63 = vadd.f32 %v3438_v5, %v1191_v61  ;;  %v947_v0 = vadd.f32 %v3072_v62, %v3438_v5  ;;  %v3136_v1 = vpop.f32.mrb[18].mxu1  ;;  %v938_v2 = vpop.f32.mrb[19].mxu0  ;;  %v1400_v7 = vmax.f32 %v944_v56, 0.0 }
 0x109   : > { %v1203_v3 = vadd.f32 %v3136_v1, %v3438_v5  ;;  %v939_v4 = vadd.f32 %v3438_v5, %v938_v2  ;;  %v1194_v6 = vpop.f32.mrb[19].mxu1  ;;  %v1464_v10 = vmax.f32 %v1200_v59, 0.0  ;;  %v1398_v11 = vmax.f32 %v936_v60, 0.0 }
 0x10a   : > { %v1401_v8 = vmax.f32 %v947_v0, 0.0  ;;  %v1195_v9 = vadd.f32 %v3438_v5, %v1194_v6  ;;  %v1462_v14 = vmax.f32 %v1192_v63, 0.0 }
 0x10b   : > { %v1465_v12 = vmax.f32 %v1203_v3, 0.0  ;;  %v1399_v13 = vmax.f32 %v939_v4, 0.0 }
 0x10c   : > { %v2651_v15 = vpack.c.bf16 %v1401_v8, %v1400_v7  ;;  %v1463_v16 = vmax.f32 %v1195_v9, 0.0 }
 0x10d   : > { %v2811_v17 = vpack.c.bf16 %v1465_v12, %v1464_v10  ;;  %v2646_v18 = vpack.c.bf16 %v1399_v13, %v1398_v11  ;;  %v3075_v19 = vpop.f32.mrb[20].mxu0 }
 0x10e   : > { %2931 = vst [vmem:[%s3453_s25 + $0x48] sm:$0xff] %v2651_v15   ;;  %v2806_v20 = vpack.c.bf16 %v1463_v16, %v1462_v14  ;;  %v960_v21 = vadd.f32 %v3075_v19, %v3438_v5  ;;  %v3139_v22 = vpop.f32.mrb[20].mxu1  ;;  %v951_v23 = vpop.f32.mrb[21].mxu0 }
 0x10f   : > { %2963 = vst [vmem:[%s3453_s25 + $0x148] sm:$0xff] %v2811_v17   ;;  %2930 = vst [vmem:[%s3453_s25 + $0x40] sm:$0xff] %v2646_v18   ;;  %v1216_v24 = vadd.f32 %v3139_v22, %v3438_v5  ;;  %v952_v25 = vadd.f32 %v3438_v5, %v951_v23  ;;  %v1207_v26 = vpop.f32.mrb[21].mxu1  ;;  %v3076_v27 = vpop.f32.mrb[22].mxu0 }
 0x110   : > { %2962 = vst [vmem:[%s3453_s25 + $0x140] sm:$0xff] %v2806_v20   ;;  %v1208_v28 = vadd.f32 %v3438_v5, %v1207_v26  ;;  %v963_v29 = vadd.f32 %v3076_v27, %v3438_v5  ;;  %v3140_v30 = vpop.f32.mrb[22].mxu1  ;;  %v954_v31 = vpop.f32.mrb[23].mxu0  ;;  %v1404_v35 = vmax.f32 %v960_v21, 0.0 }
 0x111   : > { %v1219_v32 = vadd.f32 %v3140_v30, %v3438_v5  ;;  %v955_v33 = vadd.f32 %v3438_v5, %v954_v31  ;;  %v1210_v34 = vpop.f32.mrb[23].mxu1  ;;  %v1468_v38 = vmax.f32 %v1216_v24, 0.0  ;;  %v1402_v39 = vmax.f32 %v952_v25, 0.0 }
 0x112   : > { %v1405_v36 = vmax.f32 %v963_v29, 0.0  ;;  %v1211_v37 = vadd.f32 %v3438_v5, %v1210_v34  ;;  %v1466_v42 = vmax.f32 %v1208_v28, 0.0 }
 0x113   : > { %v1469_v40 = vmax.f32 %v1219_v32, 0.0  ;;  %v1403_v41 = vmax.f32 %v955_v33, 0.0 }
 0x114   : > { %v2661_v43 = vpack.c.bf16 %v1405_v36, %v1404_v35  ;;  %v1467_v44 = vmax.f32 %v1211_v37, 0.0 }
 0x115   : > { %v2821_v45 = vpack.c.bf16 %v1469_v40, %v1468_v38  ;;  %v2656_v46 = vpack.c.bf16 %v1403_v41, %v1402_v39  ;;  %v3079_v47 = vpop.f32.mrb[24].mxu0 }
 0x116   : > { %2933 = vst [vmem:[%s3453_s25 + $0x58] sm:$0xff] %v2661_v43   ;;  %v2816_v48 = vpack.c.bf16 %v1467_v44, %v1466_v42  ;;  %v976_v49 = vadd.f32 %v3079_v47, %v3438_v5  ;;  %v3143_v50 = vpop.f32.mrb[24].mxu1  ;;  %v967_v51 = vpop.f32.mrb[25].mxu0 }
 0x117   : > { %2965 = vst [vmem:[%s3453_s25 + $0x158] sm:$0xff] %v2821_v45   ;;  %2932 = vst [vmem:[%s3453_s25 + $0x50] sm:$0xff] %v2656_v46   ;;  %v1232_v52 = vadd.f32 %v3143_v50, %v3438_v5  ;;  %v968_v53 = vadd.f32 %v3438_v5, %v967_v51  ;;  %v1223_v54 = vpop.f32.mrb[25].mxu1  ;;  %v3080_v55 = vpop.f32.mrb[26].mxu0 }
 0x118   : > { %2964 = vst [vmem:[%s3453_s25 + $0x150] sm:$0xff] %v2816_v48   ;;  %v1224_v56 = vadd.f32 %v3438_v5, %v1223_v54  ;;  %v979_v57 = vadd.f32 %v3080_v55, %v3438_v5  ;;  %v3144_v58 = vpop.f32.mrb[26].mxu1  ;;  %v970_v59 = vpop.f32.mrb[27].mxu0  ;;  %v1408_v63 = vmax.f32 %v976_v49, 0.0 }
 0x119   : > { %v1235_v60 = vadd.f32 %v3144_v58, %v3438_v5  ;;  %v971_v61 = vadd.f32 %v3438_v5, %v970_v59  ;;  %v1226_v62 = vpop.f32.mrb[27].mxu1  ;;  %v1472_v2 = vmax.f32 %v1232_v52, 0.0  ;;  %v1406_v3 = vmax.f32 %v968_v53, 0.0 }
 0x11a   : > { %v1409_v0 = vmax.f32 %v979_v57, 0.0  ;;  %v1227_v1 = vadd.f32 %v3438_v5, %v1226_v62  ;;  %v1470_v7 = vmax.f32 %v1224_v56, 0.0 }
 0x11b   : > { %v1473_v4 = vmax.f32 %v1235_v60, 0.0  ;;  %v1407_v6 = vmax.f32 %v971_v61, 0.0 }
 0x11c   : > { %v2671_v8 = vpack.c.bf16 %v1409_v0, %v1408_v63  ;;  %v1471_v9 = vmax.f32 %v1227_v1, 0.0 }
 0x11d   : > { %v2831_v10 = vpack.c.bf16 %v1473_v4, %v1472_v2  ;;  %v2666_v11 = vpack.c.bf16 %v1407_v6, %v1406_v3  ;;  %v3083_v12 = vpop.f32.mrb[28].mxu0 }
 0x11e   : > { %2935 = vst [vmem:[%s3453_s25 + $0x68] sm:$0xff] %v2671_v8   ;;  %v2826_v13 = vpack.c.bf16 %v1471_v9, %v1470_v7  ;;  %v992_v14 = vadd.f32 %v3083_v12, %v3438_v5  ;;  %v3147_v15 = vpop.f32.mrb[28].mxu1  ;;  %v983_v16 = vpop.f32.mrb[29].mxu0 }
 0x11f   : > { %2967 = vst [vmem:[%s3453_s25 + $0x168] sm:$0xff] %v2831_v10   ;;  %2934 = vst [vmem:[%s3453_s25 + $0x60] sm:$0xff] %v2666_v11   ;;  %v1248_v17 = vadd.f32 %v3147_v15, %v3438_v5  ;;  %v984_v18 = vadd.f32 %v3438_v5, %v983_v16  ;;  %v1239_v19 = vpop.f32.mrb[29].mxu1  ;;  %v3084_v20 = vpop.f32.mrb[30].mxu0 }
 0x120   : > { %2966 = vst [vmem:[%s3453_s25 + $0x160] sm:$0xff] %v2826_v13   ;;  %v1240_v21 = vadd.f32 %v3438_v5, %v1239_v19  ;;  %v995_v22 = vadd.f32 %v3084_v20, %v3438_v5  ;;  %v3148_v23 = vpop.f32.mrb[30].mxu1  ;;  %v986_v24 = vpop.f32.mrb[31].mxu0  ;;  %v1412_v28 = vmax.f32 %v992_v14, 0.0 }
 0x121   : > { %v1251_v25 = vadd.f32 %v3148_v23, %v3438_v5  ;;  %v987_v26 = vadd.f32 %v3438_v5, %v986_v24  ;;  %v1242_v27 = vpop.f32.mrb[31].mxu1  ;;  %v1476_v31 = vmax.f32 %v1248_v17, 0.0  ;;  %v1410_v32 = vmax.f32 %v984_v18, 0.0 }
 0x122   : > { %v1413_v29 = vmax.f32 %v995_v22, 0.0  ;;  %v1243_v30 = vadd.f32 %v3438_v5, %v1242_v27  ;;  %v1474_v35 = vmax.f32 %v1240_v21, 0.0 }
 0x123   : > { %v1477_v33 = vmax.f32 %v1251_v25, 0.0  ;;  %v1411_v34 = vmax.f32 %v987_v26, 0.0 }
 0x124   : > { %v2681_v36 = vpack.c.bf16 %v1413_v29, %v1412_v28  ;;  %v1475_v37 = vmax.f32 %v1243_v30, 0.0 }
 0x125   : > { %v2841_v38 = vpack.c.bf16 %v1477_v33, %v1476_v31  ;;  %v2676_v39 = vpack.c.bf16 %v1411_v34, %v1410_v32  ;;  %v3087_v40 = vpop.f32.mrb[32].mxu0 }
 0x126   : > { %2937 = vst [vmem:[%s3453_s25 + $0x78] sm:$0xff] %v2681_v36   ;;  %v2836_v41 = vpack.c.bf16 %v1475_v37, %v1474_v35  ;;  %v1008_v42 = vadd.f32 %v3087_v40, %v3438_v5  ;;  %v3151_v43 = vpop.f32.mrb[32].mxu1  ;;  %v999_v44 = vpop.f32.mrb[33].mxu0 }
 0x127   : > { %2969 = vst [vmem:[%s3453_s25 + $0x178] sm:$0xff] %v2841_v38   ;;  %2936 = vst [vmem:[%s3453_s25 + $0x70] sm:$0xff] %v2676_v39   ;;  %v1264_v45 = vadd.f32 %v3151_v43, %v3438_v5  ;;  %v1000_v46 = vadd.f32 %v3438_v5, %v999_v44  ;;  %v1255_v47 = vpop.f32.mrb[33].mxu1  ;;  %v3088_v48 = vpop.f32.mrb[34].mxu0 }
 0x128   : > { %2968 = vst [vmem:[%s3453_s25 + $0x170] sm:$0xff] %v2836_v41   ;;  %v1256_v49 = vadd.f32 %v3438_v5, %v1255_v47  ;;  %v1011_v50 = vadd.f32 %v3088_v48, %v3438_v5  ;;  %v3152_v51 = vpop.f32.mrb[34].mxu1  ;;  %v1002_v52 = vpop.f32.mrb[35].mxu0  ;;  %v1416_v56 = vmax.f32 %v1008_v42, 0.0 }
 0x129   : > { %v1267_v53 = vadd.f32 %v3152_v51, %v3438_v5  ;;  %v1003_v54 = vadd.f32 %v3438_v5, %v1002_v52  ;;  %v1258_v55 = vpop.f32.mrb[35].mxu1  ;;  %v1480_v59 = vmax.f32 %v1264_v45, 0.0  ;;  %v1414_v60 = vmax.f32 %v1000_v46, 0.0 }
 0x12a   : > { %v1417_v57 = vmax.f32 %v1011_v50, 0.0  ;;  %v1259_v58 = vadd.f32 %v3438_v5, %v1258_v55  ;;  %v1478_v63 = vmax.f32 %v1256_v49, 0.0 }
 0x12b   : > { %v1481_v61 = vmax.f32 %v1267_v53, 0.0  ;;  %v1415_v62 = vmax.f32 %v1003_v54, 0.0 }
 0x12c   : > { %v2691_v0 = vpack.c.bf16 %v1417_v57, %v1416_v56  ;;  %v1479_v1 = vmax.f32 %v1259_v58, 0.0 }
 0x12d   : > { %v2851_v2 = vpack.c.bf16 %v1481_v61, %v1480_v59  ;;  %v2686_v3 = vpack.c.bf16 %v1415_v62, %v1414_v60  ;;  %v3091_v4 = vpop.f32.mrb[36].mxu0 }
 0x12e   : > { %2939 = vst [vmem:[%s3453_s25 + $0x88] sm:$0xff] %v2691_v0   ;;  %v2846_v6 = vpack.c.bf16 %v1479_v1, %v1478_v63  ;;  %v1024_v7 = vadd.f32 %v3091_v4, %v3438_v5  ;;  %v3155_v8 = vpop.f32.mrb[36].mxu1  ;;  %v1015_v9 = vpop.f32.mrb[37].mxu0 }
 0x12f   : > { %2971 = vst [vmem:[%s3453_s25 + $0x188] sm:$0xff] %v2851_v2   ;;  %2938 = vst [vmem:[%s3453_s25 + $0x80] sm:$0xff] %v2686_v3   ;;  %v1280_v10 = vadd.f32 %v3155_v8, %v3438_v5  ;;  %v1016_v11 = vadd.f32 %v3438_v5, %v1015_v9  ;;  %v1271_v12 = vpop.f32.mrb[37].mxu1  ;;  %v3092_v13 = vpop.f32.mrb[38].mxu0 }
 0x130   : > { %2970 = vst [vmem:[%s3453_s25 + $0x180] sm:$0xff] %v2846_v6   ;;  %v1272_v14 = vadd.f32 %v3438_v5, %v1271_v12  ;;  %v1027_v15 = vadd.f32 %v3092_v13, %v3438_v5  ;;  %v3156_v16 = vpop.f32.mrb[38].mxu1  ;;  %v1018_v17 = vpop.f32.mrb[39].mxu0  ;;  %v1420_v21 = vmax.f32 %v1024_v7, 0.0 }
 0x131   : > { %v1283_v18 = vadd.f32 %v3156_v16, %v3438_v5  ;;  %v1019_v19 = vadd.f32 %v3438_v5, %v1018_v17  ;;  %v1274_v20 = vpop.f32.mrb[39].mxu1  ;;  %v1484_v24 = vmax.f32 %v1280_v10, 0.0  ;;  %v1418_v25 = vmax.f32 %v1016_v11, 0.0 }
 0x132   : > { %v1421_v22 = vmax.f32 %v1027_v15, 0.0  ;;  %v1275_v23 = vadd.f32 %v3438_v5, %v1274_v20  ;;  %v1482_v28 = vmax.f32 %v1272_v14, 0.0 }
 0x133   : > { %v1485_v26 = vmax.f32 %v1283_v18, 0.0  ;;  %v1419_v27 = vmax.f32 %v1019_v19, 0.0 }
 0x134   : > { %v2701_v29 = vpack.c.bf16 %v1421_v22, %v1420_v21  ;;  %v1483_v30 = vmax.f32 %v1275_v23, 0.0 }
 0x135   : > { %v2861_v31 = vpack.c.bf16 %v1485_v26, %v1484_v24  ;;  %v2696_v32 = vpack.c.bf16 %v1419_v27, %v1418_v25  ;;  %v3095_v33 = vpop.f32.mrb[40].mxu0 }
 0x136   : > { %2941 = vst [vmem:[%s3453_s25 + $0x98] sm:$0xff] %v2701_v29   ;;  %v2856_v34 = vpack.c.bf16 %v1483_v30, %v1482_v28  ;;  %v1040_v35 = vadd.f32 %v3095_v33, %v3438_v5  ;;  %v3159_v36 = vpop.f32.mrb[40].mxu1  ;;  %v1031_v37 = vpop.f32.mrb[41].mxu0 }
 0x137   : > { %2973 = vst [vmem:[%s3453_s25 + $0x198] sm:$0xff] %v2861_v31   ;;  %2940 = vst [vmem:[%s3453_s25 + $0x90] sm:$0xff] %v2696_v32   ;;  %v1296_v38 = vadd.f32 %v3159_v36, %v3438_v5  ;;  %v1032_v39 = vadd.f32 %v3438_v5, %v1031_v37  ;;  %v1287_v40 = vpop.f32.mrb[41].mxu1  ;;  %v3096_v41 = vpop.f32.mrb[42].mxu0 }
 0x138   : > { %2972 = vst [vmem:[%s3453_s25 + $0x190] sm:$0xff] %v2856_v34   ;;  %v1288_v42 = vadd.f32 %v3438_v5, %v1287_v40  ;;  %v1043_v43 = vadd.f32 %v3096_v41, %v3438_v5  ;;  %v3160_v44 = vpop.f32.mrb[42].mxu1  ;;  %v1034_v45 = vpop.f32.mrb[43].mxu0  ;;  %v1424_v49 = vmax.f32 %v1040_v35, 0.0 }
 0x139   : > { %v1299_v46 = vadd.f32 %v3160_v44, %v3438_v5  ;;  %v1035_v47 = vadd.f32 %v3438_v5, %v1034_v45  ;;  %v1290_v48 = vpop.f32.mrb[43].mxu1  ;;  %v1488_v52 = vmax.f32 %v1296_v38, 0.0  ;;  %v1422_v53 = vmax.f32 %v1032_v39, 0.0 }
 0x13a   : > { %v1425_v50 = vmax.f32 %v1043_v43, 0.0  ;;  %v1291_v51 = vadd.f32 %v3438_v5, %v1290_v48  ;;  %v1486_v56 = vmax.f32 %v1288_v42, 0.0 }
 0x13b   : > { %v1489_v54 = vmax.f32 %v1299_v46, 0.0  ;;  %v1423_v55 = vmax.f32 %v1035_v47, 0.0 }
 0x13c   : > { %v2711_v57 = vpack.c.bf16 %v1425_v50, %v1424_v49  ;;  %v1487_v58 = vmax.f32 %v1291_v51, 0.0 }
 0x13d   : > { %v2871_v59 = vpack.c.bf16 %v1489_v54, %v1488_v52  ;;  %v2706_v60 = vpack.c.bf16 %v1423_v55, %v1422_v53  ;;  %v3099_v61 = vpop.f32.mrb[44].mxu0 }
 0x13e   : > { %2943 = vst [vmem:[%s3453_s25 + $0xa8] sm:$0xff] %v2711_v57   ;;  %v2866_v62 = vpack.c.bf16 %v1487_v58, %v1486_v56  ;;  %v1056_v63 = vadd.f32 %v3099_v61, %v3438_v5  ;;  %v3163_v0 = vpop.f32.mrb[44].mxu1  ;;  %v1047_v1 = vpop.f32.mrb[45].mxu0 }
 0x13f   : > { %2975 = vst [vmem:[%s3453_s25 + $0x1a8] sm:$0xff] %v2871_v59   ;;  %2942 = vst [vmem:[%s3453_s25 + $0xa0] sm:$0xff] %v2706_v60   ;;  %v1312_v2 = vadd.f32 %v3163_v0, %v3438_v5  ;;  %v1048_v3 = vadd.f32 %v3438_v5, %v1047_v1  ;;  %v1303_v4 = vpop.f32.mrb[45].mxu1  ;;  %v3100_v6 = vpop.f32.mrb[46].mxu0 }
 0x140   : > { %2974 = vst [vmem:[%s3453_s25 + $0x1a0] sm:$0xff] %v2866_v62   ;;  %v1304_v7 = vadd.f32 %v3438_v5, %v1303_v4  ;;  %v1059_v8 = vadd.f32 %v3100_v6, %v3438_v5  ;;  %v3164_v9 = vpop.f32.mrb[46].mxu1  ;;  %v1050_v10 = vpop.f32.mrb[47].mxu0  ;;  %v1428_v14 = vmax.f32 %v1056_v63, 0.0 }
 0x141   : > { %v1315_v11 = vadd.f32 %v3164_v9, %v3438_v5  ;;  %v1051_v12 = vadd.f32 %v3438_v5, %v1050_v10  ;;  %v1306_v13 = vpop.f32.mrb[47].mxu1  ;;  %v1492_v17 = vmax.f32 %v1312_v2, 0.0  ;;  %v1426_v18 = vmax.f32 %v1048_v3, 0.0 }
 0x142   : > { %v1429_v15 = vmax.f32 %v1059_v8, 0.0  ;;  %v1307_v16 = vadd.f32 %v3438_v5, %v1306_v13  ;;  %v1490_v21 = vmax.f32 %v1304_v7, 0.0 }
 0x143   : > { %v1493_v19 = vmax.f32 %v1315_v11, 0.0  ;;  %v1427_v20 = vmax.f32 %v1051_v12, 0.0 }
 0x144   : > { %v2721_v22 = vpack.c.bf16 %v1429_v15, %v1428_v14  ;;  %v1491_v23 = vmax.f32 %v1307_v16, 0.0 }
 0x145   : > { %v2881_v24 = vpack.c.bf16 %v1493_v19, %v1492_v17  ;;  %v2716_v25 = vpack.c.bf16 %v1427_v20, %v1426_v18  ;;  %v3103_v26 = vpop.f32.mrb[48].mxu0 }
 0x146   : > { %2945 = vst [vmem:[%s3453_s25 + $0xb8] sm:$0xff] %v2721_v22   ;;  %v2876_v27 = vpack.c.bf16 %v1491_v23, %v1490_v21  ;;  %v1072_v28 = vadd.f32 %v3103_v26, %v3438_v5  ;;  %v3167_v29 = vpop.f32.mrb[48].mxu1  ;;  %v1063_v30 = vpop.f32.mrb[49].mxu0 }
 0x147   : > { %2977 = vst [vmem:[%s3453_s25 + $0x1b8] sm:$0xff] %v2881_v24   ;;  %2944 = vst [vmem:[%s3453_s25 + $0xb0] sm:$0xff] %v2716_v25   ;;  %v1328_v31 = vadd.f32 %v3167_v29, %v3438_v5  ;;  %v1064_v32 = vadd.f32 %v3438_v5, %v1063_v30  ;;  %v1319_v33 = vpop.f32.mrb[49].mxu1  ;;  %v3104_v34 = vpop.f32.mrb[50].mxu0 }
 0x148   : > { %2976 = vst [vmem:[%s3453_s25 + $0x1b0] sm:$0xff] %v2876_v27   ;;  %v1320_v35 = vadd.f32 %v3438_v5, %v1319_v33  ;;  %v1075_v36 = vadd.f32 %v3104_v34, %v3438_v5  ;;  %v3168_v37 = vpop.f32.mrb[50].mxu1  ;;  %v1066_v38 = vpop.f32.mrb[51].mxu0  ;;  %v1432_v42 = vmax.f32 %v1072_v28, 0.0 }
 0x149   : > { %v1331_v39 = vadd.f32 %v3168_v37, %v3438_v5  ;;  %v1067_v40 = vadd.f32 %v3438_v5, %v1066_v38  ;;  %v1322_v41 = vpop.f32.mrb[51].mxu1  ;;  %v1496_v45 = vmax.f32 %v1328_v31, 0.0  ;;  %v1430_v46 = vmax.f32 %v1064_v32, 0.0 }
 0x14a   : > { %v1433_v43 = vmax.f32 %v1075_v36, 0.0  ;;  %v1323_v44 = vadd.f32 %v3438_v5, %v1322_v41  ;;  %v1494_v49 = vmax.f32 %v1320_v35, 0.0 }
 0x14b   : > { %v1497_v47 = vmax.f32 %v1331_v39, 0.0  ;;  %v1431_v48 = vmax.f32 %v1067_v40, 0.0 }
 0x14c   : > { %v2731_v50 = vpack.c.bf16 %v1433_v43, %v1432_v42  ;;  %v1495_v51 = vmax.f32 %v1323_v44, 0.0 }
 0x14d   : > { %v2891_v52 = vpack.c.bf16 %v1497_v47, %v1496_v45  ;;  %v2726_v53 = vpack.c.bf16 %v1431_v48, %v1430_v46  ;;  %v3107_v54 = vpop.f32.mrb[52].mxu0 }
 0x14e   : > { %2947 = vst [vmem:[%s3453_s25 + $0xc8] sm:$0xff] %v2731_v50   ;;  %v2886_v55 = vpack.c.bf16 %v1495_v51, %v1494_v49  ;;  %v1088_v56 = vadd.f32 %v3107_v54, %v3438_v5  ;;  %v3171_v57 = vpop.f32.mrb[52].mxu1  ;;  %v1079_v58 = vpop.f32.mrb[53].mxu0 }
 0x14f   : > { %2979 = vst [vmem:[%s3453_s25 + $0x1c8] sm:$0xff] %v2891_v52   ;;  %2946 = vst [vmem:[%s3453_s25 + $0xc0] sm:$0xff] %v2726_v53   ;;  %v1344_v59 = vadd.f32 %v3171_v57, %v3438_v5  ;;  %v1080_v60 = vadd.f32 %v3438_v5, %v1079_v58  ;;  %v1335_v61 = vpop.f32.mrb[53].mxu1  ;;  %v3108_v62 = vpop.f32.mrb[54].mxu0 }
 0x150   : > { %2978 = vst [vmem:[%s3453_s25 + $0x1c0] sm:$0xff] %v2886_v55   ;;  %v1336_v63 = vadd.f32 %v3438_v5, %v1335_v61  ;;  %v1091_v0 = vadd.f32 %v3108_v62, %v3438_v5  ;;  %v3172_v1 = vpop.f32.mrb[54].mxu1  ;;  %v1082_v2 = vpop.f32.mrb[55].mxu0  ;;  %v1436_v7 = vmax.f32 %v1088_v56, 0.0 }
 0x151   : > { %v1347_v3 = vadd.f32 %v3172_v1, %v3438_v5  ;;  %v1083_v4 = vadd.f32 %v3438_v5, %v1082_v2  ;;  %v1338_v6 = vpop.f32.mrb[55].mxu1  ;;  %v1500_v10 = vmax.f32 %v1344_v59, 0.0  ;;  %v1434_v11 = vmax.f32 %v1080_v60, 0.0 }
 0x152   : > { %v1437_v8 = vmax.f32 %v1091_v0, 0.0  ;;  %v1339_v9 = vadd.f32 %v3438_v5, %v1338_v6  ;;  %v1498_v14 = vmax.f32 %v1336_v63, 0.0 }
 0x153   : > { %v1501_v12 = vmax.f32 %v1347_v3, 0.0  ;;  %v1435_v13 = vmax.f32 %v1083_v4, 0.0 }
 0x154   : > { %v2741_v15 = vpack.c.bf16 %v1437_v8, %v1436_v7  ;;  %v1499_v16 = vmax.f32 %v1339_v9, 0.0 }
 0x155   : > { %v2901_v17 = vpack.c.bf16 %v1501_v12, %v1500_v10  ;;  %v2736_v18 = vpack.c.bf16 %v1435_v13, %v1434_v11  ;;  %v3111_v19 = vpop.f32.mrb[56].mxu0 }
 0x156   : > { %2949 = vst [vmem:[%s3453_s25 + $0xd8] sm:$0xff] %v2741_v15   ;;  %v2896_v20 = vpack.c.bf16 %v1499_v16, %v1498_v14  ;;  %v1104_v21 = vadd.f32 %v3111_v19, %v3438_v5  ;;  %v3175_v22 = vpop.f32.mrb[56].mxu1  ;;  %v1095_v23 = vpop.f32.mrb[57].mxu0 }
 0x157   : > { %2981 = vst [vmem:[%s3453_s25 + $0x1d8] sm:$0xff] %v2901_v17   ;;  %2948 = vst [vmem:[%s3453_s25 + $0xd0] sm:$0xff] %v2736_v18   ;;  %v1360_v24 = vadd.f32 %v3175_v22, %v3438_v5  ;;  %v1096_v25 = vadd.f32 %v3438_v5, %v1095_v23  ;;  %v1351_v26 = vpop.f32.mrb[57].mxu1  ;;  %v3112_v27 = vpop.f32.mrb[58].mxu0 }
 0x158   : > { %2980 = vst [vmem:[%s3453_s25 + $0x1d0] sm:$0xff] %v2896_v20   ;;  %v1352_v28 = vadd.f32 %v3438_v5, %v1351_v26  ;;  %v1107_v29 = vadd.f32 %v3112_v27, %v3438_v5  ;;  %v3176_v30 = vpop.f32.mrb[58].mxu1  ;;  %v1098_v31 = vpop.f32.mrb[59].mxu0  ;;  %v1440_v35 = vmax.f32 %v1104_v21, 0.0 }
 0x159   : > { %v1363_v32 = vadd.f32 %v3176_v30, %v3438_v5  ;;  %v1099_v33 = vadd.f32 %v3438_v5, %v1098_v31  ;;  %v1354_v34 = vpop.f32.mrb[59].mxu1  ;;  %v1504_v38 = vmax.f32 %v1360_v24, 0.0  ;;  %v1438_v39 = vmax.f32 %v1096_v25, 0.0 }
 0x15a   : > { %v1441_v36 = vmax.f32 %v1107_v29, 0.0  ;;  %v1355_v37 = vadd.f32 %v3438_v5, %v1354_v34  ;;  %v1502_v42 = vmax.f32 %v1352_v28, 0.0 }
 0x15b   : > { %v1505_v40 = vmax.f32 %v1363_v32, 0.0  ;;  %v1439_v41 = vmax.f32 %v1099_v33, 0.0 }
 0x15c   : > { %v2751_v43 = vpack.c.bf16 %v1441_v36, %v1440_v35  ;;  %v1503_v44 = vmax.f32 %v1355_v37, 0.0 }
 0x15d   : > { %v2911_v45 = vpack.c.bf16 %v1505_v40, %v1504_v38  ;;  %v2746_v46 = vpack.c.bf16 %v1439_v41, %v1438_v39  ;;  %v3115_v47 = vpop.f32.mrb[60].mxu0 }
 0x15e   : > { %2951 = vst [vmem:[%s3453_s25 + $0xe8] sm:$0xff] %v2751_v43   ;;  %v2906_v48 = vpack.c.bf16 %v1503_v44, %v1502_v42  ;;  %v1120_v49 = vadd.f32 %v3115_v47, %v3438_v5  ;;  %v3179_v50 = vpop.f32.mrb[60].mxu1  ;;  %v1111_v51 = vpop.f32.mrb[61].mxu0 }
 0x15f   : > { %2983 = vst [vmem:[%s3453_s25 + $0x1e8] sm:$0xff] %v2911_v45   ;;  %2950 = vst [vmem:[%s3453_s25 + $0xe0] sm:$0xff] %v2746_v46   ;;  %v1376_v52 = vadd.f32 %v3179_v50, %v3438_v5  ;;  %v1112_v53 = vadd.f32 %v3438_v5, %v1111_v51  ;;  %v1367_v54 = vpop.f32.mrb[61].mxu1  ;;  %v3116_v55 = vpop.f32.mrb[62].mxu0 }
 0x160   : > { %2982 = vst [vmem:[%s3453_s25 + $0x1e0] sm:$0xff] %v2906_v48   ;;  %v1368_v56 = vadd.f32 %v3438_v5, %v1367_v54  ;;  %v1123_v57 = vadd.f32 %v3116_v55, %v3438_v5  ;;  %v3180_v58 = vpop.f32.mrb[62].mxu1  ;;  %v1114_v59 = vpop.f32.mrb[63].mxu0  ;;  %v1444_v63 = vmax.f32 %v1120_v49, 0.0 }
 0x161   : > { %v1379_v60 = vadd.f32 %v3180_v58, %v3438_v5  ;;  %v1115_v61 = vadd.f32 %v3438_v5, %v1114_v59  ;;  %v1370_v62 = vpop.f32.mrb[63].mxu1  ;;  %v1508_v2 = vmax.f32 %v1376_v52, 0.0  ;;  %v1442_v3 = vmax.f32 %v1112_v53, 0.0 }
 0x162   : > { %v1445_v0 = vmax.f32 %v1123_v57, 0.0  ;;  %v1371_v1 = vadd.f32 %v3438_v5, %v1370_v62  ;;  %v1506_v7 = vmax.f32 %v1368_v56, 0.0 }
 0x163   : > { %v1509_v4 = vmax.f32 %v1379_v60, 0.0  ;;  %v1443_v6 = vmax.f32 %v1115_v61, 0.0 }
 0x164   : > { %v2761_v8 = vpack.c.bf16 %v1445_v0, %v1444_v63  ;;  %v1507_v9 = vmax.f32 %v1371_v1, 0.0 }
 0x165   : > { %v2921_v10 = vpack.c.bf16 %v1509_v4, %v1508_v2  ;;  %v2756_v11 = vpack.c.bf16 %v1443_v6, %v1442_v3 }
 0x166   : > { %2953 = vst [vmem:[%s3453_s25 + $0xf8] sm:$0xff] %v2761_v8   ;;  %v2916_v12 = vpack.c.bf16 %v1507_v9, %v1506_v7 }
 0x167   : > { %2985 = vst [vmem:[%s3453_s25 + $0x1f8] sm:$0xff] %v2921_v10   ;;  %2952 = vst [vmem:[%s3453_s25 + $0xf0] sm:$0xff] %v2756_v11  }
 0x168   : > { %2984 = vst [vmem:[%s3453_s25 + $0x1f0] sm:$0xff] %v2916_v12  }
 0x169 PF: > { %s13_s12 = sadd.s32 1, %s3263_s12  }
 0x16a   : > { %p10_p4 = scmp.ge.s32.totalorder %s13_s12, 4  }
 0x16c   :  { %12 = sbr.rel (!%p10_p4) target bundleno = 1 (0x1), region = 62 }

// kernel: sdf_model_forward.10
= control target key start
LH: loop header
LB: loop body
LE: loop exit
PB: predicated region body
PF: predicated region fallthrough
CT: control target
= control target key end

     0   :  { %s1132_s12 = smov 0   ;;  %s1260_s0 = inlined_call_operand.vmem [shape: bf16[512,72], index: 0, kind: input, shape index: {}]   ;;  %s1261_s1 = inlined_call_operand.vmem [shape: bf16[72,128], index: 1, kind: input, shape index: {}]   ;;  %s1262_s2 = inlined_call_operand.vmem [shape: f32[1,128], index: 2, kind: input, shape index: {}]   ;;  %s1263_s3 = inlined_call_operand.vmem [shape: bf16[512,128], index: 3, kind: output, shape index: {}]  }
   0x1 LB: > { %s792_s13 = sadd.s32 4294967295, %s1110_s12   ;;  %p796_p0 = scmp.ge.s32.totalorder %s1110_s12, 1  ;;  %s1110_s12 = sphi %s1132_s12, %s13_s12  }
   0x2   : > { %p138_p1 = scmp.lt.s32.totalorder %s1110_s12, 3 }
   0x4   : > { %p139_p2 = pnand %p796_p0, %p138_p1 }
   0x5   : > { %v1083_v0 = vld [vmem:[%s1261_s1] sm:$0xff] (!%p139_p2)   ;;  %v1084_v1 = vld [vmem:[%s1261_s1 + $0x8] sm:$0xff] (!%p139_p2)   ;;  %s797_s18 = sshll.u32 (!%p139_p2), %s792_s13, 5  ;;  %v1085_v2 = vld [vmem:[%s1261_s1 + $0x10] sm:$0xff] (!%p139_p2)   ;;  %vm330_vm0 = vcmask (!%p139_p2), 588800   ;;  %vm379_vm1 = vcmask (!%p139_p2), 1043456  }
   0x6   : > { %142 = sbr.rel (%p139_p2) target bundleno = 272 (0x110), region = 32  ;;  %1021 = vmatprep.subr.bf16.mxu0 (!%p139_p2), %v1083_v0  ;;  %1063 = vmatprep.subr.bf16.mxu1 (!%p139_p2), %v1083_v0  ;;  %p163_p3 = scmp.lt.s32.totalorder (!%p139_p2), %s797_s18, 63  ;;  %v1086_v3 = vld [vmem:[%s1261_s1 + $0x18] sm:$0xff] (!%p139_p2)   ;;  %v1087_v6 = vld [vmem:[%s1261_s1 + $0x20] ss:$0 sps:$4 sm:$0xff] (!%p139_p2)  }
   0x7   : > { %1022 = vmatpush3.bf16.msra.mxu0 (!%p139_p2), %v1083_v0  ;;  %1068 = vmatpush3.bf16.msra.mxu1 (!%p139_p2), %v1083_v0  ;;  %v381_v7 = vsel (!%p139_p2), %vm379_vm1, %v1087_v6, 0  ;;  %v1200_v22 = vld [vmem:[%s1262_s2] ss:$0 sm:$0xff] (!%p139_p2) }
   0x8   : > { %1023 = vmatprep.subr.bf16.mxu0 (!%p139_p2), %v1084_v1  ;;  %1064 = vmatprep.subr.bf16.mxu1 (!%p139_p2), %v1084_v1 }
   0xb   : > { %1024 = vmatpush3.bf16.msra.mxu0 (!%p139_p2), %v1084_v1  ;;  %1069 = vmatpush3.bf16.msra.mxu1 (!%p139_p2), %v1084_v1 }
   0xc   : > { %1025 = vmatprep.subr.bf16.mxu0 (!%p139_p2), %v1085_v2  ;;  %1065 = vmatprep.subr.bf16.mxu1 (!%p139_p2), %v1085_v2 }
   0xd   : > { %s1265_s18 = smov (!%p163_p3, %s797_s18), 63 }
   0xe   : > { %s798_s21 = sshll.u32 %s1265_s18, 2 }
   0xf   : > { %s1160_s26 = scalar_lea.vmem %s1260_s0, %s798_s21  ;;  %1026 = vmatpush3.bf16.msra.mxu0 %v1085_v2  ;;  %1070 = vmatpush3.bf16.msra.mxu1 %v1085_v2  ;;  %s1215_s6 = scalar_lea.vmem %s1263_s3, %s798_s21 }
  0x10   : > { %v1088_v4 = vld [vmem:[%s1160_s26] sm:$0xff]   ;;  %1027 = vmatprep.subr.bf16.mxu0 %v1086_v3  ;;  %1066 = vmatprep.subr.bf16.mxu1 %v1086_v3  ;;  %v1090_v8 = vld [vmem:[%s1160_s26 + $0x8] sm:$0xff]   ;;  %v1092_v10 = vld [vmem:[%s1160_s26 + $0x10] sm:$0xff]  }
  0x11   : > { %v1089_v5 = vld [vmem:[%s1160_s26 + $0x40] sm:$0xff]   ;;  %1031 = vmatprep.mubr.msk.bf16.mxu0 %vm330_vm0, %v1088_v4  ;;  %v1091_v9 = vld [vmem:[%s1160_s26 + $0x48] sm:$0xff]   ;;  %v1093_v11 = vld [vmem:[%s1160_s26 + $0x50] sm:$0xff]  }
  0x12   : > { %1047 = vmatprep.mubr.msk.bf16.mxu1 %vm330_vm0, %v1089_v5  ;;  %v1094_v12 = vld [vmem:[%s1160_s26 + $0x18] sm:$0xff]   ;;  %v1096_v14 = vld [vmem:[%s1160_s26 + $0x20] sm:$0xff]   ;;  %v1098_v16 = vld [vmem:[%s1160_s26 + $0x28] sm:$0xff]  }
  0x13   : > { %1028 = vmatpush3.bf16.msra.mxu0 %v1086_v3  ;;  %1071 = vmatpush3.bf16.msra.mxu1 %v1086_v3  ;;  %v1095_v13 = vld [vmem:[%s1160_s26 + $0x58] sm:$0xff]   ;;  %v1097_v15 = vld [vmem:[%s1160_s26 + $0x60] sm:$0xff]   ;;  %v1099_v17 = vld [vmem:[%s1160_s26 + $0x68] sm:$0xff]  }
  0x14   : > { %1073 = vmatprep.subr.msk.bf16.mxu0 %vm379_vm1, %v1087_v6  ;;  %1074 = vmatprep.subr.msk.bf16.mxu1 %vm379_vm1, %v1087_v6  ;;  %v1100_v18 = vld [vmem:[%s1160_s26 + $0x30] sm:$0xff]   ;;  %v1102_v20 = vld [vmem:[%s1160_s26 + $0x38] sm:$0xff]  }
  0x15   : > { %v1101_v19 = vld [vmem:[%s1160_s26 + $0x70] sm:$0xff]   ;;  %v1103_v21 = vld [vmem:[%s1160_s26 + $0x78] sm:$0xff]  }
  0x17   : > { %1030 = vmatpush3.bf16.msra.mxu0 %v381_v7  ;;  %1072 = vmatpush3.bf16.msra.mxu1 %v381_v7 }
  0x1a   : > { %1032 = vmatmul.mubr.msk.bf16.vlgmr.msra.gmra.mrb[0].mxu0 %vm330_vm0, %v1090_v8  ;;  %1048 = vmatmul.mubr.msk.bf16.vlgmr.msra.gmra.mrb[0].mxu1 %vm330_vm0, %v1091_v9 }
  0x1b   : > { %1035 = vmatprep.mubr.msk.bf16.mxu0 %vm330_vm0, %v1092_v10  ;;  %1051 = vmatprep.mubr.msk.bf16.mxu1 %vm330_vm0, %v1093_v11 }
  0x22   : > { %1036 = vmatmul.mubr.msk.bf16.gmra.mrb[4].mxu0 %vm330_vm0, %v1094_v12  ;;  %1052 = vmatmul.mubr.msk.bf16.gmra.mrb[4].mxu1 %vm330_vm0, %v1095_v13 }
  0x23   : > { %1039 = vmatprep.mubr.msk.bf16.mxu0 %vm330_vm0, %v1096_v14  ;;  %1055 = vmatprep.mubr.msk.bf16.mxu1 %vm330_vm0, %v1097_v15 }
  0x2a   : > { %1040 = vmatmul.mubr.msk.bf16.gmra.mrb[8].mxu0 %vm330_vm0, %v1098_v16  ;;  %1056 = vmatmul.mubr.msk.bf16.gmra.mrb[8].mxu1 %vm330_vm0, %v1099_v17 }
  0x2b   : > { %1043 = vmatprep.mubr.msk.bf16.mxu0 %vm330_vm0, %v1100_v18  ;;  %1059 = vmatprep.mubr.msk.bf16.mxu1 %vm330_vm0, %v1101_v19 }
  0x32   : > { %1044 = vmatmul.mubr.msk.bf16.gmra.mrb[12].mxu0 %vm330_vm0, %v1102_v20  ;;  %1060 = vmatmul.mubr.msk.bf16.gmra.mrb[12].mxu1 %vm330_vm0, %v1103_v21 }
  0xed   : > { %v1033_v23 = vpop.f32.mrb[0].mxu0  ;;  %v1049_v24 = vpop.f32.mrb[0].mxu1 }
  0xee   : > { %v426_v25 = vadd.f32 %v1033_v23, %v1200_v22  ;;  %v490_v26 = vadd.f32 %v1049_v24, %v1200_v22  ;;  %v417_v27 = vpop.f32.mrb[1].mxu0  ;;  %v481_v28 = vpop.f32.mrb[1].mxu1 }
  0xef   : > { %v418_v29 = vadd.f32 %v1200_v22, %v417_v27  ;;  %v482_v30 = vadd.f32 %v1200_v22, %v481_v28  ;;  %v1034_v31 = vpop.f32.mrb[2].mxu0  ;;  %v1050_v32 = vpop.f32.mrb[2].mxu1 }
  0xf0   : > { %v429_v33 = vadd.f32 %v1034_v31, %v1200_v22  ;;  %v493_v34 = vadd.f32 %v1050_v32, %v1200_v22  ;;  %v420_v35 = vpop.f32.mrb[3].mxu0  ;;  %v484_v36 = vpop.f32.mrb[3].mxu1  ;;  %v546_v39 = vmax.f32 %v426_v25, 0.0  ;;  %v562_v40 = vmax.f32 %v490_v26, 0.0 }
  0xf1   : > { %v421_v37 = vadd.f32 %v1200_v22, %v420_v35  ;;  %v485_v38 = vadd.f32 %v1200_v22, %v484_v36  ;;  %v544_v43 = vmax.f32 %v418_v29, 0.0  ;;  %v560_v44 = vmax.f32 %v482_v30, 0.0 }
  0xf2   : > { %v547_v41 = vmax.f32 %v429_v33, 0.0  ;;  %v563_v42 = vmax.f32 %v493_v34, 0.0 }
  0xf3   : > { %v545_v45 = vmax.f32 %v421_v37, 0.0  ;;  %v561_v46 = vmax.f32 %v485_v38, 0.0 }
  0xf4   : > { %v913_v47 = vpack.c.bf16 %v547_v41, %v546_v39  ;;  %v953_v48 = vpack.c.bf16 %v563_v42, %v562_v40 }
  0xf5   : > { %v908_v49 = vpack.c.bf16 %v545_v45, %v544_v43  ;;  %v948_v50 = vpack.c.bf16 %v561_v46, %v560_v44  ;;  %v1037_v51 = vpop.f32.mrb[4].mxu0  ;;  %v1053_v52 = vpop.f32.mrb[4].mxu1 }
  0xf6   : > { %985 = vst [vmem:[%s1215_s6 + $0x8] sm:$0xff] %v913_v47   ;;  %993 = vst [vmem:[%s1215_s6 + $0x48] sm:$0xff] %v953_v48   ;;  %v442_v53 = vadd.f32 %v1037_v51, %v1200_v22  ;;  %v506_v54 = vadd.f32 %v1053_v52, %v1200_v22  ;;  %v433_v55 = vpop.f32.mrb[5].mxu0  ;;  %v497_v56 = vpop.f32.mrb[5].mxu1 }
  0xf7   : > { %909 = vst [vmem:[%s1215_s6] sm:$0xff] %v908_v49   ;;  %992 = vst [vmem:[%s1215_s6 + $0x40] sm:$0xff] %v948_v50   ;;  %v434_v57 = vadd.f32 %v1200_v22, %v433_v55  ;;  %v498_v58 = vadd.f32 %v1200_v22, %v497_v56  ;;  %v1038_v59 = vpop.f32.mrb[6].mxu0  ;;  %v1054_v60 = vpop.f32.mrb[6].mxu1 }
  0xf8   : > { %v445_v61 = vadd.f32 %v1038_v59, %v1200_v22  ;;  %v509_v62 = vadd.f32 %v1054_v60, %v1200_v22  ;;  %v436_v63 = vpop.f32.mrb[7].mxu0  ;;  %v500_v0 = vpop.f32.mrb[7].mxu1  ;;  %v550_v3 = vmax.f32 %v442_v53, 0.0  ;;  %v566_v4 = vmax.f32 %v506_v54, 0.0 }
  0xf9   : > { %v437_v1 = vadd.f32 %v1200_v22, %v436_v63  ;;  %v501_v2 = vadd.f32 %v1200_v22, %v500_v0  ;;  %v548_v7 = vmax.f32 %v434_v57, 0.0  ;;  %v564_v8 = vmax.f32 %v498_v58, 0.0 }
  0xfa   : > { %v551_v5 = vmax.f32 %v445_v61, 0.0  ;;  %v567_v6 = vmax.f32 %v509_v62, 0.0 }
  0xfb   : > { %v549_v9 = vmax.f32 %v437_v1, 0.0  ;;  %v565_v10 = vmax.f32 %v501_v2, 0.0 }
  0xfc   : > { %v923_v11 = vpack.c.bf16 %v551_v5, %v550_v3  ;;  %v963_v12 = vpack.c.bf16 %v567_v6, %v566_v4 }
  0xfd   : > { %v918_v13 = vpack.c.bf16 %v549_v9, %v548_v7  ;;  %v958_v14 = vpack.c.bf16 %v565_v10, %v564_v8  ;;  %v1041_v15 = vpop.f32.mrb[8].mxu0  ;;  %v1057_v16 = vpop.f32.mrb[8].mxu1 }
  0xfe   : > { %987 = vst [vmem:[%s1215_s6 + $0x18] sm:$0xff] %v923_v11   ;;  %995 = vst [vmem:[%s1215_s6 + $0x58] sm:$0xff] %v963_v12   ;;  %v458_v17 = vadd.f32 %v1041_v15, %v1200_v22  ;;  %v522_v18 = vadd.f32 %v1057_v16, %v1200_v22  ;;  %v449_v19 = vpop.f32.mrb[9].mxu0  ;;  %v513_v20 = vpop.f32.mrb[9].mxu1 }
  0xff   : > { %986 = vst [vmem:[%s1215_s6 + $0x10] sm:$0xff] %v918_v13   ;;  %994 = vst [vmem:[%s1215_s6 + $0x50] sm:$0xff] %v958_v14   ;;  %v450_v21 = vadd.f32 %v1200_v22, %v449_v19  ;;  %v514_v23 = vadd.f32 %v1200_v22, %v513_v20  ;;  %v1042_v24 = vpop.f32.mrb[10].mxu0  ;;  %v1058_v25 = vpop.f32.mrb[10].mxu1 }
 0x100   : > { %v461_v26 = vadd.f32 %v1042_v24, %v1200_v22  ;;  %v525_v27 = vadd.f32 %v1058_v25, %v1200_v22  ;;  %v452_v28 = vpop.f32.mrb[11].mxu0  ;;  %v516_v29 = vpop.f32.mrb[11].mxu1  ;;  %v554_v32 = vmax.f32 %v458_v17, 0.0  ;;  %v570_v33 = vmax.f32 %v522_v18, 0.0 }
 0x101   : > { %v453_v30 = vadd.f32 %v1200_v22, %v452_v28  ;;  %v517_v31 = vadd.f32 %v1200_v22, %v516_v29  ;;  %v552_v36 = vmax.f32 %v450_v21, 0.0  ;;  %v568_v37 = vmax.f32 %v514_v23, 0.0 }
 0x102   : > { %v555_v34 = vmax.f32 %v461_v26, 0.0  ;;  %v571_v35 = vmax.f32 %v525_v27, 0.0 }
 0x103   : > { %v553_v38 = vmax.f32 %v453_v30, 0.0  ;;  %v569_v39 = vmax.f32 %v517_v31, 0.0 }
 0x104   : > { %v933_v40 = vpack.c.bf16 %v555_v34, %v554_v32  ;;  %v973_v41 = vpack.c.bf16 %v571_v35, %v570_v33 }
 0x105   : > { %v928_v42 = vpack.c.bf16 %v553_v38, %v552_v36  ;;  %v968_v43 = vpack.c.bf16 %v569_v39, %v568_v37  ;;  %v1045_v44 = vpop.f32.mrb[12].mxu0  ;;  %v1061_v45 = vpop.f32.mrb[12].mxu1 }
 0x106   : > { %989 = vst [vmem:[%s1215_s6 + $0x28] sm:$0xff] %v933_v40   ;;  %997 = vst [vmem:[%s1215_s6 + $0x68] sm:$0xff] %v973_v41   ;;  %v474_v46 = vadd.f32 %v1045_v44, %v1200_v22  ;;  %v538_v47 = vadd.f32 %v1061_v45, %v1200_v22  ;;  %v465_v48 = vpop.f32.mrb[13].mxu0  ;;  %v529_v49 = vpop.f32.mrb[13].mxu1 }
 0x107   : > { %988 = vst [vmem:[%s1215_s6 + $0x20] sm:$0xff] %v928_v42   ;;  %996 = vst [vmem:[%s1215_s6 + $0x60] sm:$0xff] %v968_v43   ;;  %v466_v50 = vadd.f32 %v1200_v22, %v465_v48  ;;  %v530_v51 = vadd.f32 %v1200_v22, %v529_v49  ;;  %v1046_v52 = vpop.f32.mrb[14].mxu0  ;;  %v1062_v53 = vpop.f32.mrb[14].mxu1 }
 0x108   : > { %v477_v54 = vadd.f32 %v1046_v52, %v1200_v22  ;;  %v541_v55 = vadd.f32 %v1062_v53, %v1200_v22  ;;  %v468_v56 = vpop.f32.mrb[15].mxu0  ;;  %v532_v57 = vpop.f32.mrb[15].mxu1  ;;  %v558_v60 = vmax.f32 %v474_v46, 0.0  ;;  %v574_v61 = vmax.f32 %v538_v47, 0.0 }
 0x109   : > { %v469_v58 = vadd.f32 %v1200_v22, %v468_v56  ;;  %v533_v59 = vadd.f32 %v1200_v22, %v532_v57  ;;  %v556_v0 = vmax.f32 %v466_v50, 0.0  ;;  %v572_v1 = vmax.f32 %v530_v51, 0.0 }
 0x10a   : > { %v559_v62 = vmax.f32 %v477_v54, 0.0  ;;  %v575_v63 = vmax.f32 %v541_v55, 0.0 }
 0x10b   : > { %v557_v2 = vmax.f32 %v469_v58, 0.0  ;;  %v573_v3 = vmax.f32 %v533_v59, 0.0 }
 0x10c   : > { %v943_v4 = vpack.c.bf16 %v559_v62, %v558_v60  ;;  %v983_v5 = vpack.c.bf16 %v575_v63, %v574_v61 }
 0x10d   : > { %v938_v6 = vpack.c.bf16 %v557_v2, %v556_v0  ;;  %v978_v7 = vpack.c.bf16 %v573_v3, %v572_v1 }
 0x10e   : > { %991 = vst [vmem:[%s1215_s6 + $0x38] sm:$0xff] %v943_v4   ;;  %999 = vst [vmem:[%s1215_s6 + $0x78] sm:$0xff] %v983_v5  }
 0x10f   : > { %990 = vst [vmem:[%s1215_s6 + $0x30] sm:$0xff] %v938_v6   ;;  %998 = vst [vmem:[%s1215_s6 + $0x70] sm:$0xff] %v978_v7  }
 0x110 PF: > { %s13_s12 = sadd.s32 1, %s1110_s12  }
 0x111   : > { %p10_p4 = scmp.ge.s32.totalorder %s13_s12, 4  }
 0x113   :  { %12 = sbr.rel (!%p10_p4) target bundleno = 1 (0x1), region = 62 }

// kernel: sdf_model_forward.11
= control target key start
LH: loop header
LB: loop body
LE: loop exit
PB: predicated region body
PF: predicated region fallthrough
CT: control target
= control target key end

     0   :  { %v569_v0 = vmov 0   ;;  %vm182_vm0 = vcmask 130048   ;;  %s718_s1 = inlined_call_operand.vmem [shape: bf16[144,128], index: 1, kind: input, shape index: {}]   ;;  %s719_s0 = inlined_call_operand.vmem [shape: bf16[128,144], index: 0, kind: input, shape index: {}]   ;;  %s720_s2 = inlined_call_operand.vmem [shape: f32[1,128], index: 2, kind: input, shape index: {}]   ;;  %s721_s3 = inlined_call_operand.vmem [shape: bf16[128,128], index: 3, kind: output, shape index: {}]  }
   0x1   :  { %207 = vmatprep.subr.bf16.mxu0 %v569_v0  ;;  %517 = vmatprep.subr.bf16.mxu1 %v569_v0  ;;  %v536_v1 = vld [vmem:[%s718_s1] sm:$0xff]   ;;  %v537_v2 = vld [vmem:[%s718_s1 + $0x8] sm:$0xff]   ;;  %v538_v3 = vld [vmem:[%s718_s1 + $0x10] sm:$0xff]  }
   0x2   :  { %208 = vmatpush1.bf16.msra.mxu0 %v536_v1  ;;  %526 = vmatpush1.bf16.msra.mxu1 %v536_v1  ;;  %v539_v4 = vld [vmem:[%s718_s1 + $0x18] sm:$0xff]   ;;  %v547_v5 = vld [vmem:[%s719_s0 + $0x4] ss:$8 sps:$4 sm:$0xff]   ;;  %v542_v9 = vld [vmem:[%s718_s1 + $0x30] sm:$0xff]  }
   0x3   :  { %209 = vmatprep.subr.bf16.mxu0 %v569_v0  ;;  %518 = vmatprep.subr.bf16.mxu1 %v569_v0  ;;  %v550_v6 = vld [vmem:[%s719_s0 + $0x44] ss:$8 sps:$4 sm:$0xff]   ;;  %v543_v10 = vld [vmem:[%s718_s1 + $0x38] sm:$0xff]   ;;  %v545_v12 = vld [vmem:[%s719_s0] ss:$8 sps:$4 sm:$0xff]  }
   0x4   :  { %430 = vmatprep.mubr.msk.bf16.mxu0 %vm182_vm0, %v547_v5  ;;  %434 = vmatprep.mubr.msk.bf16.mxu1 %vm182_vm0, %v550_v6  ;;  %v540_v7 = vld [vmem:[%s718_s1 + $0x20] sm:$0xff]   ;;  %v541_v8 = vld [vmem:[%s718_s1 + $0x28] sm:$0xff]   ;;  %v551_v14 = vld [vmem:[%s719_s0 + $0x14] ss:$8 sps:$4 sm:$0xff]  }
   0x5   :  { %v544_v11 = vld [vmem:[%s718_s1 + $0x40] sm:$0xff]   ;;  %v553_v15 = vld [vmem:[%s719_s0 + $0x54] ss:$8 sps:$4 sm:$0xff]   ;;  %v555_v16 = vld [vmem:[%s719_s0 + $0x10] ss:$8 sps:$4 sm:$0xff]  }
   0x6   :  { %210 = vmatpush1.bf16.msra.mxu0 %v537_v2  ;;  %527 = vmatpush1.bf16.msra.mxu1 %v537_v2  ;;  %v548_v13 = vld [vmem:[%s719_s0 + $0x40] ss:$8 sps:$4 sm:$0xff]   ;;  %v556_v17 = vld [vmem:[%s719_s0 + $0x50] ss:$8 sps:$4 sm:$0xff]   ;;  %v557_v18 = vld [vmem:[%s719_s0 + $0x24] ss:$8 sps:$4 sm:$0xff]  }
   0x7   :  { %211 = vmatprep.subr.bf16.mxu0 %v569_v0  ;;  %519 = vmatprep.subr.bf16.mxu1 %v569_v0  ;;  %v559_v19 = vld [vmem:[%s719_s0 + $0x64] ss:$8 sps:$4 sm:$0xff]   ;;  %v561_v20 = vld [vmem:[%s719_s0 + $0x20] ss:$8 sps:$4 sm:$0xff]   ;;  %v563_v22 = vld [vmem:[%s719_s0 + $0x34] ss:$8 sps:$4 sm:$0xff]  }
   0x8   :  { %v562_v21 = vld [vmem:[%s719_s0 + $0x60] ss:$8 sps:$4 sm:$0xff]   ;;  %v565_v23 = vld [vmem:[%s719_s0 + $0x74] ss:$8 sps:$4 sm:$0xff]   ;;  %v567_v24 = vld [vmem:[%s719_s0 + $0x30] ss:$8 sps:$4 sm:$0xff]  }
   0x9   :  { %v568_v25 = vld [vmem:[%s719_s0 + $0x70] ss:$8 sps:$4 sm:$0xff]   ;;  %v676_v26 = vld [vmem:[%s720_s2] ss:$0 sm:$0xff] }
   0xa   :  { %212 = vmatpush1.bf16.msra.mxu0 %v538_v3  ;;  %528 = vmatpush1.bf16.msra.mxu1 %v538_v3 }
   0xb   :  { %213 = vmatprep.subr.bf16.mxu0 %v569_v0  ;;  %520 = vmatprep.subr.bf16.mxu1 %v569_v0 }
   0xe   :  { %214 = vmatpush1.bf16.msra.mxu0 %v539_v4  ;;  %529 = vmatpush1.bf16.msra.mxu1 %v539_v4 }
   0xf   :  { %215 = vmatprep.subr.bf16.mxu0 %v569_v0  ;;  %521 = vmatprep.subr.bf16.mxu1 %v569_v0 }
  0x12   :  { %216 = vmatpush1.bf16.msra.mxu0 %v540_v7  ;;  %530 = vmatpush1.bf16.msra.mxu1 %v540_v7 }
  0x13   :  { %217 = vmatprep.subr.bf16.mxu0 %v569_v0  ;;  %522 = vmatprep.subr.bf16.mxu1 %v569_v0 }
  0x16   :  { %218 = vmatpush1.bf16.msra.mxu0 %v541_v8  ;;  %531 = vmatpush1.bf16.msra.mxu1 %v541_v8 }
  0x17   :  { %219 = vmatprep.subr.bf16.mxu0 %v569_v0  ;;  %523 = vmatprep.subr.bf16.mxu1 %v569_v0 }
  0x1a   :  { %220 = vmatpush1.bf16.msra.mxu0 %v542_v9  ;;  %532 = vmatpush1.bf16.msra.mxu1 %v542_v9 }
  0x1b   :  { %221 = vmatprep.subr.bf16.mxu0 %v569_v0  ;;  %524 = vmatprep.subr.bf16.mxu1 %v569_v0 }
  0x1e   :  { %222 = vmatpush1.bf16.msra.mxu0 %v543_v10  ;;  %533 = vmatpush1.bf16.msra.mxu1 %v543_v10 }
  0x1f   :  { %223 = vmatprep.subr.bf16.mxu0 %v569_v0  ;;  %525 = vmatprep.subr.bf16.mxu1 %v569_v0 }
  0x22   :  { %224 = vmatpush1.bf16.msra.mxu0 %v544_v11  ;;  %534 = vmatpush1.bf16.msra.mxu1 %v544_v11 }
  0x25   :  { %240 = vmatmul.mubr.bf16.vlgmr.msra.gmra.mrb[0].mxu0 %v545_v12  ;;  %272 = vmatmul.mubr.bf16.vlgmr.msra.gmra.mrb[0].mxu1 %v548_v13 }
  0x26   :  { %431 = vmatprep.mubr.msk.bf16.mxu0 %vm182_vm0, %v551_v14  ;;  %435 = vmatprep.mubr.msk.bf16.mxu1 %vm182_vm0, %v553_v15 }
  0x2d   :  { %248 = vmatmul.mubr.bf16.gmra.mrb[4].mxu0 %v555_v16  ;;  %280 = vmatmul.mubr.bf16.gmra.mrb[4].mxu1 %v556_v17 }
  0x2e   :  { %432 = vmatprep.mubr.msk.bf16.mxu0 %vm182_vm0, %v557_v18  ;;  %436 = vmatprep.mubr.msk.bf16.mxu1 %vm182_vm0, %v559_v19 }
  0x35   :  { %256 = vmatmul.mubr.bf16.gmra.mrb[8].mxu0 %v561_v20  ;;  %288 = vmatmul.mubr.bf16.gmra.mrb[8].mxu1 %v562_v21 }
  0x36   :  { %433 = vmatprep.mubr.msk.bf16.mxu0 %vm182_vm0, %v563_v22  ;;  %437 = vmatprep.mubr.msk.bf16.mxu1 %vm182_vm0, %v565_v23 }
  0x3d   :  { %264 = vmatmul.mubr.bf16.gmra.mrb[12].mxu0 %v567_v24  ;;  %296 = vmatmul.mubr.bf16.gmra.mrb[12].mxu1 %v568_v25 }
  0xf8   :  { %v241_v27 = vpop.f32.mrb[0].mxu0  ;;  %v273_v28 = vpop.f32.mrb[0].mxu1 }
  0xf9   :  { %v242_v29 = vadd.f32 %v676_v26, %v241_v27  ;;  %v274_v30 = vadd.f32 %v676_v26, %v273_v28  ;;  %v243_v31 = vpop.f32.mrb[1].mxu0  ;;  %v275_v32 = vpop.f32.mrb[1].mxu1 }
  0xfa   :  { %v244_v33 = vpop.f32.mrb[2].mxu0  ;;  %v276_v34 = vpop.f32.mrb[2].mxu1 }
  0xfb   :  { %v245_v35 = vadd.f32 %v676_v26, %v244_v33  ;;  %v277_v36 = vadd.f32 %v676_v26, %v276_v34  ;;  %v246_v37 = vpop.f32.mrb[3].mxu0  ;;  %v278_v38 = vpop.f32.mrb[3].mxu1  ;;  %v304_v39 = vmax.f32 %v242_v29, 0.0  ;;  %v312_v40 = vmax.f32 %v274_v30, 0.0 }
  0xfd   :  { %v305_v41 = vmax.f32 %v245_v35, 0.0  ;;  %v313_v42 = vmax.f32 %v277_v36, 0.0 }
  0xff   :  { %v473_v43 = vpack.c.bf16 %v305_v41, %v304_v39  ;;  %v493_v44 = vpack.c.bf16 %v313_v42, %v312_v40 }
 0x100   :  { %v249_v45 = vpop.f32.mrb[4].mxu0  ;;  %v281_v46 = vpop.f32.mrb[4].mxu1 }
 0x101   :  { %474 = vst [vmem:[%s721_s3] sm:$0xff] %v473_v43   ;;  %513 = vst [vmem:[%s721_s3 + $0x20] sm:$0xff] %v493_v44   ;;  %v250_v47 = vadd.f32 %v676_v26, %v249_v45  ;;  %v282_v48 = vadd.f32 %v676_v26, %v281_v46  ;;  %v251_v49 = vpop.f32.mrb[5].mxu0  ;;  %v283_v50 = vpop.f32.mrb[5].mxu1 }
 0x102   :  { %v252_v51 = vpop.f32.mrb[6].mxu0  ;;  %v284_v52 = vpop.f32.mrb[6].mxu1 }
 0x103   :  { %v253_v53 = vadd.f32 %v676_v26, %v252_v51  ;;  %v285_v54 = vadd.f32 %v676_v26, %v284_v52  ;;  %v254_v55 = vpop.f32.mrb[7].mxu0  ;;  %v286_v56 = vpop.f32.mrb[7].mxu1  ;;  %v306_v57 = vmax.f32 %v250_v47, 0.0  ;;  %v314_v58 = vmax.f32 %v282_v48, 0.0 }
 0x105   :  { %v307_v59 = vmax.f32 %v253_v53, 0.0  ;;  %v315_v60 = vmax.f32 %v285_v54, 0.0 }
 0x107   :  { %v478_v61 = vpack.c.bf16 %v307_v59, %v306_v57  ;;  %v498_v62 = vpack.c.bf16 %v315_v60, %v314_v58 }
 0x108   :  { %v257_v63 = vpop.f32.mrb[8].mxu0  ;;  %v289_v0 = vpop.f32.mrb[8].mxu1 }
 0x109   :  { %510 = vst [vmem:[%s721_s3 + $0x8] sm:$0xff] %v478_v61   ;;  %514 = vst [vmem:[%s721_s3 + $0x28] sm:$0xff] %v498_v62   ;;  %v258_v1 = vadd.f32 %v676_v26, %v257_v63  ;;  %v290_v2 = vadd.f32 %v676_v26, %v289_v0  ;;  %v259_v3 = vpop.f32.mrb[9].mxu0  ;;  %v291_v4 = vpop.f32.mrb[9].mxu1 }
 0x10a   :  { %v260_v5 = vpop.f32.mrb[10].mxu0  ;;  %v292_v6 = vpop.f32.mrb[10].mxu1 }
 0x10b   :  { %v261_v7 = vadd.f32 %v676_v26, %v260_v5  ;;  %v293_v8 = vadd.f32 %v676_v26, %v292_v6  ;;  %v262_v9 = vpop.f32.mrb[11].mxu0  ;;  %v294_v10 = vpop.f32.mrb[11].mxu1  ;;  %v308_v11 = vmax.f32 %v258_v1, 0.0  ;;  %v316_v12 = vmax.f32 %v290_v2, 0.0 }
 0x10d   :  { %v309_v13 = vmax.f32 %v261_v7, 0.0  ;;  %v317_v14 = vmax.f32 %v293_v8, 0.0 }
 0x10f   :  { %v483_v15 = vpack.c.bf16 %v309_v13, %v308_v11  ;;  %v503_v16 = vpack.c.bf16 %v317_v14, %v316_v12 }
 0x110   :  { %v265_v17 = vpop.f32.mrb[12].mxu0  ;;  %v297_v18 = vpop.f32.mrb[12].mxu1 }
 0x111   :  { %511 = vst [vmem:[%s721_s3 + $0x10] sm:$0xff] %v483_v15   ;;  %515 = vst [vmem:[%s721_s3 + $0x30] sm:$0xff] %v503_v16   ;;  %v266_v19 = vadd.f32 %v676_v26, %v265_v17  ;;  %v298_v20 = vadd.f32 %v676_v26, %v297_v18  ;;  %v267_v21 = vpop.f32.mrb[13].mxu0  ;;  %v299_v22 = vpop.f32.mrb[13].mxu1 }
 0x112   :  { %v268_v23 = vpop.f32.mrb[14].mxu0  ;;  %v300_v24 = vpop.f32.mrb[14].mxu1 }
 0x113   :  { %v269_v25 = vadd.f32 %v676_v26, %v268_v23  ;;  %v301_v27 = vadd.f32 %v676_v26, %v300_v24  ;;  %v270_v28 = vpop.f32.mrb[15].mxu0  ;;  %v302_v29 = vpop.f32.mrb[15].mxu1  ;;  %v310_v30 = vmax.f32 %v266_v19, 0.0  ;;  %v318_v31 = vmax.f32 %v298_v20, 0.0 }
 0x115   :  { %v311_v32 = vmax.f32 %v269_v25, 0.0  ;;  %v319_v33 = vmax.f32 %v301_v27, 0.0 }
 0x117   :  { %v488_v34 = vpack.c.bf16 %v311_v32, %v310_v30  ;;  %v508_v35 = vpack.c.bf16 %v319_v33, %v318_v31 }
 0x119   :  { %512 = vst [vmem:[%s721_s3 + $0x18] sm:$0xff] %v488_v34   ;;  %516 = vst [vmem:[%s721_s3 + $0x38] sm:$0xff] %v508_v35  }

// kernel: sdf_model_forward.12
= control target key start
LH: loop header
LB: loop body
LE: loop exit
PB: predicated region body
PF: predicated region fallthrough
CT: control target
= control target key end

     0   :  { %v329_v0 = vmov 0   ;;  %vm152_vm0 = vcmask 719872   ;;  %vm159_vm1 = vcmask 1043456   ;;  %s441_s1 = inlined_call_operand.vmem [shape: bf16[216,128], index: 1, kind: input, shape index: {}]   ;;  %s442_s0 = inlined_call_operand.vmem [shape: bf16[32,216], index: 0, kind: input, shape index: {}]   ;;  %s443_s2 = inlined_call_operand.vmem [shape: f32[1,128], index: 2, kind: input, shape index: {}]   ;;  %s444_s3 = inlined_call_operand.vmem [shape: bf16[32,128], index: 3, kind: output, shape index: {}]  }
   0x1   :  { %163 = vmatprep.subr.bf16.mxu0 %v329_v0  ;;  %280 = vmatprep.subr.bf16.mxu1 %v329_v0  ;;  %v309_v1 = vld [vmem:[%s441_s1] sm:$0xff]   ;;  %v310_v2 = vld [vmem:[%s441_s1 + $0x8] sm:$0xff]   ;;  %v311_v3 = vld [vmem:[%s441_s1 + $0x10] sm:$0xff]  }
   0x2   :  { %164 = vmatpush1.bf16.msra.mxu0 %v309_v1  ;;  %294 = vmatpush1.bf16.msra.mxu1 %v309_v1  ;;  %v312_v4 = vld [vmem:[%s441_s1 + $0x18] sm:$0xff]   ;;  %v313_v5 = vld [vmem:[%s441_s1 + $0x20] sm:$0xff]   ;;  %v314_v8 = vld [vmem:[%s441_s1 + $0x28] sm:$0xff]  }
   0x3   :  { %165 = vmatprep.subr.bf16.mxu0 %v329_v0  ;;  %281 = vmatprep.subr.bf16.mxu1 %v329_v0  ;;  %v325_v6 = vld [vmem:[%s442_s0 + $0x4] ss:$8 sps:$4 sm:$0xff]   ;;  %v328_v7 = vld [vmem:[%s442_s0 + $0x14] ss:$8 sps:$4 sm:$0xff]   ;;  %v322_v16 = vld [vmem:[%s441_s1 + $0x68] ss:$0 sps:$4 sm:$0xff]  }
   0x4   :  { %259 = vmatprep.mubr.msk.bf16.mxu0 %vm152_vm0, %v325_v6  ;;  %260 = vmatprep.mubr.msk.bf16.mxu1 %vm152_vm0, %v328_v7  ;;  %v315_v9 = vld [vmem:[%s441_s1 + $0x30] sm:$0xff]   ;;  %v316_v10 = vld [vmem:[%s441_s1 + $0x38] sm:$0xff]   ;;  %v317_v11 = vld [vmem:[%s441_s1 + $0x40] sm:$0xff]   ;;  %v161_v17 = vsel %vm159_vm1, %v322_v16, 0 }
   0x5   :  { %v318_v12 = vld [vmem:[%s441_s1 + $0x48] sm:$0xff]   ;;  %v319_v13 = vld [vmem:[%s441_s1 + $0x50] sm:$0xff]   ;;  %v320_v14 = vld [vmem:[%s441_s1 + $0x58] sm:$0xff]  }
   0x6   :  { %166 = vmatpush1.bf16.msra.mxu0 %v310_v2  ;;  %295 = vmatpush1.bf16.msra.mxu1 %v310_v2  ;;  %v321_v15 = vld [vmem:[%s441_s1 + $0x60] sm:$0xff]   ;;  %v326_v19 = vld [vmem:[%s442_s0 + $0x10] ss:$8 sps:$4 sm:$0xff]  }
   0x7   :  { %167 = vmatprep.subr.bf16.mxu0 %v329_v0  ;;  %282 = vmatprep.subr.bf16.mxu1 %v329_v0  ;;  %v323_v18 = vld [vmem:[%s442_s0] ss:$8 sps:$4 sm:$0xff]  }
   0x8   :  { %v240_v20 = vld [vmem:[%s443_s2] ss:$0 sm:$0xff] }
   0xa   :  { %168 = vmatpush1.bf16.msra.mxu0 %v311_v3  ;;  %296 = vmatpush1.bf16.msra.mxu1 %v311_v3 }
   0xb   :  { %169 = vmatprep.subr.bf16.mxu0 %v329_v0  ;;  %283 = vmatprep.subr.bf16.mxu1 %v329_v0 }
   0xe   :  { %170 = vmatpush1.bf16.msra.mxu0 %v312_v4  ;;  %297 = vmatpush1.bf16.msra.mxu1 %v312_v4 }
   0xf   :  { %171 = vmatprep.subr.bf16.mxu0 %v329_v0  ;;  %284 = vmatprep.subr.bf16.mxu1 %v329_v0 }
  0x12   :  { %172 = vmatpush1.bf16.msra.mxu0 %v313_v5  ;;  %298 = vmatpush1.bf16.msra.mxu1 %v313_v5 }
  0x13   :  { %173 = vmatprep.subr.bf16.mxu0 %v329_v0  ;;  %285 = vmatprep.subr.bf16.mxu1 %v329_v0 }
  0x16   :  { %174 = vmatpush1.bf16.msra.mxu0 %v314_v8  ;;  %299 = vmatpush1.bf16.msra.mxu1 %v314_v8 }
  0x17   :  { %175 = vmatprep.subr.bf16.mxu0 %v329_v0  ;;  %286 = vmatprep.subr.bf16.mxu1 %v329_v0 }
  0x1a   :  { %176 = vmatpush1.bf16.msra.mxu0 %v315_v9  ;;  %300 = vmatpush1.bf16.msra.mxu1 %v315_v9 }
  0x1b   :  { %177 = vmatprep.subr.bf16.mxu0 %v329_v0  ;;  %287 = vmatprep.subr.bf16.mxu1 %v329_v0 }
  0x1e   :  { %178 = vmatpush1.bf16.msra.mxu0 %v316_v10  ;;  %301 = vmatpush1.bf16.msra.mxu1 %v316_v10 }
  0x1f   :  { %179 = vmatprep.subr.bf16.mxu0 %v329_v0  ;;  %288 = vmatprep.subr.bf16.mxu1 %v329_v0 }
  0x22   :  { %180 = vmatpush1.bf16.msra.mxu0 %v317_v11  ;;  %302 = vmatpush1.bf16.msra.mxu1 %v317_v11 }
  0x23   :  { %181 = vmatprep.subr.bf16.mxu0 %v329_v0  ;;  %289 = vmatprep.subr.bf16.mxu1 %v329_v0 }
  0x26   :  { %182 = vmatpush1.bf16.msra.mxu0 %v318_v12  ;;  %303 = vmatpush1.bf16.msra.mxu1 %v318_v12 }
  0x27   :  { %183 = vmatprep.subr.bf16.mxu0 %v329_v0  ;;  %290 = vmatprep.subr.bf16.mxu1 %v329_v0 }
  0x2a   :  { %184 = vmatpush1.bf16.msra.mxu0 %v319_v13  ;;  %304 = vmatpush1.bf16.msra.mxu1 %v319_v13 }
  0x2b   :  { %185 = vmatprep.subr.bf16.mxu0 %v329_v0  ;;  %291 = vmatprep.subr.bf16.mxu1 %v329_v0 }
  0x2e   :  { %186 = vmatpush1.bf16.msra.mxu0 %v320_v14  ;;  %305 = vmatpush1.bf16.msra.mxu1 %v320_v14 }
  0x2f   :  { %187 = vmatprep.subr.bf16.mxu0 %v329_v0  ;;  %292 = vmatprep.subr.bf16.mxu1 %v329_v0 }
  0x32   :  { %188 = vmatpush1.bf16.msra.mxu0 %v321_v15  ;;  %306 = vmatpush1.bf16.msra.mxu1 %v321_v15 }
  0x33   :  { %189 = vmatprep.subr.bf16.mxu0 %v329_v0  ;;  %293 = vmatprep.subr.bf16.mxu1 %v329_v0 }
  0x36   :  { %190 = vmatpush1.bf16.msra.mxu0 %v161_v17  ;;  %307 = vmatpush1.bf16.msra.mxu1 %v161_v17 }
  0x39   :  { %196 = vmatmul.mubr.bf16.vlgmr.msra.gmra.mrb[0].mxu0 %v323_v18  ;;  %204 = vmatmul.mubr.bf16.vlgmr.msra.gmra.mrb[0].mxu1 %v326_v19 }
 0x10c   :  { %v197_v21 = vpop.f32.mrb[0].mxu0  ;;  %v205_v22 = vpop.f32.mrb[0].mxu1 }
 0x10d   :  { %v198_v23 = vadd.f32 %v240_v20, %v197_v21  ;;  %v206_v24 = vadd.f32 %v240_v20, %v205_v22  ;;  %v199_v25 = vpop.f32.mrb[1].mxu0  ;;  %v207_v26 = vpop.f32.mrb[1].mxu1 }
 0x10e   :  { %v200_v27 = vpop.f32.mrb[2].mxu0  ;;  %v208_v28 = vpop.f32.mrb[2].mxu1 }
 0x10f   :  { %v201_v29 = vadd.f32 %v240_v20, %v200_v27  ;;  %v209_v30 = vadd.f32 %v240_v20, %v208_v28  ;;  %v202_v31 = vpop.f32.mrb[3].mxu0  ;;  %v210_v32 = vpop.f32.mrb[3].mxu1  ;;  %v212_v33 = vmax.f32 %v198_v23, 0.0  ;;  %v214_v34 = vmax.f32 %v206_v24, 0.0 }
 0x111   :  { %v213_v35 = vmax.f32 %v201_v29, 0.0  ;;  %v215_v36 = vmax.f32 %v209_v30, 0.0 }
 0x113   :  { %v272_v37 = vpack.c.bf16 %v213_v35, %v212_v33  ;;  %v277_v38 = vpack.c.bf16 %v215_v36, %v214_v34 }
 0x115   :  { %273 = vst [vmem:[%s444_s3] sm:$0xff] %v272_v37   ;;  %279 = vst [vmem:[%s444_s3 + $0x8] sm:$0xff] %v277_v38  }

// kernel: sdf_model_forward.13
= control target key start
LH: loop header
LB: loop body
LE: loop exit
PB: predicated region body
PF: predicated region fallthrough
CT: control target
= control target key end

     0   :  { %vm388_vm0 = vcmask 785408   ;;  %s912_s1 = inlined_call_operand.vmem [shape: bf16[608,128], index: 1, kind: input, shape index: {}]   ;;  %s913_s0 = inlined_call_operand.vmem [shape: bf16[32,608], index: 0, kind: input, shape index: {}]   ;;  %s914_s2 = inlined_call_operand.vmem [shape: f32[1,128], index: 2, kind: input, shape index: {}]   ;;  %s915_s3 = inlined_call_operand.vmem [shape: f32[32,128], index: 3, kind: output, shape index: {}]  }
   0x1   :  { %v681_v0 = vld [vmem:[%s912_s1 + $0x40] sm:$0xff]   ;;  %v685_v4 = vld [vmem:[%s912_s1 + $0x48] sm:$0xff]   ;;  %v689_v8 = vld [vmem:[%s912_s1 + $0x50] sm:$0xff]  }
   0x2   :  { %v682_v1 = vld [vmem:[%s912_s1] sm:$0xff]   ;;  %601 = vmatprep.subr.bf16.mxu0 %v681_v0  ;;  %v686_v5 = vld [vmem:[%s912_s1 + $0x8] sm:$0xff]   ;;  %v690_v9 = vld [vmem:[%s912_s1 + $0x10] sm:$0xff]  }
   0x3   :  { %v683_v2 = vld [vmem:[%s912_s1 + $0xc0] sm:$0xff]   ;;  %602 = vmatpush3.bf16.msra.mxu0 %v682_v1  ;;  %v687_v6 = vld [vmem:[%s912_s1 + $0xc8] sm:$0xff]   ;;  %v691_v10 = vld [vmem:[%s912_s1 + $0xd0] sm:$0xff]  }
   0x4   :  { %v684_v3 = vld [vmem:[%s912_s1 + $0x80] sm:$0xff]   ;;  %629 = vmatprep.subr.bf16.mxu1 %v683_v2  ;;  %603 = vmatprep.subr.bf16.mxu0 %v685_v4  ;;  %v688_v7 = vld [vmem:[%s912_s1 + $0x88] sm:$0xff]   ;;  %v692_v11 = vld [vmem:[%s912_s1 + $0x90] sm:$0xff]  }
   0x5   :  { %630 = vmatpush3.bf16.msra.mxu1 %v684_v3  ;;  %v693_v12 = vld [vmem:[%s912_s1 + $0x58] sm:$0xff]   ;;  %v697_v16 = vld [vmem:[%s912_s1 + $0x60] sm:$0xff]   ;;  %v701_v20 = vld [vmem:[%s912_s1 + $0x68] sm:$0xff]  }
   0x6   :  { %631 = vmatprep.subr.bf16.mxu1 %v687_v6  ;;  %v694_v13 = vld [vmem:[%s912_s1 + $0x18] sm:$0xff]   ;;  %v698_v17 = vld [vmem:[%s912_s1 + $0x20] sm:$0xff]   ;;  %v702_v21 = vld [vmem:[%s912_s1 + $0x28] sm:$0xff]  }
   0x7   :  { %604 = vmatpush3.bf16.msra.mxu0 %v686_v5  ;;  %v695_v14 = vld [vmem:[%s912_s1 + $0xd8] sm:$0xff]   ;;  %v699_v18 = vld [vmem:[%s912_s1 + $0xe0] sm:$0xff]   ;;  %v703_v22 = vld [vmem:[%s912_s1 + $0xe8] sm:$0xff]  }
   0x8   :  { %605 = vmatprep.subr.bf16.mxu0 %v689_v8  ;;  %v696_v15 = vld [vmem:[%s912_s1 + $0x98] sm:$0xff]   ;;  %v700_v19 = vld [vmem:[%s912_s1 + $0xa0] sm:$0xff]   ;;  %v704_v23 = vld [vmem:[%s912_s1 + $0xa8] sm:$0xff]  }
   0x9   :  { %632 = vmatpush3.bf16.msra.mxu1 %v688_v7  ;;  %v705_v24 = vld [vmem:[%s912_s1 + $0x70] sm:$0xff]   ;;  %v709_v28 = vld [vmem:[%s912_s1 + $0x78] sm:$0xff]   ;;  %v716_v34 = vld [vmem:[%s912_s1 + $0x100] sm:$0xff]  }
   0xa   :  { %633 = vmatprep.subr.bf16.mxu1 %v691_v10  ;;  %v706_v25 = vld [vmem:[%s912_s1 + $0x30] sm:$0xff]   ;;  %v710_v29 = vld [vmem:[%s912_s1 + $0x38] sm:$0xff]   ;;  %v719_v36 = vld [vmem:[%s913_s0 + $0xc] ss:$20 sps:$4 sm:$0xff]  }
   0xb   :  { %606 = vmatpush3.bf16.msra.mxu0 %v690_v9  ;;  %v707_v26 = vld [vmem:[%s912_s1 + $0xf0] sm:$0xff]   ;;  %v711_v30 = vld [vmem:[%s912_s1 + $0xf8] sm:$0xff]   ;;  %v720_v37 = vld [vmem:[%s912_s1 + $0x108] sm:$0xff]   ;;  %476 = vmatprep.mubr.bf16.mxu1 %v719_v36 }
   0xc   :  { %607 = vmatprep.subr.bf16.mxu0 %v693_v12  ;;  %v708_v27 = vld [vmem:[%s912_s1 + $0xb0] sm:$0xff]   ;;  %v714_v32 = vld [vmem:[%s913_s0 + $0x4] ss:$20 sps:$4 sm:$0xff]   ;;  %v717_v35 = vld [vmem:[%s913_s0 + $0x8] ss:$20 sps:$4 sm:$0xff]  }
   0xd   :  { %634 = vmatpush3.bf16.msra.mxu1 %v692_v11  ;;  %v712_v31 = vld [vmem:[%s913_s0] ss:$20 sps:$4 sm:$0xff]   ;;  %v715_v33 = vld [vmem:[%s912_s1 + $0xb8] sm:$0xff]   ;;  %427 = vmatprep.mubr.bf16.mxu0 %v714_v32  ;;  %v728_v43 = vld [vmem:[%s913_s0 + $0x30] ss:$20 sps:$4 sm:$0xff]  }
   0xe   :  { %635 = vmatprep.subr.bf16.mxu1 %v695_v14  ;;  %v721_v38 = vld [vmem:[%s912_s1 + $0x110] sm:$0xff]   ;;  %v722_v39 = vld [vmem:[%s913_s0 + $0x2c] ss:$20 sps:$4 sm:$0xff]   ;;  %v725_v40 = vld [vmem:[%s913_s0 + $0x28] ss:$20 sps:$4 sm:$0xff]  }
   0xf   :  { %608 = vmatpush3.bf16.msra.mxu0 %v694_v13  ;;  %v726_v41 = vld [vmem:[%s913_s0 + $0x34] ss:$20 sps:$4 sm:$0xff]   ;;  %v724_v42 = vld [vmem:[%s912_s1 + $0x118] sm:$0xff]   ;;  %v731_v44 = vld [vmem:[%s913_s0 + $0x10] ss:$20 sps:$4 sm:$0xff]  }
  0x10   :  { %609 = vmatprep.subr.bf16.mxu0 %v697_v16  ;;  %v729_v45 = vld [vmem:[%s912_s1 + $0x120] sm:$0xff]   ;;  %v730_v46 = vld [vmem:[%s912_s1 + $0x128] sm:$0xff]  }
  0x11   :  { %636 = vmatpush3.bf16.msra.mxu1 %v696_v15  ;;  %v732_v47 = vld [vmem:[%s913_s0 + $0x38] ss:$20 sps:$4 sm:$0xff]   ;;  %v550_v49 = vld [vmem:[%s914_s2] ss:$0 sm:$0xff] }
  0x12   :  { %637 = vmatprep.subr.bf16.mxu1 %v699_v18 }
  0x13   :  { %610 = vmatpush3.bf16.msra.mxu0 %v698_v17 }
  0x14   :  { %611 = vmatprep.subr.bf16.mxu0 %v701_v20 }
  0x15   :  { %638 = vmatpush3.bf16.msra.mxu1 %v700_v19 }
  0x16   :  { %639 = vmatprep.subr.bf16.mxu1 %v703_v22 }
  0x17   :  { %612 = vmatpush3.bf16.msra.mxu0 %v702_v21 }
  0x18   :  { %613 = vmatprep.subr.bf16.mxu0 %v705_v24 }
  0x19   :  { %640 = vmatpush3.bf16.msra.mxu1 %v704_v23 }
  0x1a   :  { %641 = vmatprep.subr.bf16.mxu1 %v707_v26 }
  0x1b   :  { %614 = vmatpush3.bf16.msra.mxu0 %v706_v25 }
  0x1c   :  { %615 = vmatprep.subr.bf16.mxu0 %v709_v28 }
  0x1d   :  { %642 = vmatpush3.bf16.msra.mxu1 %v708_v27 }
  0x1e   :  { %643 = vmatprep.subr.bf16.mxu1 %v711_v30 }
  0x1f   :  { %616 = vmatpush3.bf16.msra.mxu0 %v710_v29 }
  0x20   :  { %665 = vmatprep.subr.bf16.mxu0 %v716_v34 }
  0x21   :  { %644 = vmatpush3.bf16.msra.mxu1 %v715_v33 }
  0x22   :  { %428 = vmatmul.mubr.bf16.vlgmr.msra.gmra.mrb[0].mxu0 %v712_v31 }
  0x23   :  { %666 = vmatpush3.bf16.msra.mxu0 %v716_v34  ;;  %435 = vmatprep.mubr.bf16.mxu0 %v722_v39 }
  0x24   :  { %477 = vmatmul.mubr.bf16.vlgmr.msra.gmra.mrb[0].mxu1 %v717_v35  ;;  %667 = vmatprep.subr.bf16.mxu0 %v720_v37 }
  0x25   :  { %484 = vmatprep.mubr.bf16.mxu1 %v726_v41 }
  0x27   :  { %668 = vmatpush3.bf16.msra.mxu0 %v720_v37 }
  0x28   :  { %669 = vmatprep.subr.bf16.mxu0 %v721_v38 }
  0x2a   :  { %436 = vmatmul.mubr.bf16.gmra.mrb[4].mxu0 %v725_v40 }
  0x2b   :  { %670 = vmatpush3.bf16.msra.mxu0 %v721_v38  ;;  %677 = vmatprep.mubr.msk.bf16.mxu0 %vm388_vm0, %v731_v44 }
  0x2c   :  { %671 = vmatprep.subr.bf16.mxu0 %v724_v42  ;;  %485 = vmatmul.mubr.bf16.gmra.mrb[4].mxu1 %v728_v43 }
  0x2f   :  { %672 = vmatpush3.bf16.msra.mxu0 %v724_v42 }
  0x30   :  { %673 = vmatprep.subr.bf16.mxu0 %v729_v45 }
  0x33   :  { %674 = vmatpush3.bf16.msra.mxu0 %v729_v45 }
  0x34   :  { %675 = vmatprep.subr.bf16.mxu0 %v730_v46 }
  0x37   :  { %676 = vmatpush3.bf16.msra.mxu0 %v730_v46 }
  0x3a   :  { %678 = vmatmul.mubr.msk.bf16.vlgmr.msra.gmra.mrb[8].mxu0 %vm388_vm0, %v732_v47 }
  0xf5   :  { %v617_v48 = vpop.f32.mrb[0].mxu0 }
  0xf6   :  { %v618_v50 = vpop.f32.mrb[1].mxu0 }
  0xf7   :  { %v619_v51 = vadd.f32 %v618_v50, %v617_v48  ;;  %v620_v52 = vpop.f32.mrb[2].mxu0  ;;  %v645_v53 = vpop.f32.mrb[0].mxu1 }
  0xf8   :  { %v621_v54 = vpop.f32.mrb[3].mxu0  ;;  %v646_v57 = vpop.f32.mrb[1].mxu1 }
  0xf9   :  { %v430_v55 = vadd.f32 %v619_v51, %v550_v49  ;;  %v622_v56 = vadd.f32 %v621_v54, %v620_v52  ;;  %v647_v58 = vadd.f32 %v646_v57, %v645_v53  ;;  %v648_v59 = vpop.f32.mrb[2].mxu1 }
  0xfa   :  { %v649_v61 = vpop.f32.mrb[3].mxu1 }
  0xfb   :  { %v433_v60 = vadd.f32 %v622_v56, %v550_v49  ;;  %v650_v62 = vadd.f32 %v649_v61, %v648_v59  ;;  %v479_v63 = vadd.f32 %v647_v58, %v430_v55 }
  0xfd   :  { %v623_v0 = vpop.f32.mrb[4].mxu0  ;;  %v482_v2 = vadd.f32 %v650_v62, %v433_v60 }
  0xfe   :  { %v624_v1 = vpop.f32.mrb[5].mxu0 }
  0xff   :  { %v625_v3 = vadd.f32 %v624_v1, %v623_v0  ;;  %v626_v4 = vpop.f32.mrb[6].mxu0  ;;  %v651_v5 = vpop.f32.mrb[4].mxu1 }
 0x100   :  { %v627_v6 = vpop.f32.mrb[7].mxu0  ;;  %v652_v9 = vpop.f32.mrb[5].mxu1 }
 0x101   :  { %v438_v7 = vadd.f32 %v625_v3, %v550_v49  ;;  %v628_v8 = vadd.f32 %v627_v6, %v626_v4  ;;  %v653_v10 = vadd.f32 %v652_v9, %v651_v5  ;;  %v654_v11 = vpop.f32.mrb[6].mxu1 }
 0x102   :  { %v655_v13 = vpop.f32.mrb[7].mxu1 }
 0x103   :  { %v441_v12 = vadd.f32 %v628_v8, %v550_v49  ;;  %v656_v14 = vadd.f32 %v655_v13, %v654_v11  ;;  %v487_v15 = vadd.f32 %v653_v10, %v438_v7 }
 0x105   :  { %v490_v16 = vadd.f32 %v656_v14, %v441_v12 }
 0x10d   :  { %v679_v17 = vpop.f32.mrb[8].mxu0 }
 0x10e   :  { %v536_v18 = vadd.f32 %v679_v17, %v487_v15  ;;  %v527_v19 = vpop.f32.mrb[9].mxu0 }
 0x10f   :  { %v528_v20 = vadd.f32 %v527_v19, %v479_v63  ;;  %v680_v21 = vpop.f32.mrb[10].mxu0 }
 0x110   :  { %544 = vst [vmem:[%s915_s3 + $0x10] sm:$0xff] %v536_v18  ;;  %v539_v22 = vadd.f32 %v680_v21, %v490_v16  ;;  %v530_v23 = vpop.f32.mrb[11].mxu0 }
 0x111   :  { %542 = vst [vmem:[%s915_s3] sm:$0xff] %v528_v20  ;;  %v531_v24 = vadd.f32 %v530_v23, %v482_v2 }
 0x112   :  { %545 = vst [vmem:[%s915_s3 + $0x18] sm:$0xff] %v539_v22 }
 0x113   :  { %543 = vst [vmem:[%s915_s3 + $0x8] sm:$0xff] %v531_v24 }

// kernel: sdf_model_forward.14
= control target key start
LH: loop header
LB: loop body
LE: loop exit
PB: predicated region body
PF: predicated region fallthrough
CT: control target
= control target key end

     0   :  { %vm68_vm0 = vcmask 523264   ;;  %s251_s1 = inlined_call_operand.vmem [shape: bf16[64,128], index: 1, kind: input, shape index: {}]   ;;  %s252_s0 = inlined_call_operand.vmem [shape: bf16[32,64], index: 0, kind: input, shape index: {}]   ;;  %s253_s2 = inlined_call_operand.vmem [shape: f32[1,128], index: 2, kind: input, shape index: {}]   ;;  %s254_s3 = inlined_call_operand.vmem [shape: bf16[32,128], index: 3, kind: output, shape index: {}]  }
   0x1   :  { %v198_v0 = vld [vmem:[%s251_s1] sm:$0xff]   ;;  %v199_v1 = vld [vmem:[%s251_s1 + $0x8] sm:$0xff]   ;;  %v200_v2 = vld [vmem:[%s251_s1 + $0x10] sm:$0xff]  }
   0x2   :  { %186 = vmatprep.subr.bf16.mxu0 %v198_v0  ;;  %v202_v3 = vld [vmem:[%s252_s0] sm:$0xff]   ;;  %v201_v4 = vld [vmem:[%s251_s1 + $0x18] sm:$0xff]   ;;  %v203_v5 = vld [vmem:[%s252_s0 + $0x8] sm:$0xff]  }
   0x3   :  { %187 = vmatpush3.bf16.msra.mxu0 %v198_v0  ;;  %194 = vmatprep.mubr.msk.bf16.mxu0 %vm68_vm0, %v202_v3  ;;  %v152_v6 = vld [vmem:[%s253_s2] ss:$0 sm:$0xff] }
   0x4   :  { %188 = vmatprep.subr.bf16.mxu0 %v199_v1 }
   0x7   :  { %189 = vmatpush3.bf16.msra.mxu0 %v199_v1 }
   0x8   :  { %190 = vmatprep.subr.bf16.mxu0 %v200_v2 }
   0xb   :  { %191 = vmatpush3.bf16.msra.mxu0 %v200_v2 }
   0xc   :  { %192 = vmatprep.subr.bf16.mxu0 %v201_v4 }
   0xf   :  { %193 = vmatpush3.bf16.msra.mxu0 %v201_v4 }
  0x12   :  { %195 = vmatmul.mubr.msk.bf16.vlgmr.msra.gmra.mrb[0].mxu0 %vm68_vm0, %v203_v5 }
  0xe5   :  { %v196_v7 = vpop.f32.mrb[0].mxu0 }
  0xe6   :  { %v118_v8 = vadd.f32 %v196_v7, %v152_v6  ;;  %v109_v9 = vpop.f32.mrb[1].mxu0 }
  0xe7   :  { %v110_v10 = vadd.f32 %v152_v6, %v109_v9  ;;  %v197_v11 = vpop.f32.mrb[2].mxu0 }
  0xe8   :  { %v121_v12 = vadd.f32 %v197_v11, %v152_v6  ;;  %v112_v13 = vpop.f32.mrb[3].mxu0  ;;  %v126_v15 = vmax.f32 %v118_v8, 0.0 }
  0xe9   :  { %v113_v14 = vadd.f32 %v152_v6, %v112_v13  ;;  %v124_v17 = vmax.f32 %v110_v10, 0.0 }
  0xea   :  { %v127_v16 = vmax.f32 %v121_v12, 0.0 }
  0xeb   :  { %v125_v18 = vmax.f32 %v113_v14, 0.0 }
  0xec   :  { %v177_v19 = vpack.c.bf16 %v127_v16, %v126_v15 }
  0xed   :  { %v172_v20 = vpack.c.bf16 %v125_v18, %v124_v17 }
  0xee   :  { %179 = vst [vmem:[%s254_s3 + $0x8] sm:$0xff] %v177_v19  }
  0xef   :  { %173 = vst [vmem:[%s254_s3] sm:$0xff] %v172_v20  }

// kernel: sdf_model_forward.15
= control target key start
LH: loop header
LB: loop body
LE: loop exit
PB: predicated region body
PF: predicated region fallthrough
CT: control target
= control target key end

     0   :  { %vm115_vm0 = vcmask 1043456   ;;  %vm90_vm1 = vcmask 195584   ;;  %s545_s1 = inlined_call_operand.vmem [shape: bf16[24,128], index: 1, kind: input, shape index: {}]   ;;  %s546_s0 = inlined_call_operand.vmem [shape: bf16[128,24], index: 0, kind: input, shape index: {}]   ;;  %s547_s2 = inlined_call_operand.vmem [shape: f32[1,128], index: 2, kind: input, shape index: {}]   ;;  %s548_s3 = inlined_call_operand.vmem [shape: bf16[128,128], index: 3, kind: output, shape index: {}]  }
   0x1   :  { %v450_v0 = vld [vmem:[%s545_s1] sm:$0xff]   ;;  %v451_v1 = vld [vmem:[%s545_s1 + $0x8] ss:$0 sps:$4 sm:$0xff]   ;;  %v456_v7 = vld [vmem:[%s546_s0 + $0x10] sm:$0xff]  }
   0x2   :  { %424 = vmatprep.subr.bf16.mxu0 %v450_v0  ;;  %444 = vmatprep.subr.bf16.mxu1 %v450_v0  ;;  %v452_v2 = vld [vmem:[%s546_s0] sm:$0xff]   ;;  %v117_v4 = vsel %vm115_vm0, %v451_v1, 0  ;;  %v454_v5 = vld [vmem:[%s546_s0 + $0x8] sm:$0xff]   ;;  %v457_v8 = vld [vmem:[%s546_s0 + $0x30] sm:$0xff]  }
   0x3   :  { %425 = vmatpush3.bf16.msra.mxu0 %v450_v0  ;;  %446 = vmatpush3.bf16.msra.mxu1 %v450_v0  ;;  %v453_v3 = vld [vmem:[%s546_s0 + $0x20] sm:$0xff]   ;;  %v455_v6 = vld [vmem:[%s546_s0 + $0x28] sm:$0xff]   ;;  %v458_v9 = vld [vmem:[%s546_s0 + $0x18] sm:$0xff]  }
   0x4   :  { %448 = vmatprep.subr.msk.bf16.mxu0 %vm115_vm0, %v451_v1  ;;  %449 = vmatprep.subr.msk.bf16.mxu1 %vm115_vm0, %v451_v1  ;;  %v459_v10 = vld [vmem:[%s546_s0 + $0x38] sm:$0xff]   ;;  %v316_v11 = vld [vmem:[%s547_s2] ss:$0 sm:$0xff] }
   0x5   :  { %428 = vmatprep.mubr.msk.bf16.mxu0 %vm90_vm1, %v452_v2  ;;  %436 = vmatprep.mubr.msk.bf16.mxu1 %vm90_vm1, %v453_v3 }
   0x7   :  { %427 = vmatpush3.bf16.msra.mxu0 %v117_v4  ;;  %447 = vmatpush3.bf16.msra.mxu1 %v117_v4 }
   0xa   :  { %429 = vmatmul.mubr.msk.bf16.vlgmr.msra.gmra.mrb[0].mxu0 %vm90_vm1, %v454_v5  ;;  %437 = vmatmul.mubr.msk.bf16.vlgmr.msra.gmra.mrb[0].mxu1 %vm90_vm1, %v455_v6 }
   0xb   :  { %432 = vmatprep.mubr.msk.bf16.mxu0 %vm90_vm1, %v456_v7  ;;  %440 = vmatprep.mubr.msk.bf16.mxu1 %vm90_vm1, %v457_v8 }
  0x12   :  { %433 = vmatmul.mubr.msk.bf16.gmra.mrb[4].mxu0 %vm90_vm1, %v458_v9  ;;  %441 = vmatmul.mubr.msk.bf16.gmra.mrb[4].mxu1 %vm90_vm1, %v459_v10 }
  0xdd   :  { %v430_v12 = vpop.f32.mrb[0].mxu0  ;;  %v438_v13 = vpop.f32.mrb[0].mxu1 }
  0xde   :  { %v162_v14 = vadd.f32 %v430_v12, %v316_v11  ;;  %v194_v15 = vadd.f32 %v438_v13, %v316_v11  ;;  %v153_v16 = vpop.f32.mrb[1].mxu0  ;;  %v185_v17 = vpop.f32.mrb[1].mxu1 }
  0xdf   :  { %v154_v18 = vadd.f32 %v316_v11, %v153_v16  ;;  %v186_v19 = vadd.f32 %v316_v11, %v185_v17  ;;  %v431_v20 = vpop.f32.mrb[2].mxu0  ;;  %v439_v21 = vpop.f32.mrb[2].mxu1 }
  0xe0   :  { %v165_v22 = vadd.f32 %v431_v20, %v316_v11  ;;  %v197_v23 = vadd.f32 %v439_v21, %v316_v11  ;;  %v156_v24 = vpop.f32.mrb[3].mxu0  ;;  %v188_v25 = vpop.f32.mrb[3].mxu1  ;;  %v218_v28 = vmax.f32 %v162_v14, 0.0  ;;  %v226_v29 = vmax.f32 %v194_v15, 0.0 }
  0xe1   :  { %v157_v26 = vadd.f32 %v316_v11, %v156_v24  ;;  %v189_v27 = vadd.f32 %v316_v11, %v188_v25  ;;  %v216_v32 = vmax.f32 %v154_v18, 0.0  ;;  %v224_v33 = vmax.f32 %v186_v19, 0.0 }
  0xe2   :  { %v219_v30 = vmax.f32 %v165_v22, 0.0  ;;  %v227_v31 = vmax.f32 %v197_v23, 0.0 }
  0xe3   :  { %v217_v34 = vmax.f32 %v157_v26, 0.0  ;;  %v225_v35 = vmax.f32 %v189_v27, 0.0 }
  0xe4   :  { %v375_v36 = vpack.c.bf16 %v219_v30, %v218_v28  ;;  %v395_v37 = vpack.c.bf16 %v227_v31, %v226_v29 }
  0xe5   :  { %v370_v38 = vpack.c.bf16 %v217_v34, %v216_v32  ;;  %v390_v39 = vpack.c.bf16 %v225_v35, %v224_v33  ;;  %v434_v40 = vpop.f32.mrb[4].mxu0  ;;  %v442_v41 = vpop.f32.mrb[4].mxu1 }
  0xe6   :  { %407 = vst [vmem:[%s548_s3 + $0x8] sm:$0xff] %v375_v36   ;;  %411 = vst [vmem:[%s548_s3 + $0x28] sm:$0xff] %v395_v37   ;;  %v178_v42 = vadd.f32 %v434_v40, %v316_v11  ;;  %v210_v43 = vadd.f32 %v442_v41, %v316_v11  ;;  %v169_v44 = vpop.f32.mrb[5].mxu0  ;;  %v201_v45 = vpop.f32.mrb[5].mxu1 }
  0xe7   :  { %371 = vst [vmem:[%s548_s3] sm:$0xff] %v370_v38   ;;  %410 = vst [vmem:[%s548_s3 + $0x20] sm:$0xff] %v390_v39   ;;  %v170_v46 = vadd.f32 %v316_v11, %v169_v44  ;;  %v202_v47 = vadd.f32 %v316_v11, %v201_v45  ;;  %v435_v48 = vpop.f32.mrb[6].mxu0  ;;  %v443_v49 = vpop.f32.mrb[6].mxu1 }
  0xe8   :  { %v181_v50 = vadd.f32 %v435_v48, %v316_v11  ;;  %v213_v51 = vadd.f32 %v443_v49, %v316_v11  ;;  %v172_v52 = vpop.f32.mrb[7].mxu0  ;;  %v204_v53 = vpop.f32.mrb[7].mxu1  ;;  %v222_v56 = vmax.f32 %v178_v42, 0.0  ;;  %v230_v57 = vmax.f32 %v210_v43, 0.0 }
  0xe9   :  { %v173_v54 = vadd.f32 %v316_v11, %v172_v52  ;;  %v205_v55 = vadd.f32 %v316_v11, %v204_v53  ;;  %v220_v60 = vmax.f32 %v170_v46, 0.0  ;;  %v228_v61 = vmax.f32 %v202_v47, 0.0 }
  0xea   :  { %v223_v58 = vmax.f32 %v181_v50, 0.0  ;;  %v231_v59 = vmax.f32 %v213_v51, 0.0 }
  0xeb   :  { %v221_v62 = vmax.f32 %v173_v54, 0.0  ;;  %v229_v63 = vmax.f32 %v205_v55, 0.0 }
  0xec   :  { %v385_v0 = vpack.c.bf16 %v223_v58, %v222_v56  ;;  %v405_v1 = vpack.c.bf16 %v231_v59, %v230_v57 }
  0xed   :  { %v380_v2 = vpack.c.bf16 %v221_v62, %v220_v60  ;;  %v400_v3 = vpack.c.bf16 %v229_v63, %v228_v61 }
  0xee   :  { %409 = vst [vmem:[%s548_s3 + $0x18] sm:$0xff] %v385_v0   ;;  %413 = vst [vmem:[%s548_s3 + $0x38] sm:$0xff] %v405_v1  }
  0xef   :  { %408 = vst [vmem:[%s548_s3 + $0x10] sm:$0xff] %v380_v2   ;;  %412 = vst [vmem:[%s548_s3 + $0x30] sm:$0xff] %v400_v3  }

// kernel: squeeze.1
= control target key start
LH: loop header
LB: loop body
LE: loop exit
PB: predicated region body
PF: predicated region fallthrough
CT: control target
= control target key end

     0   :  { %s130_s8 = smov 104   ;;  %s131_s9 = smov 112   ;;  %vm7_vm0 = vcmask 64512   ;;  %s221_s0 = inlined_call_operand.vmem [shape: f32[128], index: 0, kind: input, shape index: {}]   ;;  %s222_s1 = inlined_call_operand.vmem [shape: f32[16,8], index: 1, kind: output, shape index: {}]  }
   0x1   :  { %v4_v0 = vld [vmem:[%s221_s0] sm:$0x1]  ;;  %s129_s0 = smov 120   ;;  %s132_s10 = smov 96  }
   0x2   :  { %5 = vst [vmem:[#allocation0] sm:$0x1] %v4_v0  ;;  %s133_s11 = smov 88   ;;  %s134_s12 = smov 80  }
   0x3   :  { %s135_s13 = smov 72   ;;  %s136_s14 = smov 64  }
   0x4   :  { %s137_s17 = smov 56   ;;  %s138_s18 = smov 48  }
   0x5   :  { %s139_s19 = smov 40   ;;  %s140_s20 = smov 32  }
   0x6   :  { %s141_s21 = smov 24   ;;  %s142_s22 = smov 16  }
   0x7   :  { %s143_s23 = smov 8  }
   0x9   :  { %v9_v1 = vld [vmem:[#allocation0] sm:$0x1]  }
   0xa   :  { %v21_v2 = vld [vmem:[#allocation0] sm:$0x1]   ;;  %10 = vrot.lane.b32.xlu0 %v9_v1, %s129_s0 }
   0xb   :  { %22 = vrot.lane.b32.xlu1 %v21_v2, %s130_s8  ;;  %v15_v3 = vld [vmem:[#allocation0] sm:$0x1]  }
   0xc   :  { %v27_v4 = vld [vmem:[#allocation0] sm:$0x1]  }
   0xd   :  { %v33_v5 = vld [vmem:[#allocation0] sm:$0x1]  }
   0xe   :  { %16 = vrot.lane.b32.xlu0 %v15_v3, %s131_s9  ;;  %v39_v6 = vld [vmem:[#allocation0] sm:$0x1]  }
   0xf   :  { %28 = vrot.lane.b32.xlu1 %v27_v4, %s132_s10  ;;  %v45_v7 = vld [vmem:[#allocation0] sm:$0x1]  }
  0x10   :  { %v51_v8 = vld [vmem:[#allocation0] sm:$0x1]  }
  0x11   :  { %v57_v9 = vld [vmem:[#allocation0] sm:$0x1]  }
  0x12   :  { %34 = vrot.lane.b32.xlu0 %v33_v5, %s133_s11  ;;  %v63_v10 = vld [vmem:[#allocation0] sm:$0x1]  }
  0x13   :  { %40 = vrot.lane.b32.xlu1 %v39_v6, %s134_s12  ;;  %v6_v11 = vld [vmem:[#allocation0] sm:$0x1]  }
  0x14   :  { %8 = vst.msk [vmem:[%s222_s1] sm:$0x1] %vm7_vm0, %v6_v11   ;;  %v69_v12 = vld [vmem:[#allocation0] sm:$0x1]  }
  0x15   :  { %v75_v13 = vld [vmem:[#allocation0] sm:$0x1]  }
  0x16   :  { %46 = vrot.lane.b32.xlu0 %v45_v7, %s135_s13  ;;  %v81_v14 = vld [vmem:[#allocation0] sm:$0x1]  }
  0x17   :  { %52 = vrot.lane.b32.xlu1 %v51_v8, %s136_s14  ;;  %v87_v15 = vld [vmem:[#allocation0] sm:$0x1]  }
  0x18   :  { %v93_v16 = vld [vmem:[#allocation0] sm:$0x1]  }
  0x1a   :  { %58 = vrot.lane.b32.xlu0 %v57_v9, %s137_s17 }
  0x1b   :  { %64 = vrot.lane.b32.xlu1 %v63_v10, %s138_s18 }
  0x1e   :  { %70 = vrot.lane.b32.xlu0 %v69_v12, %s139_s19 }
  0x1f   :  { %76 = vrot.lane.b32.xlu1 %v75_v13, %s140_s20 }
  0x22   :  { %82 = vrot.lane.b32.xlu0 %v81_v14, %s141_s21 }
  0x23   :  { %88 = vrot.lane.b32.xlu1 %v87_v15, %s142_s22 }
  0x26   :  { %94 = vrot.lane.b32.xlu0 %v93_v16, %s143_s23 }
  0x7c   :  { %v11_v17 = vpop.permute.xlu0 %10  }
  0x7d   :  { %v23_v18 = vpop.permute.xlu1 %22   ;;  %99 = vst.msk [vmem:[%s222_s1 + $0x1] sm:$0x1] %vm7_vm0, %v11_v17  }
  0x7e   :  { %101 = vst.msk [vmem:[%s222_s1 + $0x3] sm:$0x1] %vm7_vm0, %v23_v18  }
  0x80   :  { %v17_v19 = vpop.permute.xlu0 %16  }
  0x81   :  { %v29_v20 = vpop.permute.xlu1 %28   ;;  %100 = vst.msk [vmem:[%s222_s1 + $0x2] sm:$0x1] %vm7_vm0, %v17_v19  }
  0x82   :  { %102 = vst.msk [vmem:[%s222_s1 + $0x4] sm:$0x1] %vm7_vm0, %v29_v20  }
  0x84   :  { %v35_v21 = vpop.permute.xlu0 %34  }
  0x85   :  { %v41_v22 = vpop.permute.xlu1 %40   ;;  %103 = vst.msk [vmem:[%s222_s1 + $0x5] sm:$0x1] %vm7_vm0, %v35_v21  }
  0x86   :  { %104 = vst.msk [vmem:[%s222_s1 + $0x6] sm:$0x1] %vm7_vm0, %v41_v22  }
  0x88   :  { %v47_v23 = vpop.permute.xlu0 %46  }
  0x89   :  { %v53_v24 = vpop.permute.xlu1 %52   ;;  %105 = vst.msk [vmem:[%s222_s1 + $0x7] sm:$0x1] %vm7_vm0, %v47_v23  }
  0x8a   :  { %106 = vst.msk [vmem:[%s222_s1 + $0x8] sm:$0x1] %vm7_vm0, %v53_v24  }
  0x8c   :  { %v59_v25 = vpop.permute.xlu0 %58  }
  0x8d   :  { %v65_v26 = vpop.permute.xlu1 %64   ;;  %107 = vst.msk [vmem:[%s222_s1 + $0x9] sm:$0x1] %vm7_vm0, %v59_v25  }
  0x8e   :  { %108 = vst.msk [vmem:[%s222_s1 + $0xa] sm:$0x1] %vm7_vm0, %v65_v26  }
  0x90   :  { %v71_v27 = vpop.permute.xlu0 %70  }
  0x91   :  { %v77_v28 = vpop.permute.xlu1 %76   ;;  %109 = vst.msk [vmem:[%s222_s1 + $0xb] sm:$0x1] %vm7_vm0, %v71_v27  }
  0x92   :  { %110 = vst.msk [vmem:[%s222_s1 + $0xc] sm:$0x1] %vm7_vm0, %v77_v28  }
  0x94   :  { %v83_v29 = vpop.permute.xlu0 %82  }
  0x95   :  { %v89_v30 = vpop.permute.xlu1 %88   ;;  %111 = vst.msk [vmem:[%s222_s1 + $0xd] sm:$0x1] %vm7_vm0, %v83_v29  }
  0x96   :  { %112 = vst.msk [vmem:[%s222_s1 + $0xe] sm:$0x1] %vm7_vm0, %v89_v30  }
  0x98   :  { %v95_v31 = vpop.permute.xlu0 %94  }
  0x99   :  { %113 = vst.msk [vmem:[%s222_s1 + $0xf] sm:$0x1] %vm7_vm0, %v95_v31  }

// kernel: sdf_model_forward.16
= control target key start
LH: loop header
LB: loop body
LE: loop exit
PB: predicated region body
PF: predicated region fallthrough
CT: control target
= control target key end

     0   :  { %v705_v0 = vmov 0   ;;  %vm224_vm0 = vcmask 719872   ;;  %vm249_vm1 = vcmask 1043456   ;;  %s930_s1 = inlined_call_operand.vmem [shape: bf16[216,128], index: 1, kind: input, shape index: {}]   ;;  %s931_s0 = inlined_call_operand.vmem [shape: bf16[128,216], index: 0, kind: input, shape index: {}]   ;;  %s932_s3 = inlined_call_operand.vmem [shape: bf16[128,128], index: 3, kind: input, shape index: {}]   ;;  %s933_s2 = inlined_call_operand.vmem [shape: f32[1,128], index: 2, kind: input, shape index: {}]   ;;  %s934_s4 = inlined_call_operand.vmem [shape: f32[1,128], index: 4, kind: input, shape index: {}]   ;;  %s935_s5 = inlined_call_operand.vmem [shape: f32[128,128], index: 5, kind: output, shape index: {}]  }
   0x1   :  { %253 = vmatprep.subr.bf16.mxu0 %v705_v0  ;;  %v659_v1 = vld [vmem:[%s930_s1] sm:$0xff]   ;;  %v660_v2 = vld [vmem:[%s930_s1 + $0x8] sm:$0xff]   ;;  %v661_v3 = vld [vmem:[%s930_s1 + $0x10] sm:$0xff]  }
   0x2   :  { %254 = vmatpush1.bf16.msra.mxu0 %v659_v1  ;;  %v662_v4 = vld [vmem:[%s930_s1 + $0x18] sm:$0xff]   ;;  %v663_v5 = vld [vmem:[%s930_s1 + $0x20] sm:$0xff]   ;;  %v664_v7 = vld [vmem:[%s930_s1 + $0x28] sm:$0xff]  }
   0x3   :  { %255 = vmatprep.subr.bf16.mxu0 %v705_v0  ;;  %v675_v6 = vld [vmem:[%s931_s0 + $0x4] ss:$8 sps:$4 sm:$0xff]   ;;  %v665_v8 = vld [vmem:[%s930_s1 + $0x30] sm:$0xff]   ;;  %v666_v9 = vld [vmem:[%s930_s1 + $0x38] sm:$0xff]  }
   0x4   :  { %593 = vmatprep.mubr.msk.bf16.mxu0 %vm224_vm0, %v675_v6  ;;  %v697_v10 = vld [vmem:[%s932_s3] sm:$0xff]   ;;  %v698_v11 = vld [vmem:[%s932_s3 + $0x8] sm:$0xff]   ;;  %v699_v13 = vld [vmem:[%s932_s3 + $0x10] sm:$0xff]  }
   0x5   :  { %626 = vmatprep.subr.bf16.mxu1 %v697_v10  ;;  %v667_v12 = vld [vmem:[%s930_s1 + $0x40] sm:$0xff]   ;;  %v700_v14 = vld [vmem:[%s932_s3 + $0x18] sm:$0xff]   ;;  %v668_v15 = vld [vmem:[%s930_s1 + $0x48] sm:$0xff]  }
   0x6   :  { %256 = vmatpush1.bf16.msra.mxu0 %v660_v2  ;;  %627 = vmatpush3.bf16.msra.mxu1 %v697_v10  ;;  %v669_v16 = vld [vmem:[%s930_s1 + $0x50] sm:$0xff]   ;;  %v670_v17 = vld [vmem:[%s930_s1 + $0x58] sm:$0xff]   ;;  %v671_v18 = vld [vmem:[%s930_s1 + $0x60] sm:$0xff]  }
   0x7   :  { %257 = vmatprep.subr.bf16.mxu0 %v705_v0  ;;  %628 = vmatprep.subr.bf16.mxu1 %v698_v11  ;;  %v672_v19 = vld [vmem:[%s930_s1 + $0x68] ss:$0 sps:$4 sm:$0xff]   ;;  %v676_v22 = vld [vmem:[%s931_s0 + $0x14] ss:$8 sps:$4 sm:$0xff]   ;;  %v678_v23 = vld [vmem:[%s931_s0 + $0x10] ss:$8 sps:$4 sm:$0xff]  }
   0x8   :  { %v251_v20 = vsel %vm249_vm1, %v672_v19, 0  ;;  %v673_v21 = vld [vmem:[%s931_s0] ss:$8 sps:$4 sm:$0xff]   ;;  %v679_v24 = vld [vmem:[%s931_s0 + $0x24] ss:$8 sps:$4 sm:$0xff]   ;;  %v703_v38 = vld [vmem:[%s932_s3 + $0x30] sm:$0xff]  }
   0x9   :  { %v681_v25 = vld [vmem:[%s931_s0 + $0x20] ss:$8 sps:$4 sm:$0xff]   ;;  %v682_v26 = vld [vmem:[%s931_s0 + $0x34] ss:$8 sps:$4 sm:$0xff]   ;;  %v684_v27 = vld [vmem:[%s931_s0 + $0x30] ss:$8 sps:$4 sm:$0xff]  }
   0xa   :  { %258 = vmatpush1.bf16.msra.mxu0 %v661_v3  ;;  %629 = vmatpush3.bf16.msra.mxu1 %v698_v11  ;;  %v685_v28 = vld [vmem:[%s931_s0 + $0x44] ss:$8 sps:$4 sm:$0xff]   ;;  %v687_v29 = vld [vmem:[%s931_s0 + $0x40] ss:$8 sps:$4 sm:$0xff]   ;;  %v688_v30 = vld [vmem:[%s931_s0 + $0x54] ss:$8 sps:$4 sm:$0xff]  }
   0xb   :  { %259 = vmatprep.subr.bf16.mxu0 %v705_v0  ;;  %630 = vmatprep.subr.bf16.mxu1 %v699_v13  ;;  %v690_v31 = vld [vmem:[%s931_s0 + $0x50] ss:$8 sps:$4 sm:$0xff]   ;;  %v691_v32 = vld [vmem:[%s931_s0 + $0x64] ss:$8 sps:$4 sm:$0xff]   ;;  %v693_v33 = vld [vmem:[%s931_s0 + $0x60] ss:$8 sps:$4 sm:$0xff]  }
   0xc   :  { %v694_v34 = vld [vmem:[%s931_s0 + $0x74] ss:$8 sps:$4 sm:$0xff]   ;;  %v696_v35 = vld [vmem:[%s931_s0 + $0x70] ss:$8 sps:$4 sm:$0xff]   ;;  %v701_v36 = vld [vmem:[%s932_s3 + $0x20] sm:$0xff]  }
   0xd   :  { %v702_v37 = vld [vmem:[%s932_s3 + $0x28] sm:$0xff]   ;;  %v704_v39 = vld [vmem:[%s932_s3 + $0x38] sm:$0xff]   ;;  %v861_v40 = vld [vmem:[%s933_s2] ss:$0 sm:$0xff] }
   0xe   :  { %260 = vmatpush1.bf16.msra.mxu0 %v662_v4  ;;  %631 = vmatpush3.bf16.msra.mxu1 %v699_v13 }
   0xf   :  { %261 = vmatprep.subr.bf16.mxu0 %v705_v0  ;;  %632 = vmatprep.subr.bf16.mxu1 %v700_v14 }
  0x12   :  { %262 = vmatpush1.bf16.msra.mxu0 %v663_v5  ;;  %633 = vmatpush3.bf16.msra.mxu1 %v700_v14 }
  0x13   :  { %263 = vmatprep.subr.bf16.mxu0 %v705_v0  ;;  %634 = vmatprep.subr.bf16.mxu1 %v701_v36 }
  0x16   :  { %264 = vmatpush1.bf16.msra.mxu0 %v664_v7  ;;  %635 = vmatpush3.bf16.msra.mxu1 %v701_v36 }
  0x17   :  { %265 = vmatprep.subr.bf16.mxu0 %v705_v0  ;;  %636 = vmatprep.subr.bf16.mxu1 %v702_v37 }
  0x1a   :  { %266 = vmatpush1.bf16.msra.mxu0 %v665_v8  ;;  %637 = vmatpush3.bf16.msra.mxu1 %v702_v37 }
  0x1b   :  { %267 = vmatprep.subr.bf16.mxu0 %v705_v0  ;;  %638 = vmatprep.subr.bf16.mxu1 %v703_v38 }
  0x1e   :  { %268 = vmatpush1.bf16.msra.mxu0 %v666_v9  ;;  %639 = vmatpush3.bf16.msra.mxu1 %v703_v38 }
  0x1f   :  { %269 = vmatprep.subr.bf16.mxu0 %v705_v0  ;;  %640 = vmatprep.subr.bf16.mxu1 %v704_v39 }
  0x22   :  { %270 = vmatpush1.bf16.msra.mxu0 %v667_v12  ;;  %641 = vmatpush3.bf16.msra.mxu1 %v704_v39 }
  0x23   :  { %271 = vmatprep.subr.bf16.mxu0 %v705_v0 }
  0x26   :  { %272 = vmatpush1.bf16.msra.mxu0 %v668_v15 }
  0x27   :  { %273 = vmatprep.subr.bf16.mxu0 %v705_v0 }
  0x2a   :  { %274 = vmatpush1.bf16.msra.mxu0 %v669_v16 }
  0x2b   :  { %275 = vmatprep.subr.bf16.mxu0 %v705_v0 }
  0x2e   :  { %276 = vmatpush1.bf16.msra.mxu0 %v670_v17 }
  0x2f   :  { %277 = vmatprep.subr.bf16.mxu0 %v705_v0 }
  0x32   :  { %278 = vmatpush1.bf16.msra.mxu0 %v671_v18 }
  0x33   :  { %279 = vmatprep.subr.bf16.mxu0 %v705_v0 }
  0x36   :  { %280 = vmatpush1.bf16.msra.mxu0 %v251_v20 }
  0x39   :  { %286 = vmatmul.mubr.bf16.vlgmr.msra.gmra.mrb[0].mxu0 %v673_v21 }
  0x3a   :  { %594 = vmatprep.mubr.msk.bf16.mxu0 %vm224_vm0, %v676_v22 }
  0x41   :  { %294 = vmatmul.mubr.bf16.gmra.mrb[4].mxu0 %v678_v23 }
  0x42   :  { %595 = vmatprep.mubr.msk.bf16.mxu0 %vm224_vm0, %v679_v24 }
  0x49   :  { %302 = vmatmul.mubr.bf16.gmra.mrb[8].mxu0 %v681_v25 }
  0x4a   :  { %596 = vmatprep.mubr.msk.bf16.mxu0 %vm224_vm0, %v682_v26 }
  0x51   :  { %310 = vmatmul.mubr.bf16.gmra.mrb[12].mxu0 %v684_v27 }
  0x52   :  { %597 = vmatprep.mubr.msk.bf16.mxu0 %vm224_vm0, %v685_v28 }
  0x59   :  { %318 = vmatmul.mubr.bf16.gmra.mrb[16].mxu0 %v687_v29 }
  0x5a   :  { %598 = vmatprep.mubr.msk.bf16.mxu0 %vm224_vm0, %v688_v30 }
  0x61   :  { %326 = vmatmul.mubr.bf16.gmra.mrb[20].mxu0 %v690_v31 }
  0x62   :  { %599 = vmatprep.mubr.msk.bf16.mxu0 %vm224_vm0, %v691_v32 }
  0x69   :  { %334 = vmatmul.mubr.bf16.gmra.mrb[24].mxu0 %v693_v33 }
  0x6a   :  { %600 = vmatprep.mubr.msk.bf16.mxu0 %vm224_vm0, %v694_v34 }
  0x71   :  { %342 = vmatmul.mubr.bf16.gmra.mrb[28].mxu0 %v696_v35 }
 0x10c   :  { %v287_v41 = vpop.f32.mrb[0].mxu0 }
 0x10d   :  { %v288_v42 = vadd.f32 %v861_v40, %v287_v41  ;;  %v289_v43 = vpop.f32.mrb[1].mxu0 }
 0x10e   :  { %v290_v44 = vpop.f32.mrb[2].mxu0 }
 0x10f   :  { %v291_v45 = vadd.f32 %v861_v40, %v290_v44  ;;  %v292_v46 = vpop.f32.mrb[3].mxu0  ;;  %v350_v47 = vmax.f32 %v288_v42, 0.0 }
 0x111   :  { %v351_v48 = vmax.f32 %v291_v45, 0.0 }
 0x113   :  { %v366_v49 = vpack.c.bf16 %v351_v48, %v350_v47 }
 0x114   :  { %v295_v50 = vpop.f32.mrb[4].mxu0 }
 0x115   :  { %v296_v51 = vadd.f32 %v861_v40, %v295_v50  ;;  %v297_v52 = vpop.f32.mrb[5].mxu0  ;;  %642 = vmatprep.mubr.bf16.mxu1 %v366_v49  ;;  %v601_v50 = vld [vmem:[%s934_s4] ss:$0 sm:$0xff] }
 0x116   :  { %v298_v53 = vpop.f32.mrb[6].mxu0 }
 0x117   :  { %v299_v54 = vadd.f32 %v861_v40, %v298_v53  ;;  %v300_v55 = vpop.f32.mrb[7].mxu0  ;;  %v352_v56 = vmax.f32 %v296_v51, 0.0 }
 0x119   :  { %v353_v57 = vmax.f32 %v299_v54, 0.0 }
 0x11b   :  { %v367_v58 = vpack.c.bf16 %v353_v57, %v352_v56 }
 0x11c   :  { %v303_v59 = vpop.f32.mrb[8].mxu0 }
 0x11d   :  { %v304_v60 = vadd.f32 %v861_v40, %v303_v59  ;;  %v305_v61 = vpop.f32.mrb[9].mxu0  ;;  %643 = vmatmul.mubr.bf16.vlgmr.msra.gmra.mrb[0].mxu1 %v367_v58 }
 0x11e   :  { %v306_v62 = vpop.f32.mrb[10].mxu0 }
 0x11f   :  { %v307_v63 = vadd.f32 %v861_v40, %v306_v62  ;;  %v308_v0 = vpop.f32.mrb[11].mxu0  ;;  %v354_v1 = vmax.f32 %v304_v60, 0.0 }
 0x121   :  { %v355_v2 = vmax.f32 %v307_v63, 0.0 }
 0x123   :  { %v368_v3 = vpack.c.bf16 %v355_v2, %v354_v1 }
 0x124   :  { %v311_v4 = vpop.f32.mrb[12].mxu0 }
 0x125   :  { %v312_v5 = vadd.f32 %v861_v40, %v311_v4  ;;  %v313_v6 = vpop.f32.mrb[13].mxu0  ;;  %646 = vmatprep.mubr.bf16.mxu1 %v368_v3 }
 0x126   :  { %v314_v7 = vpop.f32.mrb[14].mxu0 }
 0x127   :  { %v315_v8 = vadd.f32 %v861_v40, %v314_v7  ;;  %v316_v9 = vpop.f32.mrb[15].mxu0  ;;  %v356_v10 = vmax.f32 %v312_v5, 0.0 }
 0x129   :  { %v357_v11 = vmax.f32 %v315_v8, 0.0 }
 0x12b   :  { %v369_v12 = vpack.c.bf16 %v357_v11, %v356_v10 }
 0x12c   :  { %v319_v13 = vpop.f32.mrb[16].mxu0 }
 0x12d   :  { %v320_v14 = vadd.f32 %v861_v40, %v319_v13  ;;  %v321_v15 = vpop.f32.mrb[17].mxu0  ;;  %647 = vmatmul.mubr.bf16.gmra.mrb[4].mxu1 %v369_v12 }
 0x12e   :  { %v322_v16 = vpop.f32.mrb[18].mxu0 }
 0x12f   :  { %v323_v17 = vadd.f32 %v861_v40, %v322_v16  ;;  %v324_v18 = vpop.f32.mrb[19].mxu0  ;;  %v358_v19 = vmax.f32 %v320_v14, 0.0 }
 0x131   :  { %v359_v20 = vmax.f32 %v323_v17, 0.0 }
 0x133   :  { %v370_v21 = vpack.c.bf16 %v359_v20, %v358_v19 }
 0x134   :  { %v327_v22 = vpop.f32.mrb[20].mxu0 }
 0x135   :  { %v328_v23 = vadd.f32 %v861_v40, %v327_v22  ;;  %v329_v24 = vpop.f32.mrb[21].mxu0  ;;  %650 = vmatprep.mubr.bf16.mxu1 %v370_v21 }
 0x136   :  { %v330_v25 = vpop.f32.mrb[22].mxu0 }
 0x137   :  { %v331_v26 = vadd.f32 %v861_v40, %v330_v25  ;;  %v332_v27 = vpop.f32.mrb[23].mxu0  ;;  %v360_v28 = vmax.f32 %v328_v23, 0.0 }
 0x139   :  { %v361_v29 = vmax.f32 %v331_v26, 0.0 }
 0x13b   :  { %v371_v30 = vpack.c.bf16 %v361_v29, %v360_v28 }
 0x13c   :  { %v335_v31 = vpop.f32.mrb[24].mxu0 }
 0x13d   :  { %v336_v32 = vadd.f32 %v861_v40, %v335_v31  ;;  %v337_v33 = vpop.f32.mrb[25].mxu0  ;;  %651 = vmatmul.mubr.bf16.gmra.mrb[8].mxu1 %v371_v30 }
 0x13e   :  { %v338_v34 = vpop.f32.mrb[26].mxu0 }
 0x13f   :  { %v339_v35 = vadd.f32 %v861_v40, %v338_v34  ;;  %v340_v36 = vpop.f32.mrb[27].mxu0  ;;  %v362_v37 = vmax.f32 %v336_v32, 0.0 }
 0x141   :  { %v363_v38 = vmax.f32 %v339_v35, 0.0 }
 0x143   :  { %v372_v39 = vpack.c.bf16 %v363_v38, %v362_v37 }
 0x144   :  { %v343_v41 = vpop.f32.mrb[28].mxu0 }
 0x145   :  { %v344_v42 = vadd.f32 %v861_v40, %v343_v41  ;;  %v345_v43 = vpop.f32.mrb[29].mxu0  ;;  %654 = vmatprep.mubr.bf16.mxu1 %v372_v39 }
 0x146   :  { %v346_v44 = vpop.f32.mrb[30].mxu0 }
 0x147   :  { %v347_v45 = vadd.f32 %v861_v40, %v346_v44  ;;  %v348_v46 = vpop.f32.mrb[31].mxu0  ;;  %v364_v47 = vmax.f32 %v344_v42, 0.0 }
 0x149   :  { %v365_v48 = vmax.f32 %v347_v45, 0.0 }
 0x14b   :  { %v373_v49 = vpack.c.bf16 %v365_v48, %v364_v47 }
 0x14d   :  { %655 = vmatmul.mubr.bf16.gmra.mrb[12].mxu1 %v373_v49 }
 0x1f0   :  { %v644_v51 = vpop.f32.mrb[0].mxu1 }
 0x1f1   :  { %v488_v52 = vadd.f32 %v644_v51, %v601_v50  ;;  %v479_v53 = vpop.f32.mrb[1].mxu1 }
 0x1f2   :  { %v480_v54 = vadd.f32 %v601_v50, %v479_v53  ;;  %v645_v55 = vpop.f32.mrb[2].mxu1 }
 0x1f3   :  { %544 = vst [vmem:[%s935_s5 + $0x10] sm:$0xff] %v488_v52  ;;  %v491_v56 = vadd.f32 %v645_v55, %v601_v50  ;;  %v482_v40 = vpop.f32.mrb[3].mxu1 }
 0x1f4   :  { %542 = vst [vmem:[%s935_s5] sm:$0xff] %v480_v54  ;;  %v483_v57 = vadd.f32 %v601_v50, %v482_v40 }
 0x1f5   :  { %545 = vst [vmem:[%s935_s5 + $0x18] sm:$0xff] %v491_v56 }
 0x1f6   :  { %543 = vst [vmem:[%s935_s5 + $0x8] sm:$0xff] %v483_v57 }
 0x200   :  { %v648_v58 = vpop.f32.mrb[4].mxu1 }
 0x201   :  { %v504_v59 = vadd.f32 %v648_v58, %v601_v50  ;;  %v495_v60 = vpop.f32.mrb[5].mxu1 }
 0x202   :  { %v496_v61 = vadd.f32 %v601_v50, %v495_v60  ;;  %v649_v62 = vpop.f32.mrb[6].mxu1 }
 0x203   :  { %548 = vst [vmem:[%s935_s5 + $0x30] sm:$0xff] %v504_v59  ;;  %v507_v63 = vadd.f32 %v649_v62, %v601_v50  ;;  %v498_v0 = vpop.f32.mrb[7].mxu1 }
 0x204   :  { %546 = vst [vmem:[%s935_s5 + $0x20] sm:$0xff] %v496_v61  ;;  %v499_v1 = vadd.f32 %v601_v50, %v498_v0 }
 0x205   :  { %549 = vst [vmem:[%s935_s5 + $0x38] sm:$0xff] %v507_v63 }
 0x206   :  { %547 = vst [vmem:[%s935_s5 + $0x28] sm:$0xff] %v499_v1 }
 0x210   :  { %v652_v2 = vpop.f32.mrb[8].mxu1 }
 0x211   :  { %v520_v3 = vadd.f32 %v652_v2, %v601_v50  ;;  %v511_v4 = vpop.f32.mrb[9].mxu1 }
 0x212   :  { %v512_v5 = vadd.f32 %v601_v50, %v511_v4  ;;  %v653_v6 = vpop.f32.mrb[10].mxu1 }
 0x213   :  { %552 = vst [vmem:[%s935_s5 + $0x50] sm:$0xff] %v520_v3  ;;  %v523_v7 = vadd.f32 %v653_v6, %v601_v50  ;;  %v514_v8 = vpop.f32.mrb[11].mxu1 }
 0x214   :  { %550 = vst [vmem:[%s935_s5 + $0x40] sm:$0xff] %v512_v5  ;;  %v515_v9 = vadd.f32 %v601_v50, %v514_v8 }
 0x215   :  { %553 = vst [vmem:[%s935_s5 + $0x58] sm:$0xff] %v523_v7 }
 0x216   :  { %551 = vst [vmem:[%s935_s5 + $0x48] sm:$0xff] %v515_v9 }
 0x220   :  { %v656_v10 = vpop.f32.mrb[12].mxu1 }
 0x221   :  { %v536_v11 = vadd.f32 %v656_v10, %v601_v50  ;;  %v527_v12 = vpop.f32.mrb[13].mxu1 }
 0x222   :  { %v528_v13 = vadd.f32 %v601_v50, %v527_v12  ;;  %v657_v14 = vpop.f32.mrb[14].mxu1 }
 0x223   :  { %556 = vst [vmem:[%s935_s5 + $0x70] sm:$0xff] %v536_v11  ;;  %v539_v15 = vadd.f32 %v657_v14, %v601_v50  ;;  %v530_v16 = vpop.f32.mrb[15].mxu1 }
 0x224   :  { %554 = vst [vmem:[%s935_s5 + $0x60] sm:$0xff] %v528_v13  ;;  %v531_v17 = vadd.f32 %v601_v50, %v530_v16 }
 0x225   :  { %557 = vst [vmem:[%s935_s5 + $0x78] sm:$0xff] %v539_v15 }
 0x226   :  { %555 = vst [vmem:[%s935_s5 + $0x68] sm:$0xff] %v531_v17 }

// kernel: sdf_model_forward.17
= control target key start
LH: loop header
LB: loop body
LE: loop exit
PB: predicated region body
PF: predicated region fallthrough
CT: control target
= control target key end

     0   :  { %vm18_vm0 = vcmask 64512   ;;  %s481_s0 = inlined_call_operand.vmem [shape: f32[16,8], index: 0, kind: input, shape index: {}]   ;;  %s482_s1 = inlined_call_operand.vmem [shape: f32[8,32], index: 1, kind: input, shape index: {}]   ;;  %s483_s2 = inlined_call_operand.vmem [shape: f32[32,8], index: 2, kind: input, shape index: {}]   ;;  %s484_s3 = inlined_call_operand.hbm [shape: f32[2,32,32], index: 3, kind: output, shape index: {}]  }
   0x1   :  { %v17_v0 = vld [vmem:[%s482_s1] sm:$0xff]  ;;  %v16_v2 = vld [vmem:[%s481_s0 + $0x8] sm:$0xff] }
   0x2   :  { %v15_v1 = vld [vmem:[%s481_s0] sm:$0xff]  ;;  %343 = vmatprep.subr.mxu0 %v17_v0 }
   0x3   :  { %345 = vmatprep.mubr.msk.f32.mxu0 %vm18_vm0, %v15_v1 }
   0x4   :  { %8 = vsyncpa [#allocation3], 0  ;;  %344 = vmatpush3.msra.mxu0 %v17_v0  ;;  %v100_v3 = vld [vmem:[%s483_s2] sm:$0xff]  ;;  %v101_v5 = vld [vmem:[%s483_s2 + $0x8] sm:$0xff]  ;;  %vm205_vm1 = vcmask 261120  }
   0x5   :  { %346 = vmatmul.mubr.msk.f32.vlgmr.msra.gmra.mrb[0].mxu0 %vm18_vm0, %v16_v2  ;;  %350 = vmatprep.mubr.msk.f32.mxu1 %vm18_vm0, %v100_v3  ;;  %v102_v7 = vld [vmem:[%s483_s2 + $0x10] sm:$0xff]  ;;  %v103_v8 = vld [vmem:[%s483_s2 + $0x18] sm:$0xff]  ;;  %s407_s2 = smov [#allocation2]  }
   0x6   :  { %358 = vmatprep.mubr.msk.f32.mxu0 %vm18_vm0, %v100_v3  ;;  %s309_s24 = sshll.u32 %s407_s2, 4  ;;  %s310_s24 = int_to_ptr.vmem [resolvable:$true] %s309_s24 }
   0x7   :  { %s383_s25 = scalar_lea.vmem %s310_s24, 1024  ;;  %p388_p1 = scmp.lt.s32.totalorder %s310_s24, %s310_s24 }
   0x8   :  { %p384_p0 = scmp.ne.s32.totalorder %s310_s24, %s383_s25  ;;  %p389_p2 = scmp.lt.s32.totalorder %s383_s25, %s383_s25 }
   0xa   :  { %p390_p3 = por %p389_p2, %p388_p1 }
   0xc   :  { %p391_p4 = pnand %p390_p3, %p384_p0 }
  0xd8   :  { %v347_v4 = vpop.f32.mrb[0].mxu0 }
  0xd9   :  { %v91_v6 = vpop.f32.mrb[1].mxu0  ;;  %356 = vmatprep.subr.mxu0 %v347_v4 }
  0xda   :  { %348 = vmatprep.subr.mxu1 %v91_v6  ;;  %357 = vmatpush3.msra.mxu0 %v347_v4 }
  0xdb   :  { %349 = vmatpush3.msra.mxu1 %v91_v6  ;;  %359 = vmatmul.mubr.msk.f32.vlgmr.msra.gmra.mrb[2].mxu0 %vm18_vm0, %v101_v5 }
  0xdc   :  { %351 = vmatmul.mubr.msk.f32.vlgmr.msra.gmra.mrb[0].mxu1 %vm18_vm0, %v101_v5  ;;  %361 = vmatprep.mubr.msk.f32.mxu0 %vm18_vm0, %v102_v7 }
  0xdd   :  { %353 = vmatprep.mubr.msk.f32.mxu1 %vm18_vm0, %v102_v7 }
  0xdf   :  { %362 = vmatmul.mubr.msk.f32.gmra.mrb[4].mxu0 %vm18_vm0, %v103_v8 }
  0xe0   :  { %354 = vmatmul.mubr.msk.f32.gmra.mrb[2].mxu1 %vm18_vm0, %v103_v8 }
 0x1ae   :  { %v360_v9 = vpop.f32.mrb[2].mxu0 }
 0x1af   :  { %v352_v10 = vpop.f32.mrb[0].mxu1  ;;  %367 = vtanh.f32 %v360_v9  ;;  %v276_v11 = vpop.f32.mrb[3].mxu0 }
 0x1b0   :  { %369 = vtanh.f32 %v352_v10  ;;  %v182_v12 = vpop.f32.mrb[1].mxu1 }
 0x1b1   :  { %371 = vtanh.f32 %v182_v12 }
 0x1b2   :  { %373 = vtanh.f32 %v276_v11  ;;  %v363_v13 = vpop.f32.mrb[4].mxu0 }
 0x1b3   :  { %v355_v14 = vpop.f32.mrb[2].mxu1  ;;  %375 = vtanh.f32 %v363_v13  ;;  %v286_v15 = vpop.f32.mrb[5].mxu0 }
 0x1b4   :  { %377 = vtanh.f32 %v355_v14  ;;  %v192_v16 = vpop.f32.mrb[3].mxu1 }
 0x1b5   :  { %379 = vtanh.f32 %v192_v16 }
 0x1b6   :  { %381 = vtanh.f32 %v286_v15 }
 0x1b9   :  { %v368_v17 = vpop.eup %367 }
 0x1ba   :  { %v370_v18 = vpop.eup %369  ;;  %301 = vst.msk [vmem:[#allocation2 + $0x28] sm:$0xff] %vm205_vm1, %v368_v17 }
 0x1bb   :  { %v372_v19 = vpop.eup %371  ;;  %207 = vst.msk [vmem:[#allocation2 + $0x8] sm:$0xff] %vm205_vm1, %v370_v18 }
 0x1bc   :  { %v374_v20 = vpop.eup %373  ;;  %206 = vst.msk [vmem:[#allocation2] sm:$0xff] %vm205_vm1, %v372_v19 }
 0x1bd   :  { %v376_v21 = vpop.eup %375  ;;  %300 = vst.msk [vmem:[#allocation2 + $0x20] sm:$0xff] %vm205_vm1, %v374_v20 }
 0x1be   :  { %v378_v22 = vpop.eup %377  ;;  %303 = vst.msk [vmem:[#allocation2 + $0x38] sm:$0xff] %vm205_vm1, %v376_v21 }
 0x1bf   :  { %v380_v23 = vpop.eup %379  ;;  %209 = vst.msk [vmem:[#allocation2 + $0x18] sm:$0xff] %vm205_vm1, %v378_v22 }
 0x1c0   :  { %v382_v24 = vpop.eup %381  ;;  %208 = vst.msk [vmem:[#allocation2 + $0x10] sm:$0xff] %vm205_vm1, %v380_v23 }
 0x1c1   :  { %302 = vst.msk [vmem:[#allocation2 + $0x30] sm:$0xff] %vm205_vm1, %v382_v24 }
 0x1c2   :  { %394 = shalt.err (!%p391_p4)
}
 0x1c3   :  { %s395_s28 = scalar_lea.hbm %s484_s3, 1024 }
 0x1c4   :  { %p396_p5 = scmp.ne.s32.totalorder %s484_s3, %s395_s28  ;;  %p399_p6 = scmp.lt.u32.totalorder %s395_s28, %s484_s3 }
 0x1c6   :  { %p401_p7 = pnand %p399_p6, %p396_p5 }
 0x1c8   :  { %404 = shalt.err (!%p401_p7)
}
 0x1c9   :  { %s408_s6 = smov 128   ;;  %s409_s7 = smov 8  }
 0x1ca   :  { %315 = dma.vmem_to_hbm [thread:$0]  %s310_s24, 1024, %s484_s3, [#allocation3], %s408_s6, %s408_s6, %s409_s7  }
 0x1cb   :  { %405 = dma.done.wait [#allocation3], 1024  }
 0x1cc   :  { %406 = vsyncadd [#allocation3], 4294966272 }
 0x1cd   :  { %319 = vsyncpa [#allocation3], 1 }

</bundles_post_ra>
